<compile_context>
chip_gen: v6e
topology: v6e:2x2x1
jax: 0.10.0
libtpu: 0.0.40
codegen_flags: <defaults>
</compile_context>

<pallas_src>
import functools

import jax
import jax.numpy as jnp
from jax.experimental import pallas as pl
from jax.experimental.pallas import tpu as pltpu


# ----------------------------------------------------------------------------
# Generic tiled linear:  y = relu?( (optionally L2-row-normalized a) @ w + b )
# ----------------------------------------------------------------------------

def _linear_kernel(a_ref, w_ref, b_ref, o_ref, *, normalize, relu):
    a = a_ref[...].astype(jnp.float32)
    if normalize:  # F.normalize(p=2, dim=1, eps=1e-12) over rows of a
        nrm = jnp.sqrt(jnp.sum(a * a, axis=-1, keepdims=True))
        a = a / jnp.maximum(nrm, 1e-12)
    o = jnp.dot(a.astype(w_ref.dtype), w_ref[...],
                preferred_element_type=jnp.float32)
    o = o + b_ref[...]
    if relu:
        o = jnp.maximum(o, 0.0)
    o_ref[...] = o.astype(o_ref.dtype)


def _pick_tn(K, N, itemsize):
    # keep the double-buffered weight tile under ~8 MiB (fits every gen's
    # default scoped-VMEM, incl. v5e's 16 MiB and v7x's 64 MiB physical).
    budget = 8 * 1024 * 1024
    if K * N * itemsize * 2 <= budget:
        return N
    for tn in (2048, 1024, 512, 256, 128):
        if N % tn == 0 and K * tn * itemsize * 2 <= budget:
            return tn
    return N


def linear(a, w, b, *, normalize_input=False, relu=False):
    M, K = a.shape
    K2, N = w.shape
    assert K == K2
    tn = _pick_tn(K, N, jnp.dtype(w.dtype).itemsize)
    if normalize_input:
        # the row norm is computed in-kernel; keep it a single N tile so it is
        # never redundantly recomputed per tile.
        assert tn == N, "normalize_input requires a single N tile"
    kern = functools.partial(_linear_kernel, normalize=normalize_input,
                             relu=relu)
    return pl.pallas_call(
        kern,
        out_shape=jax.ShapeDtypeStruct((M, N), jnp.float32),
        grid_spec=pltpu.PrefetchScalarGridSpec(
            num_scalar_prefetch=0,
            grid=(N // tn,),
            in_specs=[pl.BlockSpec((M, K), lambda j: (0, 0)),
                      pl.BlockSpec((K, tn), lambda j: (0, j)),
                      pl.BlockSpec((1, tn), lambda j: (0, j))],
            out_specs=pl.BlockSpec((M, tn), lambda j: (0, j))),
        compiler_params=pltpu.CompilerParams(
            dimension_semantics=("parallel",),
            vmem_limit_bytes=24 * 1024 * 1024),
    )(a, w, b.reshape(1, N))


# ----------------------------------------------------------------------------
# Fused head (BN2d + Encoding + Normalize + Linear(4096,64)) and
# pool (3x3 mean + Linear(512,64) + BN1d folded)  ->  (BP, 128) lane-dense
# ----------------------------------------------------------------------------

def _head_pool_kernel(x_ref, bns_ref, bnb_ref, c_ref, csq_ref, s_ref,
                      hw_ref, hb_ref, pw_ref, pb_ref, o_ref):
    x = x_ref[...].astype(jnp.float32)                    # (BP, 9, D) raw
    BP, N, D = x.shape
    K = c_ref.shape[0]
    c = c_ref[...].astype(jnp.float32)                    # (K, D)

    # head branch: BatchNorm2d (eval-mode affine, per channel)
    xb = x * bns_ref[...].reshape(1, 1, D) + bnb_ref[...].reshape(1, 1, D)

    # Encoding assignment: scaled L2 via ||x||^2 - 2 x.c + ||c||^2 (MXU),
    # then softmax over the K codewords.
    xc = jnp.einsum('bnd,bkd->bnk', xb,
                    jnp.broadcast_to(c[None, :, :], (BP, K, D)),
                    preferred_element_type=jnp.float32)   # (BP, N, K)
    x_sq = jnp.sum(xb * xb, axis=-1, keepdims=True)       # (BP, N, 1)
    dist = x_sq - 2.0 * xc + csq_ref[...].reshape(1, 1, K)
    sl = dist * s_ref[...].reshape(1, 1, K)
    sl = sl - jnp.max(sl, axis=-1, keepdims=True)
    e = jnp.exp(sl)
    a = e / jnp.sum(e, axis=-1, keepdims=True)            # (BP, N, K)

    # Residual aggregation E_k = sum_n a_nk x_n - (sum_n a_nk) c_k,
    # L2-normalize over the flattened (K*D) axis, then Linear(K*D, 64) as
    # K accumulating (BP,D)@(D,64) matmuls (no in-kernel reshape needed).
    e_rows = []
    nrm_sq = jnp.zeros((BP, 1), jnp.float32)
    for k in range(K):
        ak = a[:, :, k:k + 1]                              # (BP, N, 1)
        ek = jnp.sum(ak * xb, axis=1) - jnp.sum(ak, axis=1) * c[k:k + 1, :]
        e_rows.append(ek)                                  # (BP, D)
        nrm_sq = nrm_sq + jnp.sum(ek * ek, axis=-1, keepdims=True)
    inv_nrm = 1.0 / jnp.maximum(jnp.sqrt(nrm_sq), 1e-12)   # (BP, 1)
    tex = jnp.zeros((BP, 64), jnp.float32) + hb_ref[...]
    for k in range(K):
        tex = tex + jnp.dot((e_rows[k] * inv_nrm).astype(hw_ref.dtype),
                            hw_ref[k * D:(k + 1) * D, :],
                            preferred_element_type=jnp.float32)

    # pool branch: mean over the 3x3 window of the RAW patch, then
    # Linear(512, 64) with BatchNorm1d folded in.
    pooled = jnp.mean(x, axis=1)                           # (BP, D)
    shp = jnp.dot(pooled.astype(pw_ref.dtype), pw_ref[...],
                  preferred_element_type=jnp.float32) + pb_ref[...]

    # single lane-dense store: [texture | shape]
    o_ref[...] = jnp.concatenate([tex, shp], axis=-1).astype(o_ref.dtype)


def head_pool(xpatch, p):
    BP, N, D = xpatch.shape
    Kc = p['codewords'].shape[0]
    return pl.pallas_call(
        _head_pool_kernel,
        out_shape=jax.ShapeDtypeStruct((BP, 128), jnp.float32),
        grid_spec=pltpu.PrefetchScalarGridSpec(
            num_scalar_prefetch=0,
            grid=(1,),
            in_specs=[pl.BlockSpec((BP, N, D), lambda i: (0, 0, 0)),
                      pl.BlockSpec((1, D), lambda i: (0, 0)),
                      pl.BlockSpec((1, D), lambda i: (0, 0)),
                      pl.BlockSpec((Kc, D), lambda i: (0, 0)),
                      pl.BlockSpec((1, Kc), lambda i: (0, 0)),
                      pl.BlockSpec((1, Kc), lambda i: (0, 0)),
                      pl.BlockSpec((Kc * D, 64), lambda i: (0, 0)),
                      pl.BlockSpec((1, 64), lambda i: (0, 0)),
                      pl.BlockSpec((D, 64), lambda i: (0, 0)),
                      pl.BlockSpec((1, 64), lambda i: (0, 0))],
            out_specs=pl.BlockSpec((BP, 128), lambda i: (0, 0))),
        compiler_params=pltpu.CompilerParams(
            dimension_semantics=("arbitrary",)),
    )(xpatch, p['bn2d_scale'], p['bn2d_shift'], p['codewords'],
      p['codewords_sq'], p['enc_scale'], p['head_w'], p['head_b'],
      p['pool_w'], p['pool_b'])


# ----------------------------------------------------------------------------
# Fused LSTM recurrence: W_hh resident in VMEM, h/c in scratch, grid=(T,)
# ----------------------------------------------------------------------------

def _lstm_rec_kernel(xproj_ref, whh_ref, o_ref, h_ref, c_ref):
    @pl.when(pl.program_id(0) == 0)
    def _():
        h_ref[...] = jnp.zeros_like(h_ref)
        c_ref[...] = jnp.zeros_like(c_ref)

    H = h_ref.shape[-1]
    gates = xproj_ref[0] + jnp.dot(h_ref[...].astype(whh_ref.dtype),
                                   whh_ref[...],
                                   preferred_element_type=jnp.float32)
    # PyTorch gate order: i, f, g, o.
    i = jax.nn.sigmoid(gates[:, 0 * H:1 * H])
    f = jax.nn.sigmoid(gates[:, 1 * H:2 * H])
    g = jnp.tanh(gates[:, 2 * H:3 * H])
    o = jax.nn.sigmoid(gates[:, 3 * H:4 * H])
    c_new = f * c_ref[...] + i * g
    h_new = o * jnp.tanh(c_new)
    c_ref[...] = c_new
    h_ref[...] = h_new
    o_ref[0] = h_new


def lstm_direction(xproj, whh, *, reverse):
    T, B, H4 = xproj.shape
    H = whh.shape[0]
    assert H4 == 4 * H
    if reverse:
        seq_map = lambda t: (T - 1 - t, 0, 0)
    else:
        seq_map = lambda t: (t, 0, 0)
    return pl.pallas_call(
        _lstm_rec_kernel,
        out_shape=jax.ShapeDtypeStruct((T, B, H), jnp.float32),
        grid_spec=pltpu.PrefetchScalarGridSpec(
            num_scalar_prefetch=0,
            grid=(T,),
            in_specs=[pl.BlockSpec((1, B, H4), seq_map),
                      # constant block index -> W_hh DMA'd once, VMEM-resident
                      pl.BlockSpec((H, H4), lambda t: (0, 0))],
            out_specs=pl.BlockSpec((1, B, H), seq_map),
            scratch_shapes=[pltpu.VMEM((B, H), jnp.float32),   # h carry
                            pltpu.VMEM((B, H), jnp.float32)]), # c carry
        compiler_params=pltpu.CompilerParams(
            dimension_semantics=("arbitrary",),
            vmem_limit_bytes=24 * 1024 * 1024),
    )(xproj, whh)


def lstm_layer(seq, fwd_p, bwd_p, hidden):
    """One bidirectional LSTM layer. seq: (T, B, In) -> (T, B, 2*hidden)."""
    T, B, In = seq.shape
    flat = seq.reshape(T * B, In)
    # Batched input projection for all T timesteps (the only non-sequential
    # part of the recurrence); bias = b_ih + b_hh already summed.
    xf = linear(flat, fwd_p['w_ih'], fwd_p['b']).reshape(T, B, 4 * hidden)
    xb = linear(flat, bwd_p['w_ih'], bwd_p['b']).reshape(T, B, 4 * hidden)
    fwd = lstm_direction(xf, fwd_p['w_hh'], reverse=False)
    bwd = lstm_direction(xb, bwd_p['w_hh'], reverse=True)
    return jnp.concatenate([fwd, bwd], axis=-1)


# ----------------------------------------------------------------------------
# Parameters (random stand-ins; weight matrices stored in bf16)
# ----------------------------------------------------------------------------

def init_params(key, nclass):
    D, Kc, Hh = 512, 8, 1024
    bf16 = jnp.bfloat16
    ks = jax.random.split(key, 20)
    p = {}
    # backbone stand-in: stride-32 patch-embedding conv (3*32*32 -> 512)
    p['embed_w'] = (0.02 * jax.random.normal(ks[0], (3 * 32 * 32, D))).astype(bf16)
    p['embed_b'] = jnp.zeros((D,), jnp.float32)
    # head BatchNorm2d(512), eval mode -> per-channel affine
    gamma = 1.0 + 0.1 * jax.random.normal(ks[1], (D,))
    beta = 0.1 * jax.random.normal(ks[2], (D,))
    rmean = 0.05 * jax.random.normal(ks[3], (D,))
    rvar = jnp.ones((D,))
    inv = gamma / jnp.sqrt(rvar + 1e-5)
    p['bn2d_scale'] = inv.reshape(1, D).astype(jnp.float32)
    p['bn2d_shift'] = (beta - rmean * inv).reshape(1, D).astype(jnp.float32)
    # Encoding(D=512, K=8)
    std1 = 1.0 / (Kc * D) ** 0.5
    cw = std1 * jax.random.normal(ks[4], (Kc, D))
    p['codewords'] = cw.astype(jnp.float32)
    p['codewords_sq'] = jnp.sum(cw * cw, axis=-1).reshape(1, Kc).astype(jnp.float32)
    p['enc_scale'] = (-0.5 + 0.1 * jax.random.normal(ks[5], (Kc,))).reshape(1, Kc)
    # head Linear(512*8, 64)
    p['head_w'] = (jax.random.normal(ks[6], (D * Kc, 64)) / (D * Kc) ** 0.5).astype(bf16)
    p['head_b'] = (0.01 * jax.random.normal(ks[7], (64,))).reshape(1, 64).astype(jnp.float32)
    # pool Linear(512, 64) with BatchNorm1d(64) (eval) folded in
    w = jax.random.normal(ks[8], (D, 64)) / D ** 0.5
    b = 0.01 * jax.random.normal(ks[9], (64,))
    g1 = 1.0 + 0.1 * jax.random.normal(ks[10], (64,))
    b1 = 0.1 * jax.random.normal(ks[11], (64,))
    m1 = 0.05 * jax.random.normal(ks[12], (64,))
    a1 = g1 / jnp.sqrt(jnp.ones((64,)) + 1e-5)
    p['pool_w'] = (w * a1[None, :]).astype(bf16)
    p['pool_b'] = (b * a1 + (b1 - m1 * a1)).reshape(1, 64).astype(jnp.float32)

    # LSTM(128, 1024, num_layers=2, bidirectional); b = b_ih + b_hh
    def lstm_dir(k, in_dim):
        k1, k2, k3, k4 = jax.random.split(k, 4)
        s = 1.0 / Hh ** 0.5
        w_ih = jax.random.uniform(k1, (in_dim, 4 * Hh), minval=-s, maxval=s)
        w_hh = jax.random.uniform(k2, (Hh, 4 * Hh), minval=-s, maxval=s)
        b_ih = jax.random.uniform(k3, (4 * Hh,), minval=-s, maxval=s)
        b_hh = jax.random.uniform(k4, (4 * Hh,), minval=-s, maxval=s)
        return dict(w_ih=w_ih.astype(bf16), w_hh=w_hh.astype(bf16),
                    b=(b_ih + b_hh).astype(jnp.float32))

    lk = jax.random.split(ks[13], 4)
    p['lstm'] = []
    for layer, in_dim in enumerate([128, 2 * Hh]):
        p['lstm'].append((lstm_dir(lk[2 * layer + 0], in_dim),
                          lstm_dir(lk[2 * layer + 1], in_dim)))
    # fc_layer: Linear(2048, 128), Linear(128, nclass) (padded to 128 lanes)
    p['fc1_w'] = (jax.random.normal(ks[14], (2 * Hh, 128)) / (2 * Hh) ** 0.5).astype(bf16)
    p['fc1_b'] = 0.01 * jax.random.normal(ks[15], (128,))
    fc2w = jax.random.normal(ks[16], (128, nclass)) / 128 ** 0.5
    fc2b = 0.01 * jax.random.normal(ks[17], (nclass,))
    p['fc2_w'] = jnp.zeros((128, 128), jnp.float32).at[:, :nclass].set(fc2w).astype(bf16)
    p['fc2_b'] = jnp.zeros((128,), jnp.float32).at[:nclass].set(fc2b)
    return p


# ----------------------------------------------------------------------------
# Forward
# ----------------------------------------------------------------------------

def forward(params, x, nclass):
    B, Cin, H, W = x.shape
    S = 32
    Hf, Wf = H // S, W // S
    D, Kc, Hh = 512, 8, 1024

    # --- backbone stand-in (TODO(synk): replaces pretrained resnet18) ---
    xp = (x.reshape(B, Cin, Hf, S, Wf, S)
            .transpose(0, 2, 4, 1, 3, 5)
            .reshape(B * Hf * Wf, Cin * S * S))
    feat = linear(xp, params['embed_w'], params['embed_b'], relu=True)
    f = feat.reshape(B, Hf, Wf, D)                        # channels-last NHWC

    # --- x.unfold(2,3,1).unfold(3,3,1): 3x3 patches, kept channels-last.
    #     encoding / avgpool are permutation-invariant over the 9 window
    #     positions, so NHWC extraction is equivalent to the NCHW original.
    ph, pw = Hf - 2, Wf - 2
    patch_list = []
    for i in range(ph):
        for j in range(pw):
            patch_list.append(f[:, i:i + 3, j:j + 3, :].reshape(B, 9, D))
    P = ph * pw
    BP = B * P
    xpatch = jnp.stack(patch_list, axis=1).reshape(BP, 9, D)   # (BP, 9, 512)

    # --- fused head + pool -> lane-dense (BP, 128) = [texture | shape] ---
    feats = head_pool(xpatch, params)

    # --- stack, concat, permute -> (P, B, 128) LSTM sequence ---
    seq = feats.reshape(B, P, 128).transpose(1, 0, 2)

    # --- 2-layer bidirectional LSTM, hidden 1024 ---
    for layer in range(2):
        fwd_p, bwd_p = params['lstm'][layer]
        seq = lstm_layer(seq, fwd_p, bwd_p, Hh)           # (P, B, 2048)
    last = seq[-1]                                        # (B, 2048)

    # --- fc_layer: Normalize + Linear(2048,128) + Normalize + Linear(128,nc)
    h1 = linear(last, params['fc1_w'], params['fc1_b'], normalize_input=True)
    out = linear(h1, params['fc2_w'], params['fc2_b'], normalize_input=True)
    return out[:, :nclass]                                # strip lane padding


if __name__ == "__main__":
    nclass = 10
    # Input: (B=2, C=3, H=128, W=128) -> feature map 4x4 -> P=4 patches (seq=4)
    x = jax.random.normal(jax.random.PRNGKey(0), (2, 3, 128, 128), jnp.float32)
    params = init_params(jax.random.PRNGKey(42), nclass)
    out = forward(params, x, nclass)
    out = jax.block_until_ready(out)
    assert out.shape == (2, nclass)
    assert bool(jnp.all(jnp.isfinite(out)))
    print("KERNEL_OK")
</pallas_src>

<mosaic_0001>
module attributes {stable_mosaic.version = 11 : i64} {
  func.func @_linear_kernel(%arg0: i32, %arg1: memref<32x3072xf32, #tpu.memory_space<vmem>>, %arg2: memref<3072x512xbf16, #tpu.memory_space<vmem>>, %arg3: memref<1x512xf32, #tpu.memory_space<vmem>>, %arg4: memref<32x512xf32, #tpu.memory_space<vmem>>) attributes {dimension_semantics = [#tpu.dimension_semantics<parallel>], iteration_bounds = array<i64: 1>, scalar_prefetch = 0 : i64, scratch_operands = 0 : i64, tpu.core_type = #tpu.core_type<tc>, window_params = [{pipeline_mode = #tpu.pipeline_mode<synchronous>, transform_indices = @transform_0, window_bounds = array<i64: 32, 3072>}, {transform_indices = @transform_1, window_bounds = array<i64: 3072, 512>}, {transform_indices = @transform_2, window_bounds = array<i64: 1, 512>}, {transform_indices = @transform_3, window_bounds = array<i64: 32, 512>}]} {
    %c0 = arith.constant 0 : index
    %c0_0 = arith.constant 0 : index
    %0 = vector.load %arg1[%c0, %c0_0] : memref<32x3072xf32, #tpu.memory_space<vmem>>, vector<32x3072xf32>
    %1 = arith.truncf %0 : vector<32x3072xf32> to vector<32x3072xbf16>
    %c0_1 = arith.constant 0 : index
    %c0_2 = arith.constant 0 : index
    %2 = vector.load %arg2[%c0_1, %c0_2] : memref<3072x512xbf16, #tpu.memory_space<vmem>>, vector<3072x512xbf16>
    %cst = arith.constant dense<0.000000e+00> : vector<32x512xf32>
    %3 = tpu.matmul %1, %2, %cst {dimension_numbers = #tpu.dot_dimension_numbers<[1], [0], [0], [1], [0, 0, 1, 1], [], []>} : vector<32x3072xbf16>, vector<3072x512xbf16>, vector<32x512xf32> -> vector<32x512xf32>
    %c0_3 = arith.constant 0 : index
    %c0_4 = arith.constant 0 : index
    %4 = vector.load %arg3[%c0_3, %c0_4] : memref<1x512xf32, #tpu.memory_space<vmem>>, vector<1x512xf32>
    %5 = vector.broadcast %4 : vector<1x512xf32> to vector<32x512xf32>
    %6 = arith.addf %3, %5 : vector<32x512xf32>
    %cst_5 = arith.constant 0.000000e+00 : f32
    %7 = vector.broadcast %cst_5 : f32 to vector<32x512xf32>
    %8 = arith.maximumf %6, %7 : vector<32x512xf32>
    %c0_6 = arith.constant 0 : index
    %c0_7 = arith.constant 0 : index
    %9 = vector.load %arg4[%c0_6, %c0_7] : memref<32x512xf32, #tpu.memory_space<vmem>>, vector<32x512xf32>
    tpu.vector_store %arg4[%c0_6, %c0_7], %8 {strides = array<i32>} : memref<32x512xf32, #tpu.memory_space<vmem>>, vector<32x512xf32>,
    return
  }
  func.func @transform_0(%arg0: i32) -> (i32, i32) {
    %c0_i32 = arith.constant 0 : i32
    %c0_i32_0 = arith.constant 0 : i32
    %c0_i32_1 = arith.constant 0 : i32
    return %c0_i32, %c0_i32_0 : i32, i32
  }
  func.func @transform_1(%arg0: i32) -> (i32, i32) {
    %c0_i32 = arith.constant 0 : i32
    %c0_i32_0 = arith.constant 0 : i32
    return %c0_i32, %arg0 : i32, i32
  }
  func.func @transform_2(%arg0: i32) -> (i32, i32) {
    %c0_i32 = arith.constant 0 : i32
    %c0_i32_0 = arith.constant 0 : i32
    return %c0_i32, %arg0 : i32, i32
  }
  func.func @transform_3(%arg0: i32) -> (i32, i32) {
    %c0_i32 = arith.constant 0 : i32
    %c0_i32_0 = arith.constant 0 : i32
    return %c0_i32, %arg0 : i32, i32
  }
}

</mosaic_0001>

<bundles_post_ra>
// kernel: tpu_custom_call.1
= control target key start
LH: loop header
LB: loop body
LE: loop exit
PB: predicated region body
PF: predicated region fallthrough
CT: control target
= control target key end

     0   :  { %8 = vsyncpa [#allocation3], 0  ;;  %s8863_s0 = inlined_call_operand.hbm [shape: f32[32,3072], index: 0, kind: input, shape index: {}]   ;;  %s8864_s1 = inlined_call_operand.hbm [shape: bf16[3072,512], index: 1, kind: input, shape index: {}]   ;;  %s8865_s2 = inlined_call_operand.hbm [shape: f32[1,512], index: 2, kind: input, shape index: {}]   ;;  %s8866_s3 = inlined_call_operand.hbm [shape: f32[32,512], index: 3, kind: output, shape index: {}]  }
   0x1   :  { %9 = vsyncpa [#allocation6], 0 }
   0x2   :  { %10 = vsyncpa [#allocation4], 0  ;;  %s8167_s12 = smov [#allocation5]  }
   0x3   :  { %s28_s13 = sshll.u32 %s8167_s12, 4  ;;  %s29_s13 = int_to_ptr.vmem [resolvable:$true] %s28_s13 }
   0x4   :  { %s8089_s14 = scalar_lea.vmem %s29_s13, 98304  ;;  %p8094_p1 = scmp.lt.s32.totalorder %s29_s13, %s29_s13 }
   0x5   :  { %p8090_p0 = scmp.ne.s32.totalorder %s29_s13, %s8089_s14  ;;  %p8095_p2 = scmp.lt.s32.totalorder %s8089_s14, %s8089_s14 }
   0x7   :  { %p8096_p3 = por %p8095_p2, %p8094_p1 }
   0x9   :  { %p8097_p4 = pnand %p8096_p3, %p8090_p0 }
   0xb   :  { %8100 = shalt.err (!%p8097_p4)
}
   0xc   :  { %s8168_s15 = smov 256   ;;  %s8169_s16 = smov 16  }
   0xd   :  { %34 = dma.hbm_to_vmem [thread:$0]  %s8864_s1, 98304, %s29_s13, [#allocation6], %s8168_s15, %s8168_s15, %s8169_s16  }
   0xe   :  { %s8170_s19 = smov [#allocation2]  }
   0xf   :  { %s16_s20 = sshll.u32 %s8170_s19, 4  ;;  %s17_s20 = int_to_ptr.vmem [resolvable:$true] %s16_s20 }
  0x10   :  { %s8109_s21 = scalar_lea.vmem %s17_s20, 12288  ;;  %p8114_p6 = scmp.lt.s32.totalorder %s17_s20, %s17_s20 }
  0x11   :  { %p8110_p5 = scmp.ne.s32.totalorder %s17_s20, %s8109_s21  ;;  %p8115_p7 = scmp.lt.s32.totalorder %s8109_s21, %s8109_s21 }
  0x13   :  { %p8116_p8 = por %p8115_p7, %p8114_p6 }
  0x15   :  { %p8117_p9 = pnand %p8116_p8, %p8110_p5 }
  0x17   :  { %8120 = shalt.err (!%p8117_p9)
}
  0x18   :  { %s8171_s22 = smov 3072   ;;  %s8172_s23 = smov 192  }
  0x19   :  { %22 = dma.hbm_to_vmem [thread:$0]  %s8863_s0, 12288, %s17_s20, [#allocation3], %s8171_s22, %s8171_s22, %s8172_s23  }
  0x1a   :  { %s8173_s26 = smov [#allocation7]  }
  0x1b   :  { %s41_s27 = sshll.u32 %s8173_s26, 4  ;;  %s42_s27 = int_to_ptr.vmem [resolvable:$true] %s41_s27 }
  0x1c   :  { %s8129_s1 = scalar_lea.vmem %s42_s27, 64  ;;  %p8134_p11 = scmp.lt.s32.totalorder %s42_s27, %s42_s27 }
  0x1d   :  { %p8130_p10 = scmp.ne.s32.totalorder %s42_s27, %s8129_s1  ;;  %p8135_p12 = scmp.lt.s32.totalorder %s8129_s1, %s8129_s1 }
  0x1f   :  { %p8136_p13 = por %p8135_p12, %p8134_p11 }
  0x21   :  { %p8137_p0 = pnand %p8136_p13, %p8130_p10 }
  0x23   :  { %8140 = shalt.err (!%p8137_p0)
}
  0x24   :  { %44 = dma.hbm_to_vmem [thread:$0]  %s8865_s2, 64, %s42_s27, [#allocation6]  }
  0x25   :  { %8161 = dma.done.wait [#allocation3], 12288  }
  0x26   :  { %8162 = vsyncadd [#allocation3], 4294955008 }
  0x27   :  { %8163 = dma.done.wait [#allocation6], 98368  }
  0x28   :  { %8164 = vsyncadd [#allocation6], 4294868928  ;;  %v6928_v0 = vld [vmem:[#allocation5 + $0xe4] ss:$16 sps:$4 sm:$0xff]   ;;  %v6932_v2 = vld [vmem:[#allocation5 + $0xe0] ss:$16 sps:$4 sm:$0xff]  }
  0x29   :  { %v6930_v1 = vld [vmem:[#allocation5 + $0x2e4] ss:$16 sps:$4 sm:$0xff]   ;;  %4828 = vmatprep.subr.bf16.mxu0 %v6928_v0  ;;  %v6933_v3 = vld [vmem:[#allocation5 + $0x2e0] ss:$16 sps:$4 sm:$0xff]   ;;  %v55_v46 = vld [vmem:[#allocation2 + $0x8] sm:$0xff]  ;;  %s8174_s0 = smov [#allocation8]  }
  0x2a   :  { %4881 = vmatprep.subr.bf16.mxu1 %v6930_v1  ;;  %v6934_v4 = vld [vmem:[#allocation5 + $0xc4] ss:$16 sps:$4 sm:$0xff]   ;;  %4829 = vmatpush1.bf16.msra.mxu0 %v6932_v2  ;;  %v6938_v6 = vld [vmem:[#allocation5 + $0xc0] ss:$16 sps:$4 sm:$0xff]   ;;  %v79_v47 = vld [vmem:[#allocation2 + $0xc8] sm:$0xff]  ;;  %s6137_s2 = sshll.u32 %s8174_s0, 4  ;;  %s6138_s2 = int_to_ptr.vmem [resolvable:$true] %s6137_s2 }
  0x2b   :  { %4882 = vmatpush1.bf16.msra.mxu1 %v6933_v3  ;;  %v6936_v5 = vld [vmem:[#allocation5 + $0x2c4] ss:$16 sps:$4 sm:$0xff]   ;;  %4830 = vmatprep.subr.bf16.mxu0 %v6934_v4  ;;  %v6939_v7 = vld [vmem:[#allocation5 + $0x2c0] ss:$16 sps:$4 sm:$0xff]   ;;  %v57_v48 = vld [vmem:[#allocation2 + $0x18] sm:$0xff]  ;;  %v8206_v53 = vpack.c.bf16 %v79_v47, %v55_v46  ;;  %s8141_s30 = scalar_lea.vmem %s6138_s2, 2048  ;;  %p8146_p2 = scmp.lt.s32.totalorder %s6138_s2, %s6138_s2 }
  0x2c   :  { %4883 = vmatprep.subr.bf16.mxu1 %v6936_v5  ;;  %v6940_v8 = vld [vmem:[#allocation5 + $0xa4] ss:$16 sps:$4 sm:$0xff]   ;;  %v6944_v10 = vld [vmem:[#allocation5 + $0xa0] ss:$16 sps:$4 sm:$0xff]   ;;  %v81_v49 = vld [vmem:[#allocation2 + $0xd8] sm:$0xff]  ;;  %p8142_p1 = scmp.ne.s32.totalorder %s6138_s2, %s8141_s30  ;;  %p8147_p3 = scmp.lt.s32.totalorder %s8141_s30, %s8141_s30 }
  0x2d   :  { %v6942_v9 = vld [vmem:[#allocation5 + $0x2a4] ss:$16 sps:$4 sm:$0xff]   ;;  %v6945_v11 = vld [vmem:[#allocation5 + $0x2a0] ss:$16 sps:$4 sm:$0xff]   ;;  %v8208_v54 = vpack.c.bf16 %v81_v49, %v57_v48  ;;  %4860 = vmatprep.mubr.bf16.mxu0 %v8206_v53 }
  0x2e   :  { %4831 = vmatpush1.bf16.msra.mxu0 %v6938_v6  ;;  %v6946_v12 = vld [vmem:[#allocation5 + $0x84] ss:$16 sps:$4 sm:$0xff]   ;;  %v6950_v14 = vld [vmem:[#allocation5 + $0x80] ss:$16 sps:$4 sm:$0xff]   ;;  %p8148_p4 = por %p8147_p3, %p8146_p2 }
  0x2f   :  { %4884 = vmatpush1.bf16.msra.mxu1 %v6939_v7  ;;  %4832 = vmatprep.subr.bf16.mxu0 %v6940_v8  ;;  %v6948_v13 = vld [vmem:[#allocation5 + $0x284] ss:$16 sps:$4 sm:$0xff]   ;;  %v6951_v15 = vld [vmem:[#allocation5 + $0x280] ss:$16 sps:$4 sm:$0xff]  }
  0x30   :  { %4885 = vmatprep.subr.bf16.mxu1 %v6942_v9  ;;  %v6952_v16 = vld [vmem:[#allocation5 + $0x64] ss:$16 sps:$4 sm:$0xff]   ;;  %v6956_v18 = vld [vmem:[#allocation5 + $0x60] ss:$16 sps:$4 sm:$0xff]   ;;  %4913 = vmatprep.mubr.bf16.mxu1 %v8208_v54  ;;  %p8149_p5 = pnand %p8148_p4, %p8142_p1 }
  0x31   :  { %v6954_v17 = vld [vmem:[#allocation5 + $0x264] ss:$16 sps:$4 sm:$0xff]   ;;  %v6957_v19 = vld [vmem:[#allocation5 + $0x260] ss:$16 sps:$4 sm:$0xff]  }
  0x32   :  { %4833 = vmatpush1.bf16.msra.mxu0 %v6944_v10  ;;  %v6958_v20 = vld [vmem:[#allocation5 + $0x44] ss:$16 sps:$4 sm:$0xff]   ;;  %v6962_v22 = vld [vmem:[#allocation5 + $0x40] ss:$16 sps:$4 sm:$0xff]  }
  0x33   :  { %4886 = vmatpush1.bf16.msra.mxu1 %v6945_v11  ;;  %4834 = vmatprep.subr.bf16.mxu0 %v6946_v12  ;;  %v6960_v21 = vld [vmem:[#allocation5 + $0x244] ss:$16 sps:$4 sm:$0xff]   ;;  %v6963_v23 = vld [vmem:[#allocation5 + $0x240] ss:$16 sps:$4 sm:$0xff]  }
  0x34   :  { %4887 = vmatprep.subr.bf16.mxu1 %v6948_v13  ;;  %v6964_v24 = vld [vmem:[#allocation5 + $0x24] ss:$16 sps:$4 sm:$0xff]   ;;  %v6968_v26 = vld [vmem:[#allocation5 + $0x20] ss:$16 sps:$4 sm:$0xff]  }
  0x35   :  { %v6966_v25 = vld [vmem:[#allocation5 + $0x224] ss:$16 sps:$4 sm:$0xff]   ;;  %v6969_v27 = vld [vmem:[#allocation5 + $0x220] ss:$16 sps:$4 sm:$0xff]  }
  0x36   :  { %4835 = vmatpush1.bf16.msra.mxu0 %v6950_v14  ;;  %v6970_v28 = vld [vmem:[#allocation5 + $0x4] ss:$16 sps:$4 sm:$0xff]   ;;  %v6974_v30 = vld [vmem:[#allocation5] ss:$16 sps:$4 sm:$0xff]  }
  0x37   :  { %4888 = vmatpush1.bf16.msra.mxu1 %v6951_v15  ;;  %4836 = vmatprep.subr.bf16.mxu0 %v6952_v16  ;;  %v6972_v29 = vld [vmem:[#allocation5 + $0x204] ss:$16 sps:$4 sm:$0xff]   ;;  %v6975_v31 = vld [vmem:[#allocation5 + $0x200] ss:$16 sps:$4 sm:$0xff]  }
  0x38   :  { %4889 = vmatprep.subr.bf16.mxu1 %v6954_v17  ;;  %v6976_v32 = vld [vmem:[#allocation5 + $0x1e4] ss:$16 sps:$4 sm:$0xff]   ;;  %v6980_v34 = vld [vmem:[#allocation5 + $0x1e0] ss:$16 sps:$4 sm:$0xff]  }
  0x39   :  { %v6978_v33 = vld [vmem:[#allocation5 + $0x3e4] ss:$16 sps:$4 sm:$0xff]   ;;  %v6981_v35 = vld [vmem:[#allocation5 + $0x3e0] ss:$16 sps:$4 sm:$0xff]  }
  0x3a   :  { %4837 = vmatpush1.bf16.msra.mxu0 %v6956_v18  ;;  %v6982_v36 = vld [vmem:[#allocation5 + $0x1c4] ss:$16 sps:$4 sm:$0xff]   ;;  %v6986_v38 = vld [vmem:[#allocation5 + $0x1c0] ss:$16 sps:$4 sm:$0xff]  }
  0x3b   :  { %4890 = vmatpush1.bf16.msra.mxu1 %v6957_v19  ;;  %4838 = vmatprep.subr.bf16.mxu0 %v6958_v20  ;;  %v6984_v37 = vld [vmem:[#allocation5 + $0x3c4] ss:$16 sps:$4 sm:$0xff]   ;;  %v6987_v39 = vld [vmem:[#allocation5 + $0x3c0] ss:$16 sps:$4 sm:$0xff]  }
  0x3c   :  { %4891 = vmatprep.subr.bf16.mxu1 %v6960_v21  ;;  %v6988_v40 = vld [vmem:[#allocation5 + $0x1a4] ss:$16 sps:$4 sm:$0xff]   ;;  %v6992_v42 = vld [vmem:[#allocation5 + $0x1a0] ss:$16 sps:$4 sm:$0xff]  }
  0x3d   :  { %v6990_v41 = vld [vmem:[#allocation5 + $0x3a4] ss:$16 sps:$4 sm:$0xff]   ;;  %v6993_v43 = vld [vmem:[#allocation5 + $0x3a0] ss:$16 sps:$4 sm:$0xff]  }
  0x3e   :  { %4839 = vmatpush1.bf16.msra.mxu0 %v6962_v22  ;;  %v6994_v44 = vld [vmem:[#allocation5 + $0x184] ss:$16 sps:$4 sm:$0xff]   ;;  %v6998_v50 = vld [vmem:[#allocation5 + $0x180] ss:$16 sps:$4 sm:$0xff]  }
  0x3f   :  { %4892 = vmatpush1.bf16.msra.mxu1 %v6963_v23  ;;  %4840 = vmatprep.subr.bf16.mxu0 %v6964_v24  ;;  %v6996_v45 = vld [vmem:[#allocation5 + $0x384] ss:$16 sps:$4 sm:$0xff]   ;;  %v6999_v51 = vld [vmem:[#allocation5 + $0x380] ss:$16 sps:$4 sm:$0xff]  }
  0x40   :  { %4893 = vmatprep.subr.bf16.mxu1 %v6966_v25  ;;  %v7000_v52 = vld [vmem:[#allocation5 + $0x164] ss:$16 sps:$4 sm:$0xff]   ;;  %v7004_v56 = vld [vmem:[#allocation5 + $0x160] ss:$16 sps:$4 sm:$0xff]  }
  0x41   :  { %v7002_v55 = vld [vmem:[#allocation5 + $0x364] ss:$16 sps:$4 sm:$0xff]   ;;  %v7005_v57 = vld [vmem:[#allocation5 + $0x360] ss:$16 sps:$4 sm:$0xff]  }
  0x42   :  { %4841 = vmatpush1.bf16.msra.mxu0 %v6968_v26  ;;  %v7006_v58 = vld [vmem:[#allocation5 + $0x144] ss:$16 sps:$4 sm:$0xff]   ;;  %v7010_v60 = vld [vmem:[#allocation5 + $0x140] ss:$16 sps:$4 sm:$0xff]  }
  0x43   :  { %4894 = vmatpush1.bf16.msra.mxu1 %v6969_v27  ;;  %4842 = vmatprep.subr.bf16.mxu0 %v6970_v28  ;;  %v7008_v59 = vld [vmem:[#allocation5 + $0x344] ss:$16 sps:$4 sm:$0xff]   ;;  %v7011_v61 = vld [vmem:[#allocation5 + $0x340] ss:$16 sps:$4 sm:$0xff]  }
  0x44   :  { %4895 = vmatprep.subr.bf16.mxu1 %v6972_v29  ;;  %v7012_v62 = vld [vmem:[#allocation5 + $0x124] ss:$16 sps:$4 sm:$0xff]   ;;  %v7016_v0 = vld [vmem:[#allocation5 + $0x120] ss:$16 sps:$4 sm:$0xff]  }
  0x45   :  { %v7014_v63 = vld [vmem:[#allocation5 + $0x324] ss:$16 sps:$4 sm:$0xff]   ;;  %v7017_v1 = vld [vmem:[#allocation5 + $0x320] ss:$16 sps:$4 sm:$0xff]  }
  0x46   :  { %4843 = vmatpush1.bf16.msra.mxu0 %v6974_v30  ;;  %v7018_v2 = vld [vmem:[#allocation5 + $0x104] ss:$16 sps:$4 sm:$0xff]   ;;  %v7022_v4 = vld [vmem:[#allocation5 + $0x100] ss:$16 sps:$4 sm:$0xff]  }
  0x47   :  { %4896 = vmatpush1.bf16.msra.mxu1 %v6975_v31  ;;  %4844 = vmatprep.subr.bf16.mxu0 %v6976_v32  ;;  %v7020_v3 = vld [vmem:[#allocation5 + $0x304] ss:$16 sps:$4 sm:$0xff]   ;;  %v7023_v5 = vld [vmem:[#allocation5 + $0x300] ss:$16 sps:$4 sm:$0xff]  }
  0x48   :  { %4897 = vmatprep.subr.bf16.mxu1 %v6978_v33  ;;  %v54_v6 = vld [vmem:[#allocation2] sm:$0xff]  ;;  %v56_v8 = vld [vmem:[#allocation2 + $0x10] sm:$0xff] }
  0x49   :  { %v78_v7 = vld [vmem:[#allocation2 + $0xc0] sm:$0xff]  ;;  %v80_v9 = vld [vmem:[#allocation2 + $0xd0] sm:$0xff] }
  0x4a   :  { %4845 = vmatpush2.bf16.msra.mxu0 %v6980_v34  ;;  %v7026_v10 = vld [vmem:[#allocation5 + $0x4e4] ss:$16 sps:$4 sm:$0xff]   ;;  %v8212_v12 = vpack.c.bf16 %v78_v7, %v54_v6  ;;  %v8214_v13 = vpack.c.bf16 %v80_v9, %v56_v8  ;;  %v7024_v14 = vld [vmem:[#allocation5 + $0x4e0] ss:$16 sps:$4 sm:$0xff]   ;;  %v103_v34 = vld [vmem:[#allocation2 + $0x188] sm:$0xff] }
  0x4b   :  { %4898 = vmatpush2.bf16.msra.mxu1 %v6981_v35  ;;  %4846 = vmatprep.subr.bf16.mxu0 %v6982_v36  ;;  %v7029_v11 = vld [vmem:[#allocation5 + $0x6e4] ss:$16 sps:$4 sm:$0xff]   ;;  %v7027_v15 = vld [vmem:[#allocation5 + $0x6e0] ss:$16 sps:$4 sm:$0xff]   ;;  %v127_v35 = vld [vmem:[#allocation2 + $0x248] sm:$0xff] }
  0x4c   :  { %4899 = vmatprep.subr.bf16.mxu1 %v6984_v37  ;;  %v7032_v16 = vld [vmem:[#allocation5 + $0x4c4] ss:$16 sps:$4 sm:$0xff]   ;;  %v7030_v18 = vld [vmem:[#allocation5 + $0x4c0] ss:$16 sps:$4 sm:$0xff]   ;;  %v8218_v37 = vpack.c.bf16 %v127_v35, %v103_v34 }
  0x4d   :  { %v7035_v17 = vld [vmem:[#allocation5 + $0x6c4] ss:$16 sps:$4 sm:$0xff]   ;;  %v7033_v19 = vld [vmem:[#allocation5 + $0x6c0] ss:$16 sps:$4 sm:$0xff]  }
  0x4e   :  { %4847 = vmatpush2.bf16.msra.mxu0 %v6986_v38  ;;  %v7038_v20 = vld [vmem:[#allocation5 + $0x4a4] ss:$16 sps:$4 sm:$0xff]   ;;  %v7036_v22 = vld [vmem:[#allocation5 + $0x4a0] ss:$16 sps:$4 sm:$0xff]  }
  0x4f   :  { %4900 = vmatpush2.bf16.msra.mxu1 %v6987_v39  ;;  %4848 = vmatprep.subr.bf16.mxu0 %v6988_v40  ;;  %v7041_v21 = vld [vmem:[#allocation5 + $0x6a4] ss:$16 sps:$4 sm:$0xff]   ;;  %v7039_v23 = vld [vmem:[#allocation5 + $0x6a0] ss:$16 sps:$4 sm:$0xff]   ;;  %v105_v39 = vld [vmem:[#allocation2 + $0x198] sm:$0xff] }
  0x50   :  { %4901 = vmatprep.subr.bf16.mxu1 %v6990_v41  ;;  %v7044_v24 = vld [vmem:[#allocation5 + $0x484] ss:$16 sps:$4 sm:$0xff]   ;;  %v7042_v26 = vld [vmem:[#allocation5 + $0x480] ss:$16 sps:$4 sm:$0xff]   ;;  %v129_v40 = vld [vmem:[#allocation2 + $0x258] sm:$0xff] }
  0x51   :  { %v7047_v25 = vld [vmem:[#allocation5 + $0x684] ss:$16 sps:$4 sm:$0xff]   ;;  %v7045_v27 = vld [vmem:[#allocation5 + $0x680] ss:$16 sps:$4 sm:$0xff]  }
  0x52   :  { %4849 = vmatpush2.bf16.msra.mxu0 %v6992_v42  ;;  %v7050_v28 = vld [vmem:[#allocation5 + $0x464] ss:$16 sps:$4 sm:$0xff]   ;;  %v7048_v30 = vld [vmem:[#allocation5 + $0x460] ss:$16 sps:$4 sm:$0xff]  }
  0x53   :  { %4902 = vmatpush2.bf16.msra.mxu1 %v6993_v43  ;;  %4850 = vmatprep.subr.bf16.mxu0 %v6994_v44  ;;  %v7053_v29 = vld [vmem:[#allocation5 + $0x664] ss:$16 sps:$4 sm:$0xff]   ;;  %v7051_v31 = vld [vmem:[#allocation5 + $0x660] ss:$16 sps:$4 sm:$0xff]   ;;  %v8222_v43 = vpack.c.bf16 %v129_v40, %v105_v39 }
  0x54   :  { %4903 = vmatprep.subr.bf16.mxu1 %v6996_v45  ;;  %v7056_v32 = vld [vmem:[#allocation5 + $0x444] ss:$16 sps:$4 sm:$0xff]   ;;  %v7054_v41 = vld [vmem:[#allocation5 + $0x440] ss:$16 sps:$4 sm:$0xff]  }
  0x55   :  { %v7059_v33 = vld [vmem:[#allocation5 + $0x644] ss:$16 sps:$4 sm:$0xff]   ;;  %v7057_v44 = vld [vmem:[#allocation5 + $0x640] ss:$16 sps:$4 sm:$0xff]  }
  0x56   :  { %4851 = vmatpush2.bf16.msra.mxu0 %v6998_v50  ;;  %v102_v36 = vld [vmem:[#allocation2 + $0x180] sm:$0xff]  ;;  %v104_v47 = vld [vmem:[#allocation2 + $0x190] sm:$0xff] }
  0x57   :  { %4904 = vmatpush2.bf16.msra.mxu1 %v6999_v51  ;;  %4852 = vmatprep.subr.bf16.mxu0 %v7000_v52  ;;  %v126_v38 = vld [vmem:[#allocation2 + $0x240] sm:$0xff]  ;;  %v128_v48 = vld [vmem:[#allocation2 + $0x250] sm:$0xff] }
  0x58   :  { %4905 = vmatprep.subr.bf16.mxu1 %v7002_v55  ;;  %v8220_v42 = vpack.c.bf16 %v126_v38, %v102_v36  ;;  %v7062_v45 = vld [vmem:[#allocation5 + $0x424] ss:$16 sps:$4 sm:$0xff]   ;;  %v8227_v49 = vpack.c.bf16 %v128_v48, %v104_v47  ;;  %v7060_v50 = vld [vmem:[#allocation5 + $0x420] ss:$16 sps:$4 sm:$0xff]  }
  0x59   :  { %v7065_v46 = vld [vmem:[#allocation5 + $0x624] ss:$16 sps:$4 sm:$0xff]   ;;  %v7063_v51 = vld [vmem:[#allocation5 + $0x620] ss:$16 sps:$4 sm:$0xff]  }
  0x5a   :  { %4853 = vmatpush2.bf16.msra.mxu0 %v7004_v56  ;;  %v7068_v52 = vld [vmem:[#allocation5 + $0x404] ss:$16 sps:$4 sm:$0xff]   ;;  %v59_v56 = vld [vmem:[#allocation2 + $0x28] sm:$0xff]  ;;  %v7078_v6 = vld [vmem:[#allocation5 + $0x5c0] ss:$16 sps:$4 sm:$0xff]  }
  0x5b   :  { %4906 = vmatpush2.bf16.msra.mxu1 %v7005_v57  ;;  %4854 = vmatprep.subr.bf16.mxu0 %v7006_v58  ;;  %v7071_v55 = vld [vmem:[#allocation5 + $0x604] ss:$16 sps:$4 sm:$0xff]   ;;  %v83_v57 = vld [vmem:[#allocation2 + $0xe8] sm:$0xff]  ;;  %v61_v58 = vld [vmem:[#allocation2 + $0x38] sm:$0xff] }
  0x5c   :  { %4907 = vmatprep.subr.bf16.mxu1 %v7008_v59  ;;  %v85_v59 = vld [vmem:[#allocation2 + $0xf8] sm:$0xff]  ;;  %v7081_v7 = vld [vmem:[#allocation5 + $0x7c0] ss:$16 sps:$4 sm:$0xff]   ;;  %v7086_v8 = vld [vmem:[#allocation5 + $0x5a4] ss:$16 sps:$4 sm:$0xff]  }
  0x5d   :  { %v7089_v9 = vld [vmem:[#allocation5 + $0x7a4] ss:$16 sps:$4 sm:$0xff]  }
  0x5e   :  { %4855 = vmatpush2.bf16.msra.mxu0 %v7010_v60  ;;  %v7066_v60 = vld [vmem:[#allocation5 + $0x400] ss:$16 sps:$4 sm:$0xff]   ;;  %v7122_v39 = vld [vmem:[#allocation5 + $0x8e4] ss:$16 sps:$4 sm:$0xff]  }
  0x5f   :  { %4908 = vmatpush2.bf16.msra.mxu1 %v7011_v61  ;;  %4856 = vmatprep.subr.bf16.mxu0 %v7012_v62  ;;  %v7069_v61 = vld [vmem:[#allocation5 + $0x600] ss:$16 sps:$4 sm:$0xff]   ;;  %v7074_v62 = vld [vmem:[#allocation5 + $0x5e4] ss:$16 sps:$4 sm:$0xff]  }
  0x60   :  { %4909 = vmatprep.subr.bf16.mxu1 %v7014_v63  ;;  %v8230_v63 = vpack.c.bf16 %v83_v57, %v59_v56  ;;  %v58_v34 = vld [vmem:[#allocation2 + $0x20] sm:$0xff]  ;;  %v60_v36 = vld [vmem:[#allocation2 + $0x30] sm:$0xff] }
  0x61   :  { %v82_v35 = vld [vmem:[#allocation2 + $0xe0] sm:$0xff]  ;;  %v84_v38 = vld [vmem:[#allocation2 + $0xf0] sm:$0xff] }
  0x62   :  { %4857 = vmatpush2.bf16.msra.mxu0 %v7016_v0  ;;  %v8232_v0 = vpack.c.bf16 %v85_v59, %v61_v58  ;;  %v7125_v40 = vld [vmem:[#allocation5 + $0xae4] ss:$16 sps:$4 sm:$0xff]   ;;  %v8236_v47 = vpack.c.bf16 %v82_v35, %v58_v34  ;;  %v8238_v48 = vpack.c.bf16 %v84_v38, %v60_v36  ;;  %v7126_v56 = vld [vmem:[#allocation5 + $0x8c0] ss:$16 sps:$4 sm:$0xff]  }
  0x63   :  { %4910 = vmatpush2.bf16.msra.mxu1 %v7017_v1  ;;  %4858 = vmatprep.subr.bf16.mxu0 %v7018_v2  ;;  %v7077_v1 = vld [vmem:[#allocation5 + $0x7e4] ss:$16 sps:$4 sm:$0xff]   ;;  %v7072_v2 = vld [vmem:[#allocation5 + $0x5e0] ss:$16 sps:$4 sm:$0xff]  }
  0x64   :  { %4911 = vmatprep.subr.bf16.mxu1 %v7020_v3  ;;  %v7075_v3 = vld [vmem:[#allocation5 + $0x7e0] ss:$16 sps:$4 sm:$0xff]   ;;  %v7170_v36 = vld [vmem:[#allocation5 + $0x9e4] ss:$16 sps:$4 sm:$0xff]  }
  0x65   :  { %v7129_v57 = vld [vmem:[#allocation5 + $0xac0] ss:$16 sps:$4 sm:$0xff]   ;;  %v7173_v38 = vld [vmem:[#allocation5 + $0xbe4] ss:$16 sps:$4 sm:$0xff]  }
  0x66   :  { %4859 = vmatpush2.bf16.msra.mxu0 %v7022_v4  ;;  %v7080_v4 = vld [vmem:[#allocation5 + $0x5c4] ss:$16 sps:$4 sm:$0xff]   ;;  %v7162_v34 = vld [vmem:[#allocation5 + $0x800] ss:$16 sps:$4 sm:$0xff]  }
  0x67   :  { %4912 = vmatpush2.bf16.msra.mxu1 %v7023_v5  ;;  %4934 = vmatprep.subr.bf16.mxu0 %v7026_v10  ;;  %v7083_v5 = vld [vmem:[#allocation5 + $0x7c4] ss:$16 sps:$4 sm:$0xff]   ;;  %v7084_v10 = vld [vmem:[#allocation5 + $0x5a0] ss:$16 sps:$4 sm:$0xff]  }
  0x68   :  { %4987 = vmatprep.subr.bf16.mxu1 %v7029_v11  ;;  %v7087_v11 = vld [vmem:[#allocation5 + $0x7a0] ss:$16 sps:$4 sm:$0xff]  }
  0x69   :  { %4861 = vmatmul.mubr.bf16.vlgmr.msra.gmra.mxu0 %v8212_v12  ;;  %v106_v59 = vld [vmem:[#allocation2 + $0x1a0] sm:$0xff] }
  0x6a   :  { %4914 = vmatmul.mubr.bf16.vlgmr.msra.gmra.mxu1 %v8214_v13  ;;  %4935 = vmatpush1.bf16.msra.mxu0 %v7024_v14  ;;  %v7092_v14 = vld [vmem:[#allocation5 + $0x584] ss:$16 sps:$4 sm:$0xff]   ;;  %v7165_v35 = vld [vmem:[#allocation5 + $0xa00] ss:$16 sps:$4 sm:$0xff]  }
  0x6b   :  { %4988 = vmatpush1.bf16.msra.mxu1 %v7027_v15  ;;  %4936 = vmatprep.subr.bf16.mxu0 %v7032_v16  ;;  %v7095_v15 = vld [vmem:[#allocation5 + $0x784] ss:$16 sps:$4 sm:$0xff]   ;;  %v7090_v16 = vld [vmem:[#allocation5 + $0x580] ss:$16 sps:$4 sm:$0xff]  }
  0x6c   :  { %4989 = vmatprep.subr.bf16.mxu1 %v7035_v17  ;;  %4870 = vmatprep.mubr.bf16.mxu0 %v8218_v37  ;;  %v7093_v17 = vld [vmem:[#allocation5 + $0x780] ss:$16 sps:$4 sm:$0xff]  }
  0x6d   :  { %4923 = vmatprep.mubr.bf16.mxu1 %v8222_v43 }
  0x6e   :  { %4937 = vmatpush1.bf16.msra.mxu0 %v7030_v18  ;;  %v7098_v18 = vld [vmem:[#allocation5 + $0x564] ss:$16 sps:$4 sm:$0xff]  }
  0x6f   :  { %4990 = vmatpush1.bf16.msra.mxu1 %v7033_v19  ;;  %4938 = vmatprep.subr.bf16.mxu0 %v7038_v20  ;;  %v7101_v19 = vld [vmem:[#allocation5 + $0x764] ss:$16 sps:$4 sm:$0xff]   ;;  %v7096_v20 = vld [vmem:[#allocation5 + $0x560] ss:$16 sps:$4 sm:$0xff]  }
  0x70   :  { %4991 = vmatprep.subr.bf16.mxu1 %v7041_v21  ;;  %v7099_v21 = vld [vmem:[#allocation5 + $0x760] ss:$16 sps:$4 sm:$0xff]  }
  0x71   :  { %4871 = vmatmul.mubr.bf16.gmra.mxu0 %v8220_v42 }
  0x72   :  { %4939 = vmatpush1.bf16.msra.mxu0 %v7036_v22  ;;  %4924 = vmatmul.mubr.bf16.gmra.mxu1 %v8227_v49  ;;  %v7104_v22 = vld [vmem:[#allocation5 + $0x544] ss:$16 sps:$4 sm:$0xff]  }
  0x73   :  { %4992 = vmatpush1.bf16.msra.mxu1 %v7039_v23  ;;  %4940 = vmatprep.subr.bf16.mxu0 %v7044_v24  ;;  %v7107_v23 = vld [vmem:[#allocation5 + $0x744] ss:$16 sps:$4 sm:$0xff]   ;;  %v7102_v24 = vld [vmem:[#allocation5 + $0x540] ss:$16 sps:$4 sm:$0xff]  }
  0x74   :  { %4993 = vmatprep.subr.bf16.mxu1 %v7047_v25  ;;  %4966 = vmatprep.mubr.bf16.mxu0 %v8230_v63  ;;  %v7105_v25 = vld [vmem:[#allocation5 + $0x740] ss:$16 sps:$4 sm:$0xff]  }
  0x75   :  { %5019 = vmatprep.mubr.bf16.mxu1 %v8232_v0 }
  0x76   :  { %4941 = vmatpush1.bf16.msra.mxu0 %v7042_v26  ;;  %v7110_v26 = vld [vmem:[#allocation5 + $0x524] ss:$16 sps:$4 sm:$0xff]  }
  0x77   :  { %4994 = vmatpush1.bf16.msra.mxu1 %v7045_v27  ;;  %4942 = vmatprep.subr.bf16.mxu0 %v7050_v28  ;;  %v7113_v27 = vld [vmem:[#allocation5 + $0x724] ss:$16 sps:$4 sm:$0xff]   ;;  %v7108_v28 = vld [vmem:[#allocation5 + $0x520] ss:$16 sps:$4 sm:$0xff]  }
  0x78   :  { %4995 = vmatprep.subr.bf16.mxu1 %v7053_v29  ;;  %v7111_v29 = vld [vmem:[#allocation5 + $0x720] ss:$16 sps:$4 sm:$0xff]  }
  0x7a   :  { %4943 = vmatpush1.bf16.msra.mxu0 %v7048_v30  ;;  %v7116_v30 = vld [vmem:[#allocation5 + $0x504] ss:$16 sps:$4 sm:$0xff]  }
  0x7b   :  { %4996 = vmatpush1.bf16.msra.mxu1 %v7051_v31  ;;  %4944 = vmatprep.subr.bf16.mxu0 %v7056_v32  ;;  %v7119_v31 = vld [vmem:[#allocation5 + $0x704] ss:$16 sps:$4 sm:$0xff]   ;;  %v7114_v32 = vld [vmem:[#allocation5 + $0x500] ss:$16 sps:$4 sm:$0xff]  }
  0x7c   :  { %4997 = vmatprep.subr.bf16.mxu1 %v7059_v33  ;;  %v7117_v33 = vld [vmem:[#allocation5 + $0x700] ss:$16 sps:$4 sm:$0xff]  }
  0x7e   :  { %4945 = vmatpush1.bf16.msra.mxu0 %v7054_v41  ;;  %v7120_v41 = vld [vmem:[#allocation5 + $0x8e0] ss:$16 sps:$4 sm:$0xff]  }
  0x7f   :  { %4998 = vmatpush1.bf16.msra.mxu1 %v7057_v44  ;;  %4946 = vmatprep.subr.bf16.mxu0 %v7062_v45  ;;  %v7123_v44 = vld [vmem:[#allocation5 + $0xae0] ss:$16 sps:$4 sm:$0xff]   ;;  %v107_v45 = vld [vmem:[#allocation2 + $0x1a8] sm:$0xff] }
  0x80   :  { %4999 = vmatprep.subr.bf16.mxu1 %v7065_v46  ;;  %v131_v46 = vld [vmem:[#allocation2 + $0x268] sm:$0xff] }
  0x81   :  { %v8240_v58 = vpack.c.bf16 %v131_v46, %v107_v45  ;;  %v7174_v45 = vld [vmem:[#allocation5 + $0x9c0] ss:$16 sps:$4 sm:$0xff]  }
  0x82   :  { %4947 = vmatpush1.bf16.msra.mxu0 %v7060_v50  ;;  %v109_v50 = vld [vmem:[#allocation2 + $0x1b8] sm:$0xff]  ;;  %v7177_v46 = vld [vmem:[#allocation5 + $0xbc0] ss:$16 sps:$4 sm:$0xff]  }
  0x83   :  { %5000 = vmatpush1.bf16.msra.mxu1 %v7063_v51  ;;  %4948 = vmatprep.subr.bf16.mxu0 %v7068_v52  ;;  %v133_v51 = vld [vmem:[#allocation2 + $0x278] sm:$0xff]  ;;  %v7128_v52 = vld [vmem:[#allocation5 + $0x8c4] ss:$16 sps:$4 sm:$0xff]  }
  0x84   :  { %5001 = vmatprep.subr.bf16.mxu1 %v7071_v55  ;;  %v7131_v55 = vld [vmem:[#allocation5 + $0xac4] ss:$16 sps:$4 sm:$0xff]  }
  0x86   :  { %4949 = vmatpush1.bf16.msra.mxu0 %v7066_v60  ;;  %v130_v60 = vld [vmem:[#allocation2 + $0x260] sm:$0xff] }
  0x87   :  { %5002 = vmatpush1.bf16.msra.mxu1 %v7069_v61  ;;  %4950 = vmatprep.subr.bf16.mxu0 %v7074_v62  ;;  %v8242_v61 = vpack.c.bf16 %v133_v51, %v109_v50  ;;  %v7134_v62 = vld [vmem:[#allocation5 + $0x8a4] ss:$16 sps:$4 sm:$0xff]  }
  0x88   :  { %5003 = vmatprep.subr.bf16.mxu1 %v7077_v1  ;;  %v108_v1 = vld [vmem:[#allocation2 + $0x1b0] sm:$0xff] }
  0x89   :  { %v7182_v50 = vld [vmem:[#allocation5 + $0x9a4] ss:$16 sps:$4 sm:$0xff]  }
  0x8a   :  { %4951 = vmatpush2.bf16.msra.mxu0 %v7072_v2  ;;  %v132_v2 = vld [vmem:[#allocation2 + $0x270] sm:$0xff] }
  0x8b   :  { %5004 = vmatpush2.bf16.msra.mxu1 %v7075_v3  ;;  %4952 = vmatprep.subr.bf16.mxu0 %v7080_v4  ;;  %v7137_v3 = vld [vmem:[#allocation5 + $0xaa4] ss:$16 sps:$4 sm:$0xff]   ;;  %v8248_v4 = vpack.c.bf16 %v130_v60, %v106_v59  ;;  %v7186_v59 = vld [vmem:[#allocation5 + $0x980] ss:$16 sps:$4 sm:$0xff]  }
  0x8c   :  { %5005 = vmatprep.subr.bf16.mxu1 %v7083_v5  ;;  %v7132_v5 = vld [vmem:[#allocation5 + $0x8a0] ss:$16 sps:$4 sm:$0xff]   ;;  %v7185_v51 = vld [vmem:[#allocation5 + $0xba4] ss:$16 sps:$4 sm:$0xff]  }
  0x8d   :  { %v7189_v60 = vld [vmem:[#allocation5 + $0xb80] ss:$16 sps:$4 sm:$0xff]  }
  0x8e   :  { %4953 = vmatpush2.bf16.msra.mxu0 %v7078_v6  ;;  %v7135_v6 = vld [vmem:[#allocation5 + $0xaa0] ss:$16 sps:$4 sm:$0xff]  }
  0x8f   :  { %5006 = vmatpush2.bf16.msra.mxu1 %v7081_v7  ;;  %4954 = vmatprep.subr.bf16.mxu0 %v7086_v8  ;;  %v8250_v7 = vpack.c.bf16 %v132_v2, %v108_v1  ;;  %v7140_v8 = vld [vmem:[#allocation5 + $0x884] ss:$16 sps:$4 sm:$0xff]   ;;  %v7192_v2 = vld [vmem:[#allocation5 + $0x960] ss:$16 sps:$4 sm:$0xff]  }
  0x90   :  { %5007 = vmatprep.subr.bf16.mxu1 %v7089_v9  ;;  %v7143_v9 = vld [vmem:[#allocation5 + $0xa84] ss:$16 sps:$4 sm:$0xff]  }
  0x91   :  { %v7197_v1 = vld [vmem:[#allocation5 + $0xb64] ss:$16 sps:$4 sm:$0xff]  }
  0x92   :  { %4955 = vmatpush2.bf16.msra.mxu0 %v7084_v10  ;;  %v63_v10 = vld [vmem:[#allocation2 + $0x48] sm:$0xff] }
  0x93   :  { %5008 = vmatpush2.bf16.msra.mxu1 %v7087_v11  ;;  %4956 = vmatprep.subr.bf16.mxu0 %v7092_v14  ;;  %v87_v11 = vld [vmem:[#allocation2 + $0x108] sm:$0xff]  ;;  %v65_v14 = vld [vmem:[#allocation2 + $0x58] sm:$0xff] }
  0x94   :  { %5009 = vmatprep.subr.bf16.mxu1 %v7095_v15  ;;  %v89_v15 = vld [vmem:[#allocation2 + $0x118] sm:$0xff] }
  0x96   :  { %4957 = vmatpush2.bf16.msra.mxu0 %v7090_v16  ;;  %v7138_v16 = vld [vmem:[#allocation5 + $0x880] ss:$16 sps:$4 sm:$0xff]  }
  0x97   :  { %5010 = vmatpush2.bf16.msra.mxu1 %v7093_v17  ;;  %4958 = vmatprep.subr.bf16.mxu0 %v7098_v18  ;;  %v7141_v17 = vld [vmem:[#allocation5 + $0xa80] ss:$16 sps:$4 sm:$0xff]   ;;  %v7146_v18 = vld [vmem:[#allocation5 + $0x864] ss:$16 sps:$4 sm:$0xff]  }
  0x98   :  { %5011 = vmatprep.subr.bf16.mxu1 %v7101_v19  ;;  %v8254_v19 = vpack.c.bf16 %v87_v11, %v63_v10  ;;  %v7206_v10 = vld [vmem:[#allocation5 + $0x924] ss:$16 sps:$4 sm:$0xff]  }
  0x99   :  { %v7209_v11 = vld [vmem:[#allocation5 + $0xb24] ss:$16 sps:$4 sm:$0xff]  }
  0x9a   :  { %4959 = vmatpush2.bf16.msra.mxu0 %v7096_v20  ;;  %v8256_v20 = vpack.c.bf16 %v89_v15, %v65_v14  ;;  %v7204_v14 = vld [vmem:[#allocation5 + $0x920] ss:$16 sps:$4 sm:$0xff]  }
  0x9b   :  { %5012 = vmatpush2.bf16.msra.mxu1 %v7099_v21  ;;  %4960 = vmatprep.subr.bf16.mxu0 %v7104_v22  ;;  %v7149_v21 = vld [vmem:[#allocation5 + $0xa64] ss:$16 sps:$4 sm:$0xff]   ;;  %v7144_v22 = vld [vmem:[#allocation5 + $0x860] ss:$16 sps:$4 sm:$0xff]  }
  0x9c   :  { %5013 = vmatprep.subr.bf16.mxu1 %v7107_v23  ;;  %v7147_v23 = vld [vmem:[#allocation5 + $0xa60] ss:$16 sps:$4 sm:$0xff]  }
  0x9d   :  { %v7207_v15 = vld [vmem:[#allocation5 + $0xb20] ss:$16 sps:$4 sm:$0xff]  }
  0x9e   :  { %4961 = vmatpush2.bf16.msra.mxu0 %v7102_v24  ;;  %v7152_v24 = vld [vmem:[#allocation5 + $0x844] ss:$16 sps:$4 sm:$0xff]  }
  0x9f   :  { %5014 = vmatpush2.bf16.msra.mxu1 %v7105_v25  ;;  %4962 = vmatprep.subr.bf16.mxu0 %v7110_v26  ;;  %v7155_v25 = vld [vmem:[#allocation5 + $0xa44] ss:$16 sps:$4 sm:$0xff]   ;;  %v7150_v26 = vld [vmem:[#allocation5 + $0x840] ss:$16 sps:$4 sm:$0xff]  }
  0xa0   :  { %5015 = vmatprep.subr.bf16.mxu1 %v7113_v27  ;;  %v7153_v27 = vld [vmem:[#allocation5 + $0xa40] ss:$16 sps:$4 sm:$0xff]  }
  0xa2   :  { %4963 = vmatpush2.bf16.msra.mxu0 %v7108_v28  ;;  %v7158_v28 = vld [vmem:[#allocation5 + $0x824] ss:$16 sps:$4 sm:$0xff]  }
  0xa3   :  { %5016 = vmatpush2.bf16.msra.mxu1 %v7111_v29  ;;  %4964 = vmatprep.subr.bf16.mxu0 %v7116_v30  ;;  %v7161_v29 = vld [vmem:[#allocation5 + $0xa24] ss:$16 sps:$4 sm:$0xff]   ;;  %v7156_v30 = vld [vmem:[#allocation5 + $0x820] ss:$16 sps:$4 sm:$0xff]  }
  0xa4   :  { %5017 = vmatprep.subr.bf16.mxu1 %v7119_v31  ;;  %v7159_v31 = vld [vmem:[#allocation5 + $0xa20] ss:$16 sps:$4 sm:$0xff]  }
  0xa6   :  { %4965 = vmatpush2.bf16.msra.mxu0 %v7114_v32  ;;  %v7164_v32 = vld [vmem:[#allocation5 + $0x804] ss:$16 sps:$4 sm:$0xff]  }
  0xa7   :  { %5018 = vmatpush2.bf16.msra.mxu1 %v7117_v33  ;;  %5040 = vmatprep.subr.bf16.mxu0 %v7122_v39  ;;  %v7167_v33 = vld [vmem:[#allocation5 + $0xa04] ss:$16 sps:$4 sm:$0xff]   ;;  %v7168_v39 = vld [vmem:[#allocation5 + $0x9e0] ss:$16 sps:$4 sm:$0xff]  }
  0xa8   :  { %5093 = vmatprep.subr.bf16.mxu1 %v7125_v40  ;;  %v7171_v40 = vld [vmem:[#allocation5 + $0xbe0] ss:$16 sps:$4 sm:$0xff]  }
  0xa9   :  { %4967 = vmatmul.mubr.bf16.vlgmr.msra.gmra.mxu0 %v8236_v47 }
  0xaa   :  { %5020 = vmatmul.mubr.bf16.vlgmr.msra.gmra.mxu1 %v8238_v48  ;;  %5041 = vmatpush1.bf16.msra.mxu0 %v7120_v41  ;;  %v7176_v41 = vld [vmem:[#allocation5 + $0x9c4] ss:$16 sps:$4 sm:$0xff]  }
  0xab   :  { %5094 = vmatpush1.bf16.msra.mxu1 %v7123_v44  ;;  %5042 = vmatprep.subr.bf16.mxu0 %v7128_v52  ;;  %v7179_v44 = vld [vmem:[#allocation5 + $0xbc4] ss:$16 sps:$4 sm:$0xff]   ;;  %v7180_v52 = vld [vmem:[#allocation5 + $0x9a0] ss:$16 sps:$4 sm:$0xff]  }
  0xac   :  { %5095 = vmatprep.subr.bf16.mxu1 %v7131_v55  ;;  %4976 = vmatprep.mubr.bf16.mxu0 %v8240_v58  ;;  %v7183_v55 = vld [vmem:[#allocation5 + $0xba0] ss:$16 sps:$4 sm:$0xff]  }
  0xad   :  { %5029 = vmatprep.mubr.bf16.mxu1 %v8242_v61 }
  0xae   :  { %5043 = vmatpush1.bf16.msra.mxu0 %v7126_v56  ;;  %v7188_v56 = vld [vmem:[#allocation5 + $0x984] ss:$16 sps:$4 sm:$0xff]  }
  0xaf   :  { %5096 = vmatpush1.bf16.msra.mxu1 %v7129_v57  ;;  %5044 = vmatprep.subr.bf16.mxu0 %v7134_v62  ;;  %v7191_v57 = vld [vmem:[#allocation5 + $0xb84] ss:$16 sps:$4 sm:$0xff]  }
  0xb0   :  { %5097 = vmatprep.subr.bf16.mxu1 %v7137_v3  ;;  %v7194_v62 = vld [vmem:[#allocation5 + $0x964] ss:$16 sps:$4 sm:$0xff]   ;;  %v7195_v3 = vld [vmem:[#allocation5 + $0xb60] ss:$16 sps:$4 sm:$0xff]  }
  0xb1   :  { %4977 = vmatmul.mubr.bf16.gmra.mxu0 %v8248_v4 }
  0xb2   :  { %5030 = vmatmul.mubr.bf16.gmra.mxu1 %v8250_v7  ;;  %5045 = vmatpush1.bf16.msra.mxu0 %v7132_v5  ;;  %v7200_v5 = vld [vmem:[#allocation5 + $0x944] ss:$16 sps:$4 sm:$0xff]  }
  0xb3   :  { %5098 = vmatpush1.bf16.msra.mxu1 %v7135_v6  ;;  %5046 = vmatprep.subr.bf16.mxu0 %v7140_v8  ;;  %v7203_v6 = vld [vmem:[#allocation5 + $0xb44] ss:$16 sps:$4 sm:$0xff]   ;;  %v7198_v8 = vld [vmem:[#allocation5 + $0x940] ss:$16 sps:$4 sm:$0xff]  }
  0xb4   :  { %5099 = vmatprep.subr.bf16.mxu1 %v7143_v9  ;;  %5072 = vmatprep.mubr.bf16.mxu0 %v8254_v19  ;;  %v7201_v9 = vld [vmem:[#allocation5 + $0xb40] ss:$16 sps:$4 sm:$0xff]  }
  0xb5   :  { %5125 = vmatprep.mubr.bf16.mxu1 %v8256_v20 }
  0xb6   :  { %5047 = vmatpush1.bf16.msra.mxu0 %v7138_v16  ;;  %v7212_v16 = vld [vmem:[#allocation5 + $0x904] ss:$16 sps:$4 sm:$0xff]  }
  0xb7   :  { %5100 = vmatpush1.bf16.msra.mxu1 %v7141_v17  ;;  %5048 = vmatprep.subr.bf16.mxu0 %v7146_v18  ;;  %v7215_v17 = vld [vmem:[#allocation5 + $0xb04] ss:$16 sps:$4 sm:$0xff]   ;;  %v7210_v18 = vld [vmem:[#allocation5 + $0x900] ss:$16 sps:$4 sm:$0xff]  }
  0xb8   :  { %5101 = vmatprep.subr.bf16.mxu1 %v7149_v21  ;;  %v7213_v21 = vld [vmem:[#allocation5 + $0xb00] ss:$16 sps:$4 sm:$0xff]  }
  0xba   :  { %5049 = vmatpush1.bf16.msra.mxu0 %v7144_v22  ;;  %v62_v22 = vld [vmem:[#allocation2 + $0x40] sm:$0xff] }
  0xbb   :  { %5102 = vmatpush1.bf16.msra.mxu1 %v7147_v23  ;;  %5050 = vmatprep.subr.bf16.mxu0 %v7152_v24  ;;  %v86_v23 = vld [vmem:[#allocation2 + $0x100] sm:$0xff]  ;;  %v64_v24 = vld [vmem:[#allocation2 + $0x50] sm:$0xff] }
  0xbc   :  { %5103 = vmatprep.subr.bf16.mxu1 %v7155_v25  ;;  %v88_v25 = vld [vmem:[#allocation2 + $0x110] sm:$0xff] }
  0xbe   :  { %5051 = vmatpush1.bf16.msra.mxu0 %v7150_v26  ;;  %v7218_v26 = vld [vmem:[#allocation5 + $0xce4] ss:$16 sps:$4 sm:$0xff]  }
  0xbf   :  { %5104 = vmatpush1.bf16.msra.mxu1 %v7153_v27  ;;  %5052 = vmatprep.subr.bf16.mxu0 %v7158_v28  ;;  %v7221_v27 = vld [vmem:[#allocation5 + $0xee4] ss:$16 sps:$4 sm:$0xff]   ;;  %v111_v28 = vld [vmem:[#allocation2 + $0x1c8] sm:$0xff] }
  0xc0   :  { %5105 = vmatprep.subr.bf16.mxu1 %v7161_v29  ;;  %v7216_v29 = vld [vmem:[#allocation5 + $0xce0] ss:$16 sps:$4 sm:$0xff]  }
  0xc2   :  { %5053 = vmatpush1.bf16.msra.mxu0 %v7156_v30  ;;  %v135_v30 = vld [vmem:[#allocation2 + $0x288] sm:$0xff] }
  0xc3   :  { %5106 = vmatpush1.bf16.msra.mxu1 %v7159_v31  ;;  %5054 = vmatprep.subr.bf16.mxu0 %v7164_v32  ;;  %v113_v31 = vld [vmem:[#allocation2 + $0x1d8] sm:$0xff]  ;;  %v8260_v32 = vpack.c.bf16 %v86_v23, %v62_v22  ;;  %v7246_v22 = vld [vmem:[#allocation5 + $0xc40] ss:$16 sps:$4 sm:$0xff]  }
  0xc4   :  { %5107 = vmatprep.subr.bf16.mxu1 %v7167_v33  ;;  %v8262_v33 = vpack.c.bf16 %v88_v25, %v64_v24  ;;  %v7249_v23 = vld [vmem:[#allocation5 + $0xe40] ss:$16 sps:$4 sm:$0xff]   ;;  %v7254_v24 = vld [vmem:[#allocation5 + $0xc24] ss:$16 sps:$4 sm:$0xff]  }
  0xc5   :  { %8899 = vst [vmem:[#allocation12_spill] sm:$0xff] %v8260_v32  ;;  %v7257_v25 = vld [vmem:[#allocation5 + $0xe24] ss:$16 sps:$4 sm:$0xff]  }
  0xc6   :  { %5055 = vmatpush1.bf16.msra.mxu0 %v7162_v34  ;;  %8900 = vst [vmem:[#allocation13_spill] sm:$0xff] %v8262_v33  ;;  %v137_v34 = vld [vmem:[#allocation2 + $0x298] sm:$0xff] }
  0xc7   :  { %5108 = vmatpush1.bf16.msra.mxu1 %v7165_v35  ;;  %5056 = vmatprep.subr.bf16.mxu0 %v7170_v36  ;;  %v7219_v35 = vld [vmem:[#allocation5 + $0xee0] ss:$16 sps:$4 sm:$0xff]   ;;  %v7224_v36 = vld [vmem:[#allocation5 + $0xcc4] ss:$16 sps:$4 sm:$0xff]  }
  0xc8   :  { %5109 = vmatprep.subr.bf16.mxu1 %v7173_v38  ;;  %v7227_v38 = vld [vmem:[#allocation5 + $0xec4] ss:$16 sps:$4 sm:$0xff]  }
  0xca   :  { %5057 = vmatpush2.bf16.msra.mxu0 %v7168_v39  ;;  %v7222_v39 = vld [vmem:[#allocation5 + $0xcc0] ss:$16 sps:$4 sm:$0xff]  }
  0xcb   :  { %5110 = vmatpush2.bf16.msra.mxu1 %v7171_v40  ;;  %5058 = vmatprep.subr.bf16.mxu0 %v7176_v41  ;;  %v7225_v40 = vld [vmem:[#allocation5 + $0xec0] ss:$16 sps:$4 sm:$0xff]   ;;  %v8264_v41 = vpack.c.bf16 %v135_v30, %v111_v28  ;;  %v7260_v28 = vld [vmem:[#allocation5 + $0xc04] ss:$16 sps:$4 sm:$0xff]  }
  0xcc   :  { %5111 = vmatprep.subr.bf16.mxu1 %v7179_v44  ;;  %v8266_v44 = vpack.c.bf16 %v137_v34, %v113_v31  ;;  %v7258_v30 = vld [vmem:[#allocation5 + $0xc00] ss:$16 sps:$4 sm:$0xff]   ;;  %v7266_v34 = vld [vmem:[#allocation5 + $0xde4] ss:$16 sps:$4 sm:$0xff]  }
  0xcd   :  { %8901 = vst [vmem:[#allocation14_spill] sm:$0xff] %v8264_v41  ;;  %v7261_v31 = vld [vmem:[#allocation5 + $0xe00] ss:$16 sps:$4 sm:$0xff]  }
  0xce   :  { %5059 = vmatpush2.bf16.msra.mxu0 %v7174_v45  ;;  %8902 = vst [vmem:[#allocation15_spill] sm:$0xff] %v8266_v44  ;;  %v110_v45 = vld [vmem:[#allocation2 + $0x1c0] sm:$0xff] }
  0xcf   :  { %5112 = vmatpush2.bf16.msra.mxu1 %v7177_v46  ;;  %5060 = vmatprep.subr.bf16.mxu0 %v7182_v50  ;;  %v134_v46 = vld [vmem:[#allocation2 + $0x280] sm:$0xff]  ;;  %v112_v50 = vld [vmem:[#allocation2 + $0x1d0] sm:$0xff] }
  0xd0   :  { %5113 = vmatprep.subr.bf16.mxu1 %v7185_v51  ;;  %v136_v51 = vld [vmem:[#allocation2 + $0x290] sm:$0xff] }
  0xd2   :  { %5061 = vmatpush2.bf16.msra.mxu0 %v7180_v52  ;;  %v7230_v52 = vld [vmem:[#allocation5 + $0xca4] ss:$16 sps:$4 sm:$0xff]  }
  0xd3   :  { %5114 = vmatpush2.bf16.msra.mxu1 %v7183_v55  ;;  %5062 = vmatprep.subr.bf16.mxu0 %v7188_v56  ;;  %v7233_v55 = vld [vmem:[#allocation5 + $0xea4] ss:$16 sps:$4 sm:$0xff]   ;;  %v7228_v56 = vld [vmem:[#allocation5 + $0xca0] ss:$16 sps:$4 sm:$0xff]  }
  0xd4   :  { %5115 = vmatprep.subr.bf16.mxu1 %v7191_v57  ;;  %v67_v57 = vld [vmem:[#allocation2 + $0x68] sm:$0xff] }
  0xd6   :  { %5063 = vmatpush2.bf16.msra.mxu0 %v7186_v59  ;;  %v8272_v59 = vpack.c.bf16 %v134_v46, %v110_v45  ;;  %v7270_v45 = vld [vmem:[#allocation5 + $0xdc0] ss:$16 sps:$4 sm:$0xff]  }
  0xd7   :  { %5116 = vmatpush2.bf16.msra.mxu1 %v7189_v60  ;;  %5064 = vmatprep.subr.bf16.mxu0 %v7194_v62  ;;  %v8274_v60 = vpack.c.bf16 %v136_v51, %v112_v50  ;;  %v91_v62 = vld [vmem:[#allocation2 + $0x128] sm:$0xff]  ;;  %v7273_v46 = vld [vmem:[#allocation5 + $0xfc0] ss:$16 sps:$4 sm:$0xff]   ;;  %v7278_v50 = vld [vmem:[#allocation5 + $0xda4] ss:$16 sps:$4 sm:$0xff]  }
  0xd8   :  { %5117 = vmatprep.subr.bf16.mxu1 %v7197_v1  ;;  %8903 = vst [vmem:[#allocation16_spill] sm:$0xff] %v8272_v59  ;;  %v69_v1 = vld [vmem:[#allocation2 + $0x78] sm:$0xff]  ;;  %v7281_v51 = vld [vmem:[#allocation5 + $0xfa4] ss:$16 sps:$4 sm:$0xff]  }
  0xd9   :  { %8904 = vst [vmem:[#allocation17_spill] sm:$0xff] %v8274_v60 }
  0xda   :  { %5065 = vmatpush2.bf16.msra.mxu0 %v7192_v2  ;;  %v93_v2 = vld [vmem:[#allocation2 + $0x138] sm:$0xff] }
  0xdb   :  { %5118 = vmatpush2.bf16.msra.mxu1 %v7195_v3  ;;  %5066 = vmatprep.subr.bf16.mxu0 %v7200_v5  ;;  %v7231_v3 = vld [vmem:[#allocation5 + $0xea0] ss:$16 sps:$4 sm:$0xff]   ;;  %v7236_v5 = vld [vmem:[#allocation5 + $0xc84] ss:$16 sps:$4 sm:$0xff]  }
  0xdc   :  { %5119 = vmatprep.subr.bf16.mxu1 %v7203_v6  ;;  %v7239_v6 = vld [vmem:[#allocation5 + $0xe84] ss:$16 sps:$4 sm:$0xff]  }
  0xde   :  { %5067 = vmatpush2.bf16.msra.mxu0 %v7198_v8  ;;  %v8276_v8 = vpack.c.bf16 %v91_v62, %v67_v57  ;;  %v7287_v57 = vld [vmem:[#allocation5 + $0xf84] ss:$16 sps:$4 sm:$0xff]   ;;  %v7282_v62 = vld [vmem:[#allocation5 + $0xd80] ss:$16 sps:$4 sm:$0xff]  }
  0xdf   :  { %5120 = vmatpush2.bf16.msra.mxu1 %v7201_v9  ;;  %5068 = vmatprep.subr.bf16.mxu0 %v7206_v10  ;;  %v8278_v9 = vpack.c.bf16 %v93_v2, %v69_v1  ;;  %v7234_v10 = vld [vmem:[#allocation5 + $0xc80] ss:$16 sps:$4 sm:$0xff]   ;;  %v7290_v2 = vld [vmem:[#allocation5 + $0xd64] ss:$16 sps:$4 sm:$0xff]  }
  0xe0   :  { %5121 = vmatprep.subr.bf16.mxu1 %v7209_v11  ;;  %8905 = vst [vmem:[#allocation18_spill] sm:$0xff] %v8276_v8  ;;  %v7237_v11 = vld [vmem:[#allocation5 + $0xe80] ss:$16 sps:$4 sm:$0xff]  }
  0xe1   :  { %8906 = vst [vmem:[#allocation19_spill] sm:$0xff] %v8278_v9  ;;  %v7285_v1 = vld [vmem:[#allocation5 + $0xf80] ss:$16 sps:$4 sm:$0xff]  }
  0xe2   :  { %5069 = vmatpush2.bf16.msra.mxu0 %v7204_v14  ;;  %v7242_v14 = vld [vmem:[#allocation5 + $0xc64] ss:$16 sps:$4 sm:$0xff]  }
  0xe3   :  { %5122 = vmatpush2.bf16.msra.mxu1 %v7207_v15  ;;  %5070 = vmatprep.subr.bf16.mxu0 %v7212_v16  ;;  %v7245_v15 = vld [vmem:[#allocation5 + $0xe64] ss:$16 sps:$4 sm:$0xff]   ;;  %v7240_v16 = vld [vmem:[#allocation5 + $0xc60] ss:$16 sps:$4 sm:$0xff]  }
  0xe4   :  { %5123 = vmatprep.subr.bf16.mxu1 %v7215_v17  ;;  %v7243_v17 = vld [vmem:[#allocation5 + $0xe60] ss:$16 sps:$4 sm:$0xff]  }
  0xe6   :  { %5071 = vmatpush2.bf16.msra.mxu0 %v7210_v18  ;;  %v7248_v18 = vld [vmem:[#allocation5 + $0xc44] ss:$16 sps:$4 sm:$0xff]  }
  0xe7   :  { %5124 = vmatpush2.bf16.msra.mxu1 %v7213_v21  ;;  %5146 = vmatprep.subr.bf16.mxu0 %v7218_v26  ;;  %v7251_v21 = vld [vmem:[#allocation5 + $0xe44] ss:$16 sps:$4 sm:$0xff]   ;;  %v7252_v26 = vld [vmem:[#allocation5 + $0xc20] ss:$16 sps:$4 sm:$0xff]  }
  0xe8   :  { %5199 = vmatprep.subr.bf16.mxu1 %v7221_v27  ;;  %v7255_v27 = vld [vmem:[#allocation5 + $0xe20] ss:$16 sps:$4 sm:$0xff]  }
  0xe9   :  { %5073 = vmatmul.mubr.bf16.vlgmr.msra.gmra.mxu0 %v8260_v32  ;;  %v7710_v32 = vld [vmem:[#allocation5 + $0x8ac] ss:$16 sps:$4 sm:$0xff]  }
  0xea   :  { %5126 = vmatmul.mubr.bf16.vlgmr.msra.gmra.mxu1 %v8262_v33  ;;  %5147 = vmatpush1.bf16.msra.mxu0 %v7216_v29  ;;  %v7263_v29 = vld [vmem:[#allocation5 + $0xe04] ss:$16 sps:$4 sm:$0xff]  }
  0xeb   :  { %5200 = vmatpush1.bf16.msra.mxu1 %v7219_v35  ;;  %5148 = vmatprep.subr.bf16.mxu0 %v7224_v36  ;;  %v7269_v35 = vld [vmem:[#allocation5 + $0xfe4] ss:$16 sps:$4 sm:$0xff]   ;;  %v7264_v36 = vld [vmem:[#allocation5 + $0xde0] ss:$16 sps:$4 sm:$0xff]  }
  0xec   :  { %5201 = vmatprep.subr.bf16.mxu1 %v7227_v38  ;;  %5082 = vmatprep.mubr.bf16.mxu0 %v8264_v41  ;;  %v7267_v38 = vld [vmem:[#allocation5 + $0xfe0] ss:$16 sps:$4 sm:$0xff]  }
  0xed   :  { %5135 = vmatprep.mubr.bf16.mxu1 %v8266_v44 }
  0xee   :  { %5149 = vmatpush1.bf16.msra.mxu0 %v7222_v39  ;;  %v7272_v39 = vld [vmem:[#allocation5 + $0xdc4] ss:$16 sps:$4 sm:$0xff]  }
  0xef   :  { %5202 = vmatpush1.bf16.msra.mxu1 %v7225_v40  ;;  %5150 = vmatprep.subr.bf16.mxu0 %v7230_v52  ;;  %v7275_v40 = vld [vmem:[#allocation5 + $0xfc4] ss:$16 sps:$4 sm:$0xff]   ;;  %v7276_v52 = vld [vmem:[#allocation5 + $0xda0] ss:$16 sps:$4 sm:$0xff]  }
  0xf0   :  { %5203 = vmatprep.subr.bf16.mxu1 %v7233_v55  ;;  %v7279_v55 = vld [vmem:[#allocation5 + $0xfa0] ss:$16 sps:$4 sm:$0xff]  }
  0xf1   :  { %5083 = vmatmul.mubr.bf16.gmra.mxu0 %v8272_v59 }
  0xf2   :  { %5136 = vmatmul.mubr.bf16.gmra.mxu1 %v8274_v60  ;;  %5151 = vmatpush1.bf16.msra.mxu0 %v7228_v56  ;;  %v7284_v56 = vld [vmem:[#allocation5 + $0xd84] ss:$16 sps:$4 sm:$0xff]  }
  0xf3   :  { %5204 = vmatpush1.bf16.msra.mxu1 %v7231_v3  ;;  %5152 = vmatprep.subr.bf16.mxu0 %v7236_v5  ;;  %v7293_v3 = vld [vmem:[#allocation5 + $0xf64] ss:$16 sps:$4 sm:$0xff]   ;;  %v7288_v5 = vld [vmem:[#allocation5 + $0xd60] ss:$16 sps:$4 sm:$0xff]  }
  0xf4   :  { %5205 = vmatprep.subr.bf16.mxu1 %v7239_v6  ;;  %5178 = vmatprep.mubr.bf16.mxu0 %v8276_v8  ;;  %v7291_v6 = vld [vmem:[#allocation5 + $0xf60] ss:$16 sps:$4 sm:$0xff]  }
  0xf5   :  { %5231 = vmatprep.mubr.bf16.mxu1 %v8278_v9 }
  0xf6   :  { %5153 = vmatpush1.bf16.msra.mxu0 %v7234_v10  ;;  %v7296_v10 = vld [vmem:[#allocation5 + $0xd44] ss:$16 sps:$4 sm:$0xff]  }
  0xf7   :  { %5206 = vmatpush1.bf16.msra.mxu1 %v7237_v11  ;;  %5154 = vmatprep.subr.bf16.mxu0 %v7242_v14  ;;  %v7299_v11 = vld [vmem:[#allocation5 + $0xf44] ss:$16 sps:$4 sm:$0xff]   ;;  %v7294_v14 = vld [vmem:[#allocation5 + $0xd40] ss:$16 sps:$4 sm:$0xff]  }
  0xf8   :  { %5207 = vmatprep.subr.bf16.mxu1 %v7245_v15  ;;  %v7297_v15 = vld [vmem:[#allocation5 + $0xf40] ss:$16 sps:$4 sm:$0xff]  }
  0xfa   :  { %5155 = vmatpush1.bf16.msra.mxu0 %v7240_v16  ;;  %v7302_v16 = vld [vmem:[#allocation5 + $0xd24] ss:$16 sps:$4 sm:$0xff]  }
  0xfb   :  { %5208 = vmatpush1.bf16.msra.mxu1 %v7243_v17  ;;  %5156 = vmatprep.subr.bf16.mxu0 %v7248_v18  ;;  %v7305_v17 = vld [vmem:[#allocation5 + $0xf24] ss:$16 sps:$4 sm:$0xff]   ;;  %v7300_v18 = vld [vmem:[#allocation5 + $0xd20] ss:$16 sps:$4 sm:$0xff]  }
  0xfc   :  { %5209 = vmatprep.subr.bf16.mxu1 %v7251_v21  ;;  %v7303_v21 = vld [vmem:[#allocation5 + $0xf20] ss:$16 sps:$4 sm:$0xff]  }
  0xfe   :  { %5157 = vmatpush1.bf16.msra.mxu0 %v7246_v22  ;;  %v7308_v22 = vld [vmem:[#allocation5 + $0xd04] ss:$16 sps:$4 sm:$0xff]  }
  0xff   :  { %5210 = vmatpush1.bf16.msra.mxu1 %v7249_v23  ;;  %5158 = vmatprep.subr.bf16.mxu0 %v7254_v24  ;;  %v7311_v23 = vld [vmem:[#allocation5 + $0xf04] ss:$16 sps:$4 sm:$0xff]   ;;  %v7306_v24 = vld [vmem:[#allocation5 + $0xd00] ss:$16 sps:$4 sm:$0xff]  }
 0x100   :  { %5211 = vmatprep.subr.bf16.mxu1 %v7257_v25  ;;  %v7309_v25 = vld [vmem:[#allocation5 + $0xf00] ss:$16 sps:$4 sm:$0xff]  }
 0x102   :  { %5159 = vmatpush1.bf16.msra.mxu0 %v7252_v26  ;;  %v66_v26 = vld [vmem:[#allocation2 + $0x60] sm:$0xff] }
 0x103   :  { %5212 = vmatpush1.bf16.msra.mxu1 %v7255_v27  ;;  %5160 = vmatprep.subr.bf16.mxu0 %v7260_v28  ;;  %v90_v27 = vld [vmem:[#allocation2 + $0x120] sm:$0xff]  ;;  %v68_v28 = vld [vmem:[#allocation2 + $0x70] sm:$0xff] }
 0x104   :  { %5213 = vmatprep.subr.bf16.mxu1 %v7263_v29  ;;  %v92_v29 = vld [vmem:[#allocation2 + $0x130] sm:$0xff] }
 0x106   :  { %5161 = vmatpush1.bf16.msra.mxu0 %v7258_v30  ;;  %v7314_v30 = vld [vmem:[#allocation5 + $0x10e4] ss:$16 sps:$4 sm:$0xff]  }
 0x107   :  { %5214 = vmatpush1.bf16.msra.mxu1 %v7261_v31  ;;  %5162 = vmatprep.subr.bf16.mxu0 %v7266_v34  ;;  %v7317_v31 = vld [vmem:[#allocation5 + $0x12e4] ss:$16 sps:$4 sm:$0xff]   ;;  %v115_v34 = vld [vmem:[#allocation2 + $0x1e8] sm:$0xff] }
 0x108   :  { %5215 = vmatprep.subr.bf16.mxu1 %v7269_v35  ;;  %v7312_v35 = vld [vmem:[#allocation5 + $0x10e0] ss:$16 sps:$4 sm:$0xff]  }
 0x10a   :  { %5163 = vmatpush2.bf16.msra.mxu0 %v7264_v36  ;;  %v139_v36 = vld [vmem:[#allocation2 + $0x2a8] sm:$0xff] }
 0x10b   :  { %5216 = vmatpush2.bf16.msra.mxu1 %v7267_v38  ;;  %5164 = vmatprep.subr.bf16.mxu0 %v7272_v39  ;;  %v117_v38 = vld [vmem:[#allocation2 + $0x1f8] sm:$0xff]  ;;  %v8284_v39 = vpack.c.bf16 %v90_v27, %v66_v26  ;;  %v7330_v26 = vld [vmem:[#allocation5 + $0x1080] ss:$16 sps:$4 sm:$0xff]  }
 0x10c   :  { %5217 = vmatprep.subr.bf16.mxu1 %v7275_v40  ;;  %v8286_v40 = vpack.c.bf16 %v92_v29, %v68_v28  ;;  %v7333_v27 = vld [vmem:[#allocation5 + $0x1280] ss:$16 sps:$4 sm:$0xff]   ;;  %v7338_v28 = vld [vmem:[#allocation5 + $0x1064] ss:$16 sps:$4 sm:$0xff]  }
 0x10d   :  { %8907 = vst [vmem:[#allocation20_spill] sm:$0xff] %v8284_v39  ;;  %v7341_v29 = vld [vmem:[#allocation5 + $0x1264] ss:$16 sps:$4 sm:$0xff]  }
 0x10e   :  { %5165 = vmatpush2.bf16.msra.mxu0 %v7270_v45  ;;  %8908 = vst [vmem:[#allocation21_spill] sm:$0xff] %v8286_v40  ;;  %v141_v45 = vld [vmem:[#allocation2 + $0x2b8] sm:$0xff] }
 0x10f   :  { %5218 = vmatpush2.bf16.msra.mxu1 %v7273_v46  ;;  %5166 = vmatprep.subr.bf16.mxu0 %v7278_v50  ;;  %v7315_v46 = vld [vmem:[#allocation5 + $0x12e0] ss:$16 sps:$4 sm:$0xff]   ;;  %v7320_v50 = vld [vmem:[#allocation5 + $0x10c4] ss:$16 sps:$4 sm:$0xff]  }
 0x110   :  { %5219 = vmatprep.subr.bf16.mxu1 %v7281_v51  ;;  %v7323_v51 = vld [vmem:[#allocation5 + $0x12c4] ss:$16 sps:$4 sm:$0xff]  }
 0x112   :  { %5167 = vmatpush2.bf16.msra.mxu0 %v7276_v52  ;;  %v7318_v52 = vld [vmem:[#allocation5 + $0x10c0] ss:$16 sps:$4 sm:$0xff]  }
 0x113   :  { %5220 = vmatpush2.bf16.msra.mxu1 %v7279_v55  ;;  %5168 = vmatprep.subr.bf16.mxu0 %v7284_v56  ;;  %v7321_v55 = vld [vmem:[#allocation5 + $0x12c0] ss:$16 sps:$4 sm:$0xff]   ;;  %v8288_v56 = vpack.c.bf16 %v139_v36, %v115_v34  ;;  %v7344_v34 = vld [vmem:[#allocation5 + $0x1044] ss:$16 sps:$4 sm:$0xff]  }
 0x114   :  { %5221 = vmatprep.subr.bf16.mxu1 %v7287_v57  ;;  %v114_v57 = vld [vmem:[#allocation2 + $0x1e0] sm:$0xff] }
 0x115   :  { %8909 = vst [vmem:[#allocation22_spill] sm:$0xff] %v8288_v56  ;;  %v7342_v36 = vld [vmem:[#allocation5 + $0x1040] ss:$16 sps:$4 sm:$0xff]  }
 0x116   :  { %5169 = vmatpush2.bf16.msra.mxu0 %v7282_v62  ;;  %v138_v62 = vld [vmem:[#allocation2 + $0x2a0] sm:$0xff] }
 0x117   :  { %5222 = vmatpush2.bf16.msra.mxu1 %v7285_v1  ;;  %5170 = vmatprep.subr.bf16.mxu0 %v7290_v2  ;;  %v8290_v1 = vpack.c.bf16 %v141_v45, %v117_v38  ;;  %v7326_v2 = vld [vmem:[#allocation5 + $0x10a4] ss:$16 sps:$4 sm:$0xff]   ;;  %v7345_v38 = vld [vmem:[#allocation5 + $0x1240] ss:$16 sps:$4 sm:$0xff]  }
 0x118   :  { %5223 = vmatprep.subr.bf16.mxu1 %v7293_v3  ;;  %v116_v3 = vld [vmem:[#allocation2 + $0x1f0] sm:$0xff] }
 0x119   :  { %8910 = vst [vmem:[#allocation23_spill] sm:$0xff] %v8290_v1  ;;  %v7350_v45 = vld [vmem:[#allocation5 + $0x1024] ss:$16 sps:$4 sm:$0xff]  }
 0x11a   :  { %5171 = vmatpush2.bf16.msra.mxu0 %v7288_v5  ;;  %v140_v5 = vld [vmem:[#allocation2 + $0x2b0] sm:$0xff] }
 0x11b   :  { %5224 = vmatpush2.bf16.msra.mxu1 %v7291_v6  ;;  %5172 = vmatprep.subr.bf16.mxu0 %v7296_v10  ;;  %v7329_v6 = vld [vmem:[#allocation5 + $0x12a4] ss:$16 sps:$4 sm:$0xff]   ;;  %v71_v10 = vld [vmem:[#allocation2 + $0x88] sm:$0xff] }
 0x11c   :  { %5225 = vmatprep.subr.bf16.mxu1 %v7299_v11  ;;  %v7324_v11 = vld [vmem:[#allocation5 + $0x10a0] ss:$16 sps:$4 sm:$0xff]  }
 0x11e   :  { %5173 = vmatpush2.bf16.msra.mxu0 %v7294_v14  ;;  %v95_v14 = vld [vmem:[#allocation2 + $0x148] sm:$0xff] }
 0x11f   :  { %5226 = vmatpush2.bf16.msra.mxu1 %v7297_v15  ;;  %5174 = vmatprep.subr.bf16.mxu0 %v7302_v16  ;;  %v73_v15 = vld [vmem:[#allocation2 + $0x98] sm:$0xff]  ;;  %v8296_v16 = vpack.c.bf16 %v138_v62, %v114_v57  ;;  %v7354_v57 = vld [vmem:[#allocation5 + $0x1000] ss:$16 sps:$4 sm:$0xff]  }
 0x120   :  { %5227 = vmatprep.subr.bf16.mxu1 %v7305_v17  ;;  %v8298_v17 = vpack.c.bf16 %v140_v5, %v116_v3  ;;  %v7357_v62 = vld [vmem:[#allocation5 + $0x1200] ss:$16 sps:$4 sm:$0xff]   ;;  %v7365_v3 = vld [vmem:[#allocation5 + $0x13e4] ss:$16 sps:$4 sm:$0xff]  }
 0x121   :  { %8911 = vst [vmem:[#allocation24_spill] sm:$0xff] %v8296_v16  ;;  %v7360_v5 = vld [vmem:[#allocation5 + $0x11e0] ss:$16 sps:$4 sm:$0xff]  }
 0x122   :  { %5175 = vmatpush2.bf16.msra.mxu0 %v7300_v18  ;;  %8912 = vst [vmem:[#allocation25_spill] sm:$0xff] %v8298_v17  ;;  %v97_v18 = vld [vmem:[#allocation2 + $0x158] sm:$0xff] }
 0x123   :  { %5228 = vmatpush2.bf16.msra.mxu1 %v7303_v21  ;;  %5176 = vmatprep.subr.bf16.mxu0 %v7308_v22  ;;  %v7327_v21 = vld [vmem:[#allocation5 + $0x12a0] ss:$16 sps:$4 sm:$0xff]   ;;  %v7332_v22 = vld [vmem:[#allocation5 + $0x1084] ss:$16 sps:$4 sm:$0xff]  }
 0x124   :  { %5229 = vmatprep.subr.bf16.mxu1 %v7311_v23  ;;  %v7335_v23 = vld [vmem:[#allocation5 + $0x1284] ss:$16 sps:$4 sm:$0xff]  }
 0x126   :  { %5177 = vmatpush2.bf16.msra.mxu0 %v7306_v24  ;;  %v8300_v24 = vpack.c.bf16 %v95_v14, %v71_v10  ;;  %v7368_v10 = vld [vmem:[#allocation5 + $0x11c4] ss:$16 sps:$4 sm:$0xff]   ;;  %v7366_v14 = vld [vmem:[#allocation5 + $0x11c0] ss:$16 sps:$4 sm:$0xff]  }
 0x127   :  { %5230 = vmatpush2.bf16.msra.mxu1 %v7309_v25  ;;  %5252 = vmatprep.subr.bf16.mxu0 %v7314_v30  ;;  %v8302_v25 = vpack.c.bf16 %v97_v18, %v73_v15  ;;  %v7336_v30 = vld [vmem:[#allocation5 + $0x1060] ss:$16 sps:$4 sm:$0xff]   ;;  %v7374_v18 = vld [vmem:[#allocation5 + $0x11a4] ss:$16 sps:$4 sm:$0xff]  }
 0x128   :  { %5305 = vmatprep.subr.bf16.mxu1 %v7317_v31  ;;  %8913 = vst [vmem:[#allocation26_spill] sm:$0xff] %v8300_v24  ;;  %v7339_v31 = vld [vmem:[#allocation5 + $0x1260] ss:$16 sps:$4 sm:$0xff]  }
 0x129   :  { %5179 = vmatmul.mubr.bf16.vlgmr.msra.gmra.mxu0 %v8284_v39  ;;  %8914 = vst [vmem:[#allocation27_spill] sm:$0xff] %v8302_v25  ;;  %v7369_v15 = vld [vmem:[#allocation5 + $0x13c0] ss:$16 sps:$4 sm:$0xff]  }
 0x12a   :  { %5232 = vmatmul.mubr.bf16.vlgmr.msra.gmra.mxu1 %v8286_v40  ;;  %5253 = vmatpush1.bf16.msra.mxu0 %v7312_v35  ;;  %v7347_v35 = vld [vmem:[#allocation5 + $0x1244] ss:$16 sps:$4 sm:$0xff]  }
 0x12b   :  { %5306 = vmatpush1.bf16.msra.mxu1 %v7315_v46  ;;  %5254 = vmatprep.subr.bf16.mxu0 %v7320_v50  ;;  %v7353_v46 = vld [vmem:[#allocation5 + $0x1224] ss:$16 sps:$4 sm:$0xff]   ;;  %v7348_v50 = vld [vmem:[#allocation5 + $0x1020] ss:$16 sps:$4 sm:$0xff]  }
 0x12c   :  { %5307 = vmatprep.subr.bf16.mxu1 %v7323_v51  ;;  %5188 = vmatprep.mubr.bf16.mxu0 %v8288_v56  ;;  %v7351_v51 = vld [vmem:[#allocation5 + $0x1220] ss:$16 sps:$4 sm:$0xff]  }
 0x12d   :  { %5241 = vmatprep.mubr.bf16.mxu1 %v8290_v1 }
 0x12e   :  { %5255 = vmatpush1.bf16.msra.mxu0 %v7318_v52  ;;  %v7356_v52 = vld [vmem:[#allocation5 + $0x1004] ss:$16 sps:$4 sm:$0xff]  }
 0x12f   :  { %5308 = vmatpush1.bf16.msra.mxu1 %v7321_v55  ;;  %5256 = vmatprep.subr.bf16.mxu0 %v7326_v2  ;;  %v7359_v55 = vld [vmem:[#allocation5 + $0x1204] ss:$16 sps:$4 sm:$0xff]  }
 0x130   :  { %5309 = vmatprep.subr.bf16.mxu1 %v7329_v6  ;;  %v7362_v2 = vld [vmem:[#allocation5 + $0x11e4] ss:$16 sps:$4 sm:$0xff]   ;;  %v7363_v6 = vld [vmem:[#allocation5 + $0x13e0] ss:$16 sps:$4 sm:$0xff]  }
 0x131   :  { %5189 = vmatmul.mubr.bf16.gmra.mxu0 %v8296_v16 }
 0x132   :  { %5242 = vmatmul.mubr.bf16.gmra.mxu1 %v8298_v17  ;;  %5257 = vmatpush1.bf16.msra.mxu0 %v7324_v11  ;;  %v7371_v11 = vld [vmem:[#allocation5 + $0x13c4] ss:$16 sps:$4 sm:$0xff]  }
 0x133   :  { %5310 = vmatpush1.bf16.msra.mxu1 %v7327_v21  ;;  %5258 = vmatprep.subr.bf16.mxu0 %v7332_v22  ;;  %v7377_v21 = vld [vmem:[#allocation5 + $0x13a4] ss:$16 sps:$4 sm:$0xff]   ;;  %v7372_v22 = vld [vmem:[#allocation5 + $0x11a0] ss:$16 sps:$4 sm:$0xff]  }
 0x134   :  { %5311 = vmatprep.subr.bf16.mxu1 %v7335_v23  ;;  %5284 = vmatprep.mubr.bf16.mxu0 %v8300_v24  ;;  %v7375_v23 = vld [vmem:[#allocation5 + $0x13a0] ss:$16 sps:$4 sm:$0xff]  }
 0x135   :  { %5337 = vmatprep.mubr.bf16.mxu1 %v8302_v25 }
 0x136   :  { %5259 = vmatpush1.bf16.msra.mxu0 %v7330_v26  ;;  %v7380_v26 = vld [vmem:[#allocation5 + $0x1184] ss:$16 sps:$4 sm:$0xff]  }
 0x137   :  { %5312 = vmatpush1.bf16.msra.mxu1 %v7333_v27  ;;  %5260 = vmatprep.subr.bf16.mxu0 %v7338_v28  ;;  %v7383_v27 = vld [vmem:[#allocation5 + $0x1384] ss:$16 sps:$4 sm:$0xff]   ;;  %v7378_v28 = vld [vmem:[#allocation5 + $0x1180] ss:$16 sps:$4 sm:$0xff]  }
 0x138   :  { %5313 = vmatprep.subr.bf16.mxu1 %v7341_v29  ;;  %v7381_v29 = vld [vmem:[#allocation5 + $0x1380] ss:$16 sps:$4 sm:$0xff]  }
 0x13a   :  { %5261 = vmatpush1.bf16.msra.mxu0 %v7336_v30  ;;  %v7386_v30 = vld [vmem:[#allocation5 + $0x1164] ss:$16 sps:$4 sm:$0xff]  }
 0x13b   :  { %5314 = vmatpush1.bf16.msra.mxu1 %v7339_v31  ;;  %5262 = vmatprep.subr.bf16.mxu0 %v7344_v34  ;;  %v7389_v31 = vld [vmem:[#allocation5 + $0x1364] ss:$16 sps:$4 sm:$0xff]   ;;  %v7384_v34 = vld [vmem:[#allocation5 + $0x1160] ss:$16 sps:$4 sm:$0xff]  }
 0x13c   :  { %5315 = vmatprep.subr.bf16.mxu1 %v7347_v35  ;;  %v7387_v35 = vld [vmem:[#allocation5 + $0x1360] ss:$16 sps:$4 sm:$0xff]  }
 0x13e   :  { %5263 = vmatpush1.bf16.msra.mxu0 %v7342_v36  ;;  %v7392_v36 = vld [vmem:[#allocation5 + $0x1144] ss:$16 sps:$4 sm:$0xff]  }
 0x13f   :  { %5316 = vmatpush1.bf16.msra.mxu1 %v7345_v38  ;;  %5264 = vmatprep.subr.bf16.mxu0 %v7350_v45  ;;  %v7395_v38 = vld [vmem:[#allocation5 + $0x1344] ss:$16 sps:$4 sm:$0xff]   ;;  %v7390_v45 = vld [vmem:[#allocation5 + $0x1140] ss:$16 sps:$4 sm:$0xff]  }
 0x140   :  { %5317 = vmatprep.subr.bf16.mxu1 %v7353_v46  ;;  %v7393_v46 = vld [vmem:[#allocation5 + $0x1340] ss:$16 sps:$4 sm:$0xff]  }
 0x142   :  { %5265 = vmatpush1.bf16.msra.mxu0 %v7348_v50  ;;  %v7398_v50 = vld [vmem:[#allocation5 + $0x1124] ss:$16 sps:$4 sm:$0xff]  }
 0x143   :  { %5318 = vmatpush1.bf16.msra.mxu1 %v7351_v51  ;;  %5266 = vmatprep.subr.bf16.mxu0 %v7356_v52  ;;  %v7401_v51 = vld [vmem:[#allocation5 + $0x1324] ss:$16 sps:$4 sm:$0xff]   ;;  %v7396_v52 = vld [vmem:[#allocation5 + $0x1120] ss:$16 sps:$4 sm:$0xff]  }
 0x144   :  { %5319 = vmatprep.subr.bf16.mxu1 %v7359_v55  ;;  %v7399_v55 = vld [vmem:[#allocation5 + $0x1320] ss:$16 sps:$4 sm:$0xff]  }
 0x146   :  { %5267 = vmatpush1.bf16.msra.mxu0 %v7354_v57  ;;  %v7404_v57 = vld [vmem:[#allocation5 + $0x1104] ss:$16 sps:$4 sm:$0xff]  }
 0x147   :  { %5320 = vmatpush1.bf16.msra.mxu1 %v7357_v62  ;;  %5268 = vmatprep.subr.bf16.mxu0 %v7362_v2  ;;  %v7407_v62 = vld [vmem:[#allocation5 + $0x1304] ss:$16 sps:$4 sm:$0xff]   ;;  %v7402_v2 = vld [vmem:[#allocation5 + $0x1100] ss:$16 sps:$4 sm:$0xff]  }
 0x148   :  { %5321 = vmatprep.subr.bf16.mxu1 %v7365_v3  ;;  %v7405_v3 = vld [vmem:[#allocation5 + $0x1300] ss:$16 sps:$4 sm:$0xff]  }
 0x14a   :  { %5269 = vmatpush2.bf16.msra.mxu0 %v7360_v5  ;;  %v70_v5 = vld [vmem:[#allocation2 + $0x80] sm:$0xff] }
 0x14b   :  { %5322 = vmatpush2.bf16.msra.mxu1 %v7363_v6  ;;  %5270 = vmatprep.subr.bf16.mxu0 %v7368_v10  ;;  %v94_v6 = vld [vmem:[#allocation2 + $0x140] sm:$0xff]  ;;  %v72_v10 = vld [vmem:[#allocation2 + $0x90] sm:$0xff] }
 0x14c   :  { %5323 = vmatprep.subr.bf16.mxu1 %v7371_v11  ;;  %v96_v11 = vld [vmem:[#allocation2 + $0x150] sm:$0xff] }
 0x14e   :  { %5271 = vmatpush2.bf16.msra.mxu0 %v7366_v14  ;;  %v7410_v14 = vld [vmem:[#allocation5 + $0x14e4] ss:$16 sps:$4 sm:$0xff]  }
 0x14f   :  { %5324 = vmatpush2.bf16.msra.mxu1 %v7369_v15  ;;  %5272 = vmatprep.subr.bf16.mxu0 %v7374_v18  ;;  %v7413_v15 = vld [vmem:[#allocation5 + $0x16e4] ss:$16 sps:$4 sm:$0xff]   ;;  %v119_v18 = vld [vmem:[#allocation2 + $0x208] sm:$0xff] }
 0x150   :  { %5325 = vmatprep.subr.bf16.mxu1 %v7377_v21  ;;  %v7408_v21 = vld [vmem:[#allocation5 + $0x14e0] ss:$16 sps:$4 sm:$0xff]  }
 0x152   :  { %5273 = vmatpush2.bf16.msra.mxu0 %v7372_v22  ;;  %v143_v22 = vld [vmem:[#allocation2 + $0x2c8] sm:$0xff] }
 0x153   :  { %5326 = vmatpush2.bf16.msra.mxu1 %v7375_v23  ;;  %5274 = vmatprep.subr.bf16.mxu0 %v7380_v26  ;;  %v121_v23 = vld [vmem:[#allocation2 + $0x218] sm:$0xff]  ;;  %v8308_v26 = vpack.c.bf16 %v94_v6, %v70_v5 }
 0x154   :  { %5327 = vmatprep.subr.bf16.mxu1 %v7383_v27  ;;  %v8310_v27 = vpack.c.bf16 %v96_v11, %v72_v10  ;;  %v101_v10 = vld [vmem:[#allocation2 + $0x178] sm:$0xff]  ;;  %v7423_v11 = vld [vmem:[#allocation5 + $0x16a0] ss:$16 sps:$4 sm:$0xff]  }
 0x155   :  { %8915 = vst [vmem:[#allocation28_spill] sm:$0xff] %v8308_v26 }
 0x156   :  { %5275 = vmatpush2.bf16.msra.mxu0 %v7378_v28  ;;  %8916 = vst [vmem:[#allocation29_spill] sm:$0xff] %v8310_v27  ;;  %v145_v28 = vld [vmem:[#allocation2 + $0x2d8] sm:$0xff] }
 0x157   :  { %5328 = vmatpush2.bf16.msra.mxu1 %v7381_v29  ;;  %5276 = vmatprep.subr.bf16.mxu0 %v7386_v30  ;;  %v7411_v29 = vld [vmem:[#allocation5 + $0x16e0] ss:$16 sps:$4 sm:$0xff]   ;;  %v7416_v30 = vld [vmem:[#allocation5 + $0x14c4] ss:$16 sps:$4 sm:$0xff]  }
 0x158   :  { %5329 = vmatprep.subr.bf16.mxu1 %v7389_v31  ;;  %v7419_v31 = vld [vmem:[#allocation5 + $0x16c4] ss:$16 sps:$4 sm:$0xff]  }
 0x15a   :  { %5277 = vmatpush2.bf16.msra.mxu0 %v7384_v34  ;;  %v7414_v34 = vld [vmem:[#allocation5 + $0x14c0] ss:$16 sps:$4 sm:$0xff]  }
 0x15b   :  { %5330 = vmatpush2.bf16.msra.mxu1 %v7387_v35  ;;  %5278 = vmatprep.subr.bf16.mxu0 %v7392_v36  ;;  %v7417_v35 = vld [vmem:[#allocation5 + $0x16c0] ss:$16 sps:$4 sm:$0xff]   ;;  %v8312_v36 = vpack.c.bf16 %v143_v22, %v119_v18 }
 0x15c   :  { %5331 = vmatprep.subr.bf16.mxu1 %v7395_v38  ;;  %v118_v38 = vld [vmem:[#allocation2 + $0x200] sm:$0xff] }
 0x15d   :  { %8917 = vst [vmem:[#allocation30_spill] sm:$0xff] %v8312_v36  ;;  %v7426_v22 = vld [vmem:[#allocation5 + $0x1480] ss:$16 sps:$4 sm:$0xff]  }
 0x15e   :  { %5279 = vmatpush2.bf16.msra.mxu0 %v7390_v45  ;;  %v142_v45 = vld [vmem:[#allocation2 + $0x2c0] sm:$0xff] }
 0x15f   :  { %5332 = vmatpush2.bf16.msra.mxu1 %v7393_v46  ;;  %5280 = vmatprep.subr.bf16.mxu0 %v7398_v50  ;;  %v8314_v46 = vpack.c.bf16 %v145_v28, %v121_v23  ;;  %v7422_v50 = vld [vmem:[#allocation5 + $0x14a4] ss:$16 sps:$4 sm:$0xff]   ;;  %v8320_v5 = vpack.c.bf16 %v142_v45, %v118_v38  ;;  %v7429_v23 = vld [vmem:[#allocation5 + $0x1680] ss:$16 sps:$4 sm:$0xff]  }
 0x160   :  { %5333 = vmatprep.subr.bf16.mxu1 %v7401_v51  ;;  %v120_v51 = vld [vmem:[#allocation2 + $0x210] sm:$0xff] }
 0x161   :  { %8918 = vst [vmem:[#allocation31_spill] sm:$0xff] %v8314_v46  ;;  %8919 = vst [vmem:[#allocation32_spill] sm:$0xff] %v8320_v5  ;;  %v7434_v28 = vld [vmem:[#allocation5 + $0x1464] ss:$16 sps:$4 sm:$0xff]   ;;  %v7438_v38 = vld [vmem:[#allocation5 + $0x1440] ss:$16 sps:$4 sm:$0xff]  }
 0x162   :  { %5281 = vmatpush2.bf16.msra.mxu0 %v7396_v52  ;;  %v144_v52 = vld [vmem:[#allocation2 + $0x2d0] sm:$0xff] }
 0x163   :  { %5334 = vmatpush2.bf16.msra.mxu1 %v7399_v55  ;;  %5282 = vmatprep.subr.bf16.mxu0 %v7404_v57  ;;  %v7425_v55 = vld [vmem:[#allocation5 + $0x16a4] ss:$16 sps:$4 sm:$0xff]   ;;  %v75_v57 = vld [vmem:[#allocation2 + $0xa8] sm:$0xff]  ;;  %v8322_v6 = vpack.c.bf16 %v144_v52, %v120_v51  ;;  %v7441_v45 = vld [vmem:[#allocation5 + $0x1640] ss:$16 sps:$4 sm:$0xff]  }
 0x164   :  { %5335 = vmatprep.subr.bf16.mxu1 %v7407_v62  ;;  %v7420_v62 = vld [vmem:[#allocation5 + $0x14a0] ss:$16 sps:$4 sm:$0xff]   ;;  %v7449_v51 = vld [vmem:[#allocation5 + $0x1624] ss:$16 sps:$4 sm:$0xff]  }
 0x165   :  { %8920 = vst [vmem:[#allocation33_spill] sm:$0xff] %v8322_v6  ;;  %v7444_v52 = vld [vmem:[#allocation5 + $0x1420] ss:$16 sps:$4 sm:$0xff]  }
 0x166   :  { %5283 = vmatpush2.bf16.msra.mxu0 %v7402_v2  ;;  %v99_v2 = vld [vmem:[#allocation2 + $0x168] sm:$0xff] }
 0x167   :  { %5336 = vmatpush2.bf16.msra.mxu1 %v7405_v3  ;;  %5358 = vmatprep.subr.bf16.mxu0 %v7410_v14  ;;  %v77_v3 = vld [vmem:[#allocation2 + $0xb8] sm:$0xff]  ;;  %v7428_v14 = vld [vmem:[#allocation5 + $0x1484] ss:$16 sps:$4 sm:$0xff]   ;;  %v8324_v18 = vpack.c.bf16 %v99_v2, %v75_v57  ;;  %v7450_v2 = vld [vmem:[#allocation5 + $0x1400] ss:$16 sps:$4 sm:$0xff]  }
 0x168   :  { %5411 = vmatprep.subr.bf16.mxu1 %v7413_v15  ;;  %v7431_v15 = vld [vmem:[#allocation5 + $0x1684] ss:$16 sps:$4 sm:$0xff]  }
 0x169   :  { %5285 = vmatmul.mubr.bf16.vlgmr.msra.gmra.mxu0 %v8308_v26  ;;  %8921 = vst [vmem:[#allocation34_spill] sm:$0xff] %v8324_v18  ;;  %v7452_v57 = vld [vmem:[#allocation5 + $0x1404] ss:$16 sps:$4 sm:$0xff]  }
 0x16a   :  { %5338 = vmatmul.mubr.bf16.vlgmr.msra.gmra.mxu1 %v8310_v27  ;;  %5359 = vmatpush1.bf16.msra.mxu0 %v7408_v21  ;;  %v8326_v21 = vpack.c.bf16 %v101_v10, %v77_v3  ;;  %v7453_v3 = vld [vmem:[#allocation5 + $0x1600] ss:$16 sps:$4 sm:$0xff]   ;;  %v7458_v10 = vld [vmem:[#allocation5 + $0x15e4] ss:$16 sps:$4 sm:$0xff]  }
 0x16b   :  { %5412 = vmatpush1.bf16.msra.mxu1 %v7411_v29  ;;  %5360 = vmatprep.subr.bf16.mxu0 %v7416_v30  ;;  %v7437_v29 = vld [vmem:[#allocation5 + $0x1664] ss:$16 sps:$4 sm:$0xff]   ;;  %v7432_v30 = vld [vmem:[#allocation5 + $0x1460] ss:$16 sps:$4 sm:$0xff]  }
 0x16c   :  { %5413 = vmatprep.subr.bf16.mxu1 %v7419_v31  ;;  %5294 = vmatprep.mubr.bf16.mxu0 %v8312_v36  ;;  %8922 = vst [vmem:[#allocation35_spill] sm:$0xff] %v8326_v21  ;;  %v7435_v31 = vld [vmem:[#allocation5 + $0x1660] ss:$16 sps:$4 sm:$0xff]  }
 0x16d   :  { %5347 = vmatprep.mubr.bf16.mxu1 %v8314_v46 }
 0x16e   :  { %5361 = vmatpush1.bf16.msra.mxu0 %v7414_v34  ;;  %v7440_v34 = vld [vmem:[#allocation5 + $0x1444] ss:$16 sps:$4 sm:$0xff]  }
 0x16f   :  { %5414 = vmatpush1.bf16.msra.mxu1 %v7417_v35  ;;  %5362 = vmatprep.subr.bf16.mxu0 %v7422_v50  ;;  %v7443_v35 = vld [vmem:[#allocation5 + $0x1644] ss:$16 sps:$4 sm:$0xff]  }
 0x170   :  { %5415 = vmatprep.subr.bf16.mxu1 %v7425_v55  ;;  %v7446_v50 = vld [vmem:[#allocation5 + $0x1424] ss:$16 sps:$4 sm:$0xff]   ;;  %v7447_v55 = vld [vmem:[#allocation5 + $0x1620] ss:$16 sps:$4 sm:$0xff]  }
 0x171   :  { %5295 = vmatmul.mubr.bf16.gmra.mxu0 %v8320_v5  ;;  %v148_v5 = vld [vmem:[#allocation2 + $0x2f0] sm:$0xff] }
 0x172   :  { %5348 = vmatmul.mubr.bf16.gmra.mxu1 %v8322_v6  ;;  %5363 = vmatpush1.bf16.msra.mxu0 %v7420_v62  ;;  %v7455_v62 = vld [vmem:[#allocation5 + $0x1604] ss:$16 sps:$4 sm:$0xff]  }
 0x173   :  { %5416 = vmatpush1.bf16.msra.mxu1 %v7423_v11  ;;  %5364 = vmatprep.subr.bf16.mxu0 %v7428_v14  ;;  %v7461_v11 = vld [vmem:[#allocation5 + $0x17e4] ss:$16 sps:$4 sm:$0xff]   ;;  %v7456_v14 = vld [vmem:[#allocation5 + $0x15e0] ss:$16 sps:$4 sm:$0xff]  }
 0x174   :  { %5417 = vmatprep.subr.bf16.mxu1 %v7431_v15  ;;  %5390 = vmatprep.mubr.bf16.mxu0 %v8324_v18  ;;  %v7459_v15 = vld [vmem:[#allocation5 + $0x17e0] ss:$16 sps:$4 sm:$0xff]  }
 0x175   :  { %5443 = vmatprep.mubr.bf16.mxu1 %v8326_v21  ;;  %v146_v21 = vld [vmem:[#allocation2 + $0x2e0] sm:$0xff]  ;;  %v124_v6 = vld [vmem:[#allocation2 + $0x230] sm:$0xff] }
 0x176   :  { %5365 = vmatpush1.bf16.msra.mxu0 %v7426_v22  ;;  %v7464_v22 = vld [vmem:[#allocation5 + $0x15c4] ss:$16 sps:$4 sm:$0xff]  }
 0x177   :  { %5418 = vmatpush1.bf16.msra.mxu1 %v7429_v23  ;;  %5366 = vmatprep.subr.bf16.mxu0 %v7434_v28  ;;  %v7467_v23 = vld [vmem:[#allocation5 + $0x17c4] ss:$16 sps:$4 sm:$0xff]   ;;  %v7462_v28 = vld [vmem:[#allocation5 + $0x15c0] ss:$16 sps:$4 sm:$0xff]  }
 0x178   :  { %5419 = vmatprep.subr.bf16.mxu1 %v7437_v29  ;;  %v7465_v29 = vld [vmem:[#allocation5 + $0x17c0] ss:$16 sps:$4 sm:$0xff]  }
 0x17a   :  { %5367 = vmatpush1.bf16.msra.mxu0 %v7432_v30  ;;  %v7470_v30 = vld [vmem:[#allocation5 + $0x15a4] ss:$16 sps:$4 sm:$0xff]  }
 0x17b   :  { %5420 = vmatpush1.bf16.msra.mxu1 %v7435_v31  ;;  %5368 = vmatprep.subr.bf16.mxu0 %v7440_v34  ;;  %v7473_v31 = vld [vmem:[#allocation5 + $0x17a4] ss:$16 sps:$4 sm:$0xff]   ;;  %v7468_v34 = vld [vmem:[#allocation5 + $0x15a0] ss:$16 sps:$4 sm:$0xff]  }
 0x17c   :  { %5421 = vmatprep.subr.bf16.mxu1 %v7443_v35  ;;  %v7471_v35 = vld [vmem:[#allocation5 + $0x17a0] ss:$16 sps:$4 sm:$0xff]  }
 0x17e   :  { %5369 = vmatpush1.bf16.msra.mxu0 %v7438_v38  ;;  %v7476_v38 = vld [vmem:[#allocation5 + $0x1584] ss:$16 sps:$4 sm:$0xff]  }
 0x17f   :  { %5422 = vmatpush1.bf16.msra.mxu1 %v7441_v45  ;;  %5370 = vmatprep.subr.bf16.mxu0 %v7446_v50  ;;  %v7479_v45 = vld [vmem:[#allocation5 + $0x1784] ss:$16 sps:$4 sm:$0xff]   ;;  %v7474_v50 = vld [vmem:[#allocation5 + $0x1580] ss:$16 sps:$4 sm:$0xff]  }
 0x180   :  { %5423 = vmatprep.subr.bf16.mxu1 %v7449_v51  ;;  %v7477_v51 = vld [vmem:[#allocation5 + $0x1780] ss:$16 sps:$4 sm:$0xff]  }
 0x182   :  { %5371 = vmatpush1.bf16.msra.mxu0 %v7444_v52  ;;  %v7482_v52 = vld [vmem:[#allocation5 + $0x1564] ss:$16 sps:$4 sm:$0xff]  }
 0x183   :  { %5424 = vmatpush1.bf16.msra.mxu1 %v7447_v55  ;;  %5372 = vmatprep.subr.bf16.mxu0 %v7452_v57  ;;  %v7485_v55 = vld [vmem:[#allocation5 + $0x1764] ss:$16 sps:$4 sm:$0xff]   ;;  %v7480_v57 = vld [vmem:[#allocation5 + $0x1560] ss:$16 sps:$4 sm:$0xff]  }
 0x184   :  { %5425 = vmatprep.subr.bf16.mxu1 %v7455_v62  ;;  %v7483_v62 = vld [vmem:[#allocation5 + $0x1760] ss:$16 sps:$4 sm:$0xff]  }
 0x186   :  { %5373 = vmatpush1.bf16.msra.mxu0 %v7450_v2  ;;  %v7488_v2 = vld [vmem:[#allocation5 + $0x1544] ss:$16 sps:$4 sm:$0xff]  }
 0x187   :  { %5426 = vmatpush1.bf16.msra.mxu1 %v7453_v3  ;;  %5374 = vmatprep.subr.bf16.mxu0 %v7458_v10  ;;  %v7491_v3 = vld [vmem:[#allocation5 + $0x1744] ss:$16 sps:$4 sm:$0xff]   ;;  %v7486_v10 = vld [vmem:[#allocation5 + $0x1540] ss:$16 sps:$4 sm:$0xff]  }
 0x188   :  { %5427 = vmatprep.subr.bf16.mxu1 %v7461_v11  ;;  %v7489_v11 = vld [vmem:[#allocation5 + $0x1740] ss:$16 sps:$4 sm:$0xff]  }
 0x18a   :  { %5375 = vmatpush2.bf16.msra.mxu0 %v7456_v14  ;;  %v7494_v14 = vld [vmem:[#allocation5 + $0x1524] ss:$16 sps:$4 sm:$0xff]  }
 0x18b   :  { %5428 = vmatpush2.bf16.msra.mxu1 %v7459_v15  ;;  %5376 = vmatprep.subr.bf16.mxu0 %v7464_v22  ;;  %v7497_v15 = vld [vmem:[#allocation5 + $0x1724] ss:$16 sps:$4 sm:$0xff]   ;;  %v7492_v22 = vld [vmem:[#allocation5 + $0x1520] ss:$16 sps:$4 sm:$0xff]  }
 0x18c   :  { %5429 = vmatprep.subr.bf16.mxu1 %v7467_v23  ;;  %v7495_v23 = vld [vmem:[#allocation5 + $0x1720] ss:$16 sps:$4 sm:$0xff]  }
 0x18e   :  { %5377 = vmatpush2.bf16.msra.mxu0 %v7462_v28  ;;  %v7500_v28 = vld [vmem:[#allocation5 + $0x1504] ss:$16 sps:$4 sm:$0xff]  }
 0x18f   :  { %5430 = vmatpush2.bf16.msra.mxu1 %v7465_v29  ;;  %5378 = vmatprep.subr.bf16.mxu0 %v7470_v30  ;;  %v7503_v29 = vld [vmem:[#allocation5 + $0x1704] ss:$16 sps:$4 sm:$0xff]   ;;  %v7498_v30 = vld [vmem:[#allocation5 + $0x1500] ss:$16 sps:$4 sm:$0xff]  }
 0x190   :  { %5431 = vmatprep.subr.bf16.mxu1 %v7473_v31  ;;  %v7501_v31 = vld [vmem:[#allocation5 + $0x1700] ss:$16 sps:$4 sm:$0xff]  }
 0x192   :  { %5379 = vmatpush2.bf16.msra.mxu0 %v7468_v34  ;;  %v74_v34 = vld [vmem:[#allocation2 + $0xa0] sm:$0xff] }
 0x193   :  { %5432 = vmatpush2.bf16.msra.mxu1 %v7471_v35  ;;  %5380 = vmatprep.subr.bf16.mxu0 %v7476_v38  ;;  %v98_v35 = vld [vmem:[#allocation2 + $0x160] sm:$0xff]  ;;  %v76_v38 = vld [vmem:[#allocation2 + $0xb0] sm:$0xff] }
 0x194   :  { %5433 = vmatprep.subr.bf16.mxu1 %v7479_v45  ;;  %v100_v45 = vld [vmem:[#allocation2 + $0x170] sm:$0xff] }
 0x196   :  { %5381 = vmatpush2.bf16.msra.mxu0 %v7474_v50  ;;  %v7506_v50 = vld [vmem:[#allocation5 + $0xec] ss:$16 sps:$4 sm:$0xff]  }
 0x197   :  { %5434 = vmatpush2.bf16.msra.mxu1 %v7477_v51  ;;  %5382 = vmatprep.subr.bf16.mxu0 %v7482_v52  ;;  %v7509_v51 = vld [vmem:[#allocation5 + $0x2ec] ss:$16 sps:$4 sm:$0xff]  }
 0x198   :  { %5435 = vmatprep.subr.bf16.mxu1 %v7485_v55  ;;  %v123_v52 = vld [vmem:[#allocation2 + $0x228] sm:$0xff] }
 0x199   :  { %v147_v55 = vld [vmem:[#allocation2 + $0x2e8] sm:$0xff] }
 0x19a   :  { %5383 = vmatpush2.bf16.msra.mxu0 %v7480_v57  ;;  %v125_v57 = vld [vmem:[#allocation2 + $0x238] sm:$0xff] }
 0x19b   :  { %5436 = vmatpush2.bf16.msra.mxu1 %v7483_v62  ;;  %5384 = vmatprep.subr.bf16.mxu0 %v7488_v2  ;;  %v149_v62 = vld [vmem:[#allocation2 + $0x2f8] sm:$0xff] }
 0x19c   :  { %5437 = vmatprep.subr.bf16.mxu1 %v7491_v3  ;;  %v7504_v2 = vld [vmem:[#allocation5 + $0xe8] ss:$16 sps:$4 sm:$0xff]   ;;  %v8338_v18 = vpack.c.bf16 %v149_v62, %v125_v57  ;;  %v7533_v57 = vld [vmem:[#allocation5 + $0x26c] ss:$16 sps:$4 sm:$0xff]  }
 0x19d   :  { %v7507_v3 = vld [vmem:[#allocation5 + $0x2e8] ss:$16 sps:$4 sm:$0xff]   ;;  %v7536_v62 = vld [vmem:[#allocation5 + $0x4c] ss:$16 sps:$4 sm:$0xff]  }
 0x19e   :  { %5385 = vmatpush2.bf16.msra.mxu0 %v7486_v10  ;;  %v8332_v10 = vpack.c.bf16 %v98_v35, %v74_v34  ;;  %8926 = vst [vmem:[#allocation39_spill] sm:$0xff] %v8338_v18  ;;  %v7516_v34 = vld [vmem:[#allocation5 + $0xa8] ss:$16 sps:$4 sm:$0xff]  }
 0x19f   :  { %5438 = vmatpush2.bf16.msra.mxu1 %v7489_v11  ;;  %5386 = vmatprep.subr.bf16.mxu0 %v7494_v14  ;;  %v8334_v11 = vpack.c.bf16 %v100_v45, %v76_v38  ;;  %v7512_v14 = vld [vmem:[#allocation5 + $0xcc] ss:$16 sps:$4 sm:$0xff]   ;;  %v7519_v35 = vld [vmem:[#allocation5 + $0x2a8] ss:$16 sps:$4 sm:$0xff]   ;;  %v8346_v45 = vpack.c.bf16 %v148_v5, %v124_v6 }
 0x1a0   :  { %5439 = vmatprep.subr.bf16.mxu1 %v7497_v15  ;;  %8923 = vst [vmem:[#allocation36_spill] sm:$0xff] %v8332_v10  ;;  %v7515_v15 = vld [vmem:[#allocation5 + $0x2cc] ss:$16 sps:$4 sm:$0xff]   ;;  %v7528_v5 = vld [vmem:[#allocation5 + $0x68] ss:$16 sps:$4 sm:$0xff]  }
 0x1a1   :  { %8924 = vst [vmem:[#allocation37_spill] sm:$0xff] %v8334_v11  ;;  %8928 = vst [vmem:[#allocation41_spill] sm:$0xff] %v8346_v45  ;;  %v7531_v6 = vld [vmem:[#allocation5 + $0x268] ss:$16 sps:$4 sm:$0xff]  }
 0x1a2   :  { %5387 = vmatpush2.bf16.msra.mxu0 %v7492_v22  ;;  %v7510_v22 = vld [vmem:[#allocation5 + $0xc8] ss:$16 sps:$4 sm:$0xff]  }
 0x1a3   :  { %5440 = vmatpush2.bf16.msra.mxu1 %v7495_v23  ;;  %5388 = vmatprep.subr.bf16.mxu0 %v7500_v28  ;;  %v7513_v23 = vld [vmem:[#allocation5 + $0x2c8] ss:$16 sps:$4 sm:$0xff]   ;;  %v8336_v28 = vpack.c.bf16 %v147_v55, %v123_v52 }
 0x1a4   :  { %5441 = vmatprep.subr.bf16.mxu1 %v7503_v29  ;;  %v122_v29 = vld [vmem:[#allocation2 + $0x220] sm:$0xff]  ;;  %v7522_v52 = vld [vmem:[#allocation5 + $0x88] ss:$16 sps:$4 sm:$0xff]  }
 0x1a5   :  { %8925 = vst [vmem:[#allocation38_spill] sm:$0xff] %v8336_v28  ;;  %v8344_v38 = vpack.c.bf16 %v146_v21, %v122_v29  ;;  %v7525_v55 = vld [vmem:[#allocation5 + $0x288] ss:$16 sps:$4 sm:$0xff]   ;;  %v7530_v21 = vld [vmem:[#allocation5 + $0x6c] ss:$16 sps:$4 sm:$0xff]  }
 0x1a6   :  { %5389 = vmatpush2.bf16.msra.mxu0 %v7498_v30  ;;  %v7518_v30 = vld [vmem:[#allocation5 + $0xac] ss:$16 sps:$4 sm:$0xff]  }
 0x1a7   :  { %5442 = vmatpush2.bf16.msra.mxu1 %v7501_v31  ;;  %5464 = vmatprep.subr.bf16.mxu0 %v7506_v50  ;;  %v7521_v31 = vld [vmem:[#allocation5 + $0x2ac] ss:$16 sps:$4 sm:$0xff]   ;;  %8927 = vst [vmem:[#allocation40_spill] sm:$0xff] %v8344_v38 }
 0x1a8   :  { %5517 = vmatprep.subr.bf16.mxu1 %v7509_v51  ;;  %v7524_v50 = vld [vmem:[#allocation5 + $0x8c] ss:$16 sps:$4 sm:$0xff]  }
 0x1a9   :  { %5391 = vmatmul.mubr.bf16.vlgmr.msra.gmra.mxu0 %v8332_v10  ;;  %v7527_v51 = vld [vmem:[#allocation5 + $0x28c] ss:$16 sps:$4 sm:$0xff]  }
 0x1aa   :  { %5444 = vmatmul.mubr.bf16.vlgmr.msra.gmra.mxu1 %v8334_v11  ;;  %5465 = vmatpush1.bf16.msra.mxu0 %v7504_v2  ;;  %v7539_v2 = vld [vmem:[#allocation5 + $0x24c] ss:$16 sps:$4 sm:$0xff]  }
 0x1ab   :  { %5518 = vmatpush1.bf16.msra.mxu1 %v7507_v3  ;;  %5466 = vmatprep.subr.bf16.mxu0 %v7512_v14  ;;  %v7534_v3 = vld [vmem:[#allocation5 + $0x48] ss:$16 sps:$4 sm:$0xff]   ;;  %v7551_v29 = vld [vmem:[#allocation5 + $0x20c] ss:$16 sps:$4 sm:$0xff]  }
 0x1ac   :  { %5519 = vmatprep.subr.bf16.mxu1 %v7515_v15  ;;  %5400 = vmatprep.mubr.bf16.mxu0 %v8336_v28  ;;  %v7537_v14 = vld [vmem:[#allocation5 + $0x248] ss:$16 sps:$4 sm:$0xff]   ;;  %v7542_v15 = vld [vmem:[#allocation5 + $0x2c] ss:$16 sps:$4 sm:$0xff]  }
 0x1ad   :  { %5453 = vmatprep.mubr.bf16.mxu1 %v8338_v18  ;;  %v7644_v18 = vld [vmem:[#allocation5 + $0x40c] ss:$16 sps:$4 sm:$0xff]  }
 0x1ae   :  { %5467 = vmatpush1.bf16.msra.mxu0 %v7510_v22  ;;  %v7545_v22 = vld [vmem:[#allocation5 + $0x22c] ss:$16 sps:$4 sm:$0xff]  }
 0x1af   :  { %5520 = vmatpush1.bf16.msra.mxu1 %v7513_v23  ;;  %5468 = vmatprep.subr.bf16.mxu0 %v7518_v30  ;;  %v7540_v23 = vld [vmem:[#allocation5 + $0x28] ss:$16 sps:$4 sm:$0xff]   ;;  %v7647_v28 = vld [vmem:[#allocation5 + $0x60c] ss:$16 sps:$4 sm:$0xff]  }
 0x1b0   :  { %5521 = vmatprep.subr.bf16.mxu1 %v7521_v31  ;;  %v7546_v30 = vld [vmem:[#allocation5 + $0x8] ss:$16 sps:$4 sm:$0xff]   ;;  %v7653_v10 = vld [vmem:[#allocation5 + $0x7ec] ss:$16 sps:$4 sm:$0xff]  }
 0x1b1   :  { %5401 = vmatmul.mubr.bf16.gmra.mxu0 %v8344_v38  ;;  %v7549_v31 = vld [vmem:[#allocation5 + $0x208] ss:$16 sps:$4 sm:$0xff]  }
 0x1b2   :  { %5454 = vmatmul.mubr.bf16.gmra.mxu1 %v8346_v45  ;;  %5469 = vmatpush1.bf16.msra.mxu0 %v7516_v34  ;;  %v7554_v34 = vld [vmem:[#allocation5 + $0x1ec] ss:$16 sps:$4 sm:$0xff]  }
 0x1b3   :  { %5522 = vmatpush1.bf16.msra.mxu1 %v7519_v35  ;;  %5470 = vmatprep.subr.bf16.mxu0 %v7524_v50  ;;  %v7557_v35 = vld [vmem:[#allocation5 + $0x3ec] ss:$16 sps:$4 sm:$0xff]   ;;  %v7552_v50 = vld [vmem:[#allocation5 + $0x1e8] ss:$16 sps:$4 sm:$0xff]  }
 0x1b4   :  { %5523 = vmatprep.subr.bf16.mxu1 %v7527_v51  ;;  %5496 = vmatprep.mubr.bf16.mxu0 %v8206_v53  ;;  %v7543_v53 = vld [vmem:[#allocation5 + $0x228] ss:$16 sps:$4 sm:$0xff]  }
 0x1b5   :  { %5549 = vmatprep.mubr.bf16.mxu1 %v8208_v54  ;;  %v7548_v54 = vld [vmem:[#allocation5 + $0xc] ss:$16 sps:$4 sm:$0xff]   ;;  %v7555_v51 = vld [vmem:[#allocation5 + $0x3e8] ss:$16 sps:$4 sm:$0xff]  }
 0x1b6   :  { %5471 = vmatpush1.bf16.msra.mxu0 %v7522_v52  ;;  %v7560_v52 = vld [vmem:[#allocation5 + $0x1cc] ss:$16 sps:$4 sm:$0xff]  }
 0x1b7   :  { %5524 = vmatpush1.bf16.msra.mxu1 %v7525_v55  ;;  %5472 = vmatprep.subr.bf16.mxu0 %v7530_v21  ;;  %v7563_v55 = vld [vmem:[#allocation5 + $0x3cc] ss:$16 sps:$4 sm:$0xff]   ;;  %v7558_v21 = vld [vmem:[#allocation5 + $0x1c8] ss:$16 sps:$4 sm:$0xff]  }
 0x1b8   :  { %5525 = vmatprep.subr.bf16.mxu1 %v7533_v57  ;;  %v7561_v57 = vld [vmem:[#allocation5 + $0x3c8] ss:$16 sps:$4 sm:$0xff]  }
 0x1ba   :  { %5473 = vmatpush1.bf16.msra.mxu0 %v7528_v5  ;;  %v7566_v5 = vld [vmem:[#allocation5 + $0x1ac] ss:$16 sps:$4 sm:$0xff]  }
 0x1bb   :  { %5526 = vmatpush1.bf16.msra.mxu1 %v7531_v6  ;;  %5474 = vmatprep.subr.bf16.mxu0 %v7536_v62  ;;  %v7569_v6 = vld [vmem:[#allocation5 + $0x3ac] ss:$16 sps:$4 sm:$0xff]   ;;  %v7564_v62 = vld [vmem:[#allocation5 + $0x1a8] ss:$16 sps:$4 sm:$0xff]  }
 0x1bc   :  { %5527 = vmatprep.subr.bf16.mxu1 %v7539_v2  ;;  %v7567_v2 = vld [vmem:[#allocation5 + $0x3a8] ss:$16 sps:$4 sm:$0xff]  }
 0x1be   :  { %5475 = vmatpush1.bf16.msra.mxu0 %v7534_v3  ;;  %v7572_v3 = vld [vmem:[#allocation5 + $0x18c] ss:$16 sps:$4 sm:$0xff]  }
 0x1bf   :  { %5528 = vmatpush1.bf16.msra.mxu1 %v7537_v14  ;;  %5476 = vmatprep.subr.bf16.mxu0 %v7542_v15  ;;  %v7575_v14 = vld [vmem:[#allocation5 + $0x38c] ss:$16 sps:$4 sm:$0xff]   ;;  %v7570_v15 = vld [vmem:[#allocation5 + $0x188] ss:$16 sps:$4 sm:$0xff]  }
 0x1c0   :  { %5529 = vmatprep.subr.bf16.mxu1 %v7545_v22  ;;  %v7573_v22 = vld [vmem:[#allocation5 + $0x388] ss:$16 sps:$4 sm:$0xff]  }
 0x1c2   :  { %5477 = vmatpush1.bf16.msra.mxu0 %v7540_v23  ;;  %v7578_v23 = vld [vmem:[#allocation5 + $0x16c] ss:$16 sps:$4 sm:$0xff]  }
 0x1c3   :  { %5530 = vmatpush1.bf16.msra.mxu1 %v7543_v53  ;;  %5478 = vmatprep.subr.bf16.mxu0 %v7548_v54  ;;  %v7581_v53 = vld [vmem:[#allocation5 + $0x36c] ss:$16 sps:$4 sm:$0xff]   ;;  %v8352_v54 = vpop.f32.mrf.mxu0 }
 0x1c4   :  { %5531 = vmatprep.subr.bf16.mxu1 %v7551_v29  ;;  %v7576_v29 = vld [vmem:[#allocation5 + $0x168] ss:$16 sps:$4 sm:$0xff]  }
 0x1c6   :  { %5479 = vmatpush1.bf16.msra.mxu0 %v7546_v30  ;;  %v7579_v30 = vld [vmem:[#allocation5 + $0x368] ss:$16 sps:$4 sm:$0xff]  }
 0x1c7   :  { %5532 = vmatpush1.bf16.msra.mxu1 %v7549_v31  ;;  %5480 = vmatprep.subr.bf16.mxu0 %v7554_v34  ;;  %v7584_v31 = vld [vmem:[#allocation5 + $0x14c] ss:$16 sps:$4 sm:$0xff]  }
 0x1c8   :  { %5533 = vmatprep.subr.bf16.mxu1 %v7557_v35  ;;  %v7587_v34 = vld [vmem:[#allocation5 + $0x34c] ss:$16 sps:$4 sm:$0xff]   ;;  %v8354_v35 = vpop.f32.mrf.mxu0 }
 0x1ca   :  { %5481 = vmatpush2.bf16.msra.mxu0 %v7552_v50  ;;  %v7582_v50 = vld [vmem:[#allocation5 + $0x148] ss:$16 sps:$4 sm:$0xff]  }
 0x1cb   :  { %5534 = vmatpush2.bf16.msra.mxu1 %v7555_v51  ;;  %5482 = vmatprep.subr.bf16.mxu0 %v7560_v52  ;;  %v7585_v51 = vld [vmem:[#allocation5 + $0x348] ss:$16 sps:$4 sm:$0xff]   ;;  %v7590_v52 = vld [vmem:[#allocation5 + $0x12c] ss:$16 sps:$4 sm:$0xff]  }
 0x1cc   :  { %5535 = vmatprep.subr.bf16.mxu1 %v7563_v55  ;;  %v7593_v55 = vld [vmem:[#allocation5 + $0x32c] ss:$16 sps:$4 sm:$0xff]  }
 0x1ce   :  { %5483 = vmatpush2.bf16.msra.mxu0 %v7558_v21  ;;  %v8356_v21 = vpop.f32.mrf.mxu1 }
 0x1cf   :  { %5536 = vmatpush2.bf16.msra.mxu1 %v7561_v57  ;;  %5484 = vmatprep.subr.bf16.mxu0 %v7566_v5  ;;  %v8358_v57 = vpop.f32.mrf.mxu0  ;;  %v7588_v5 = vld [vmem:[#allocation5 + $0x128] ss:$16 sps:$4 sm:$0xff]  }
 0x1d0   :  { %5537 = vmatprep.subr.bf16.mxu1 %v7569_v6  ;;  %v7591_v6 = vld [vmem:[#allocation5 + $0x328] ss:$16 sps:$4 sm:$0xff]  }
 0x1d2   :  { %5485 = vmatpush2.bf16.msra.mxu0 %v7564_v62  ;;  %v7596_v62 = vld [vmem:[#allocation5 + $0x10c] ss:$16 sps:$4 sm:$0xff]  }
 0x1d3   :  { %5538 = vmatpush2.bf16.msra.mxu1 %v7567_v2  ;;  %5486 = vmatprep.subr.bf16.mxu0 %v7572_v3  ;;  %v7599_v2 = vld [vmem:[#allocation5 + $0x30c] ss:$16 sps:$4 sm:$0xff]   ;;  %v8360_v3 = vpop.f32.mrf.mxu1 }
 0x1d4   :  { %5539 = vmatprep.subr.bf16.mxu1 %v7575_v14  ;;  %v8362_v14 = vpop.f32.mrf.mxu0 }
 0x1d6   :  { %5487 = vmatpush2.bf16.msra.mxu0 %v7570_v15  ;;  %v7594_v15 = vld [vmem:[#allocation5 + $0x108] ss:$16 sps:$4 sm:$0xff]  }
 0x1d7   :  { %5540 = vmatpush2.bf16.msra.mxu1 %v7573_v22  ;;  %5488 = vmatprep.subr.bf16.mxu0 %v7578_v23  ;;  %v7597_v22 = vld [vmem:[#allocation5 + $0x308] ss:$16 sps:$4 sm:$0xff]   ;;  %v8364_v23 = vpop.f32.mrf.mxu0 }
 0x1d8   :  { %5541 = vmatprep.subr.bf16.mxu1 %v7581_v53  ;;  %v7602_v53 = vld [vmem:[#allocation5 + $0x4ec] ss:$16 sps:$4 sm:$0xff]  }
 0x1da   :  { %5489 = vmatpush2.bf16.msra.mxu0 %v7576_v29  ;;  %v7605_v29 = vld [vmem:[#allocation5 + $0x6ec] ss:$16 sps:$4 sm:$0xff]  }
 0x1db   :  { %5542 = vmatpush2.bf16.msra.mxu1 %v7579_v30  ;;  %5490 = vmatprep.subr.bf16.mxu0 %v7584_v31  ;;  %v7600_v30 = vld [vmem:[#allocation5 + $0x4e8] ss:$16 sps:$4 sm:$0xff]  }
 0x1dc   :  { %5543 = vmatprep.subr.bf16.mxu1 %v7587_v34  ;;  %v7603_v31 = vld [vmem:[#allocation5 + $0x6e8] ss:$16 sps:$4 sm:$0xff]   ;;  %v8366_v34 = vpop.f32.mrf.mxu1 }
 0x1de   :  { %5491 = vmatpush2.bf16.msra.mxu0 %v7582_v50  ;;  %v8368_v50 = vpop.f32.mrf.mxu0 }
 0x1df   :  { %5544 = vmatpush2.bf16.msra.mxu1 %v7585_v51  ;;  %5492 = vmatprep.subr.bf16.mxu0 %v7590_v52  ;;  %v7608_v51 = vld [vmem:[#allocation5 + $0x4cc] ss:$16 sps:$4 sm:$0xff]  }
 0x1e0   :  { %5545 = vmatprep.subr.bf16.mxu1 %v7593_v55  ;;  %v7611_v52 = vld [vmem:[#allocation5 + $0x6cc] ss:$16 sps:$4 sm:$0xff]   ;;  %v7606_v55 = vld [vmem:[#allocation5 + $0x4c8] ss:$16 sps:$4 sm:$0xff]  }
 0x1e2   :  { %5493 = vmatpush2.bf16.msra.mxu0 %v7588_v5  ;;  %v7609_v5 = vld [vmem:[#allocation5 + $0x6c8] ss:$16 sps:$4 sm:$0xff]  }
 0x1e3   :  { %5546 = vmatpush2.bf16.msra.mxu1 %v7591_v6  ;;  %5494 = vmatprep.subr.bf16.mxu0 %v7596_v62  ;;  %v8370_v6 = vpop.f32.mrf.mxu1 }
 0x1e4   :  { %5547 = vmatprep.subr.bf16.mxu1 %v7599_v2  ;;  %v8376_v2 = vpop.f32.mrf.mxu0 }
 0x1e5   :  { %v8374_v62 = vpop.f32.mrf.mxu1 }
 0x1e6   :  { %5495 = vmatpush2.bf16.msra.mxu0 %v7594_v15  ;;  %v7614_v15 = vld [vmem:[#allocation5 + $0x4ac] ss:$16 sps:$4 sm:$0xff]  }
 0x1e7   :  { %5548 = vmatpush2.bf16.msra.mxu1 %v7597_v22  ;;  %5570 = vmatprep.subr.bf16.mxu0 %v7602_v53  ;;  %v7617_v22 = vld [vmem:[#allocation5 + $0x6ac] ss:$16 sps:$4 sm:$0xff]   ;;  %v7612_v53 = vld [vmem:[#allocation5 + $0x4a8] ss:$16 sps:$4 sm:$0xff]  }
 0x1e8   :  { %5623 = vmatprep.subr.bf16.mxu1 %v7605_v29  ;;  %v7615_v29 = vld [vmem:[#allocation5 + $0x6a8] ss:$16 sps:$4 sm:$0xff]  }
 0x1e9   :  { %5497 = vmatmul.mubr.bf16.vlgmr.msra.gmra.mxu0 %v8212_v12  ;;  %v8380_v12 = vpop.f32.mrf.mxu1 }
 0x1ea   :  { %5550 = vmatmul.mubr.bf16.vlgmr.msra.gmra.mxu1 %v8214_v13  ;;  %5571 = vmatpush1.bf16.msra.mxu0 %v7600_v30  ;;  %v8382_v13 = vpop.f32.mrf.mxu0  ;;  %v7620_v30 = vld [vmem:[#allocation5 + $0x48c] ss:$16 sps:$4 sm:$0xff]  }
 0x1eb   :  { %5624 = vmatpush1.bf16.msra.mxu1 %v7603_v31  ;;  %5572 = vmatprep.subr.bf16.mxu0 %v7608_v51  ;;  %v7623_v31 = vld [vmem:[#allocation5 + $0x68c] ss:$16 sps:$4 sm:$0xff]   ;;  %v7618_v51 = vld [vmem:[#allocation5 + $0x488] ss:$16 sps:$4 sm:$0xff]  }
 0x1ec   :  { %5625 = vmatprep.subr.bf16.mxu1 %v7611_v52  ;;  %5506 = vmatprep.mubr.bf16.mxu0 %v8218_v37  ;;  %v7621_v52 = vld [vmem:[#allocation5 + $0x688] ss:$16 sps:$4 sm:$0xff]   ;;  %v8384_v45 = vpop.f32.mrf.mxu0  ;;  %v8388_v37 = vpop.f32.mrf.mxu1 }
 0x1ed   :  { %5559 = vmatprep.mubr.bf16.mxu1 %v8222_v43  ;;  %v7626_v43 = vld [vmem:[#allocation5 + $0x46c] ss:$16 sps:$4 sm:$0xff]  }
 0x1ee   :  { %5573 = vmatpush1.bf16.msra.mxu0 %v7606_v55  ;;  %v7629_v55 = vld [vmem:[#allocation5 + $0x66c] ss:$16 sps:$4 sm:$0xff]  }
 0x1ef   :  { %5626 = vmatpush1.bf16.msra.mxu1 %v7609_v5  ;;  %5574 = vmatprep.subr.bf16.mxu0 %v7614_v15  ;;  %v7624_v5 = vld [vmem:[#allocation5 + $0x468] ss:$16 sps:$4 sm:$0xff]  }
 0x1f0   :  { %5627 = vmatprep.subr.bf16.mxu1 %v7617_v22  ;;  %v7627_v15 = vld [vmem:[#allocation5 + $0x668] ss:$16 sps:$4 sm:$0xff]   ;;  %v8392_v22 = vpop.f32.mrf.mxu0 }
 0x1f1   :  { %5507 = vmatmul.mubr.bf16.gmra.mxu0 %v8220_v42  ;;  %v8394_v42 = vpop.f32.mrf.mxu1 }
 0x1f2   :  { %5560 = vmatmul.mubr.bf16.gmra.mxu1 %v8227_v49  ;;  %5575 = vmatpush1.bf16.msra.mxu0 %v7612_v53  ;;  %v7632_v49 = vld [vmem:[#allocation5 + $0x44c] ss:$16 sps:$4 sm:$0xff]   ;;  %v8398_v38 = vpop.f32.mrf.mxu0 }
 0x1f3   :  { %5628 = vmatpush1.bf16.msra.mxu1 %v7615_v29  ;;  %5576 = vmatprep.subr.bf16.mxu0 %v7620_v30  ;;  %v7635_v53 = vld [vmem:[#allocation5 + $0x64c] ss:$16 sps:$4 sm:$0xff]   ;;  %v7630_v29 = vld [vmem:[#allocation5 + $0x448] ss:$16 sps:$4 sm:$0xff]  }
 0x1f4   :  { %5629 = vmatprep.subr.bf16.mxu1 %v7623_v31  ;;  %5602 = vmatprep.mubr.bf16.mxu0 %v8230_v63  ;;  %v7633_v30 = vld [vmem:[#allocation5 + $0x648] ss:$16 sps:$4 sm:$0xff]   ;;  %v8396_v31 = vpop.f32.mrf.mxu1  ;;  %v7638_v63 = vld [vmem:[#allocation5 + $0x42c] ss:$16 sps:$4 sm:$0xff]  }
 0x1f5   :  { %5655 = vmatprep.mubr.bf16.mxu1 %v8232_v0  ;;  %v7641_v0 = vld [vmem:[#allocation5 + $0x62c] ss:$16 sps:$4 sm:$0xff]  }
 0x1f6   :  { %5577 = vmatpush1.bf16.msra.mxu0 %v7618_v51  ;;  %v8400_v51 = vpop.f32.mrf.mxu1 }
 0x1f7   :  { %5630 = vmatpush1.bf16.msra.mxu1 %v7621_v52  ;;  %5578 = vmatprep.subr.bf16.mxu0 %v7626_v43  ;;  %v8402_v52 = vpop.f32.mrf.mxu0  ;;  %v7636_v43 = vld [vmem:[#allocation5 + $0x428] ss:$16 sps:$4 sm:$0xff]  }
 0x1f8   :  { %5631 = vmatprep.subr.bf16.mxu1 %v7629_v55  ;;  %v7639_v55 = vld [vmem:[#allocation5 + $0x628] ss:$16 sps:$4 sm:$0xff]   ;;  %v8404_v11 = vpop.f32.mrf.mxu1 }
 0x1fa   :  { %5579 = vmatpush1.bf16.msra.mxu0 %v7624_v5  ;;  %v8406_v5 = vpop.f32.mrf.mxu0 }
 0x1fb   :  { %5632 = vmatpush1.bf16.msra.mxu1 %v7627_v15  ;;  %5580 = vmatprep.subr.bf16.mxu0 %v7632_v49  ;;  %v7642_v15 = vld [vmem:[#allocation5 + $0x408] ss:$16 sps:$4 sm:$0xff]  }
 0x1fc   :  { %5633 = vmatprep.subr.bf16.mxu1 %v7635_v53  ;;  %v7645_v49 = vld [vmem:[#allocation5 + $0x608] ss:$16 sps:$4 sm:$0xff]   ;;  %v7650_v53 = vld [vmem:[#allocation5 + $0x5ec] ss:$16 sps:$4 sm:$0xff]  }
 0x1fe   :  { %5581 = vmatpush1.bf16.msra.mxu0 %v7630_v29  ;;  %v8408_v29 = vpop.f32.mrf.mxu1 }
 0x1ff   :  { %5634 = vmatpush1.bf16.msra.mxu1 %v7633_v30  ;;  %5582 = vmatprep.subr.bf16.mxu0 %v7638_v63  ;;  %v8410_v30 = vpop.f32.mrf.mxu0  ;;  %v7648_v63 = vld [vmem:[#allocation5 + $0x5e8] ss:$16 sps:$4 sm:$0xff]  }
 0x200   :  { %5635 = vmatprep.subr.bf16.mxu1 %v7641_v0  ;;  %v7651_v0 = vld [vmem:[#allocation5 + $0x7e8] ss:$16 sps:$4 sm:$0xff]   ;;  %v8412_v46 = vpop.f32.mrf.mxu1 }
 0x201   :  { %v8414_v36 = vpop.f32.mrf.mxu0 }
 0x202   :  { %5583 = vmatpush1.bf16.msra.mxu0 %v7636_v43  ;;  %v7656_v43 = vld [vmem:[#allocation5 + $0x5cc] ss:$16 sps:$4 sm:$0xff]   ;;  %v8416_v27 = vpop.f32.mrf.mxu1 }
 0x203   :  { %5636 = vmatpush1.bf16.msra.mxu1 %v7639_v55  ;;  %5584 = vmatprep.subr.bf16.mxu0 %v7644_v18  ;;  %v7659_v55 = vld [vmem:[#allocation5 + $0x7cc] ss:$16 sps:$4 sm:$0xff]   ;;  %v7654_v18 = vld [vmem:[#allocation5 + $0x5c8] ss:$16 sps:$4 sm:$0xff]   ;;  %v8418_v26 = vpop.f32.mrf.mxu0 }
 0x204   :  { %5637 = vmatprep.subr.bf16.mxu1 %v7647_v28  ;;  %v7657_v28 = vld [vmem:[#allocation5 + $0x7c8] ss:$16 sps:$4 sm:$0xff]   ;;  %v8420_v25 = vpop.f32.mrf.mxu1 }
 0x205   :  { %v8422_v24 = vpop.f32.mrf.mxu0 }
 0x206   :  { %5585 = vmatpush1.bf16.msra.mxu0 %v7642_v15  ;;  %v7662_v15 = vld [vmem:[#allocation5 + $0x5ac] ss:$16 sps:$4 sm:$0xff]   ;;  %v8424_v17 = vpop.f32.mrf.mxu1 }
 0x207   :  { %5638 = vmatpush1.bf16.msra.mxu1 %v7645_v49  ;;  %5586 = vmatprep.subr.bf16.mxu0 %v7650_v53  ;;  %v7665_v49 = vld [vmem:[#allocation5 + $0x7ac] ss:$16 sps:$4 sm:$0xff]   ;;  %v7660_v53 = vld [vmem:[#allocation5 + $0x5a8] ss:$16 sps:$4 sm:$0xff]   ;;  %8929 = vst [vmem:[#allocation42_spill] sm:$0xff] %v8424_v17  ;;  %v8426_v16 = vpop.f32.mrf.mxu0 }
 0x208   :  { %5639 = vmatprep.subr.bf16.mxu1 %v7653_v10  ;;  %v7663_v10 = vld [vmem:[#allocation5 + $0x7a8] ss:$16 sps:$4 sm:$0xff]   ;;  %v8428_v1 = vpop.f32.mrf.mxu1 }
 0x209   :  { %v8430_v56 = vpop.f32.mrf.mxu0 }
 0x20a   :  { %5587 = vmatpush2.bf16.msra.mxu0 %v7648_v63  ;;  %v7668_v63 = vld [vmem:[#allocation5 + $0x58c] ss:$16 sps:$4 sm:$0xff]   ;;  %v8432_v40 = vpop.f32.mrf.mxu1 }
 0x20b   :  { %5640 = vmatpush2.bf16.msra.mxu1 %v7651_v0  ;;  %5588 = vmatprep.subr.bf16.mxu0 %v7656_v43  ;;  %v7671_v0 = vld [vmem:[#allocation5 + $0x78c] ss:$16 sps:$4 sm:$0xff]   ;;  %v7666_v43 = vld [vmem:[#allocation5 + $0x588] ss:$16 sps:$4 sm:$0xff]   ;;  %v8434_v39 = vpop.f32.mrf.mxu0 }
 0x20c   :  { %5641 = vmatprep.subr.bf16.mxu1 %v7659_v55  ;;  %v7669_v55 = vld [vmem:[#allocation5 + $0x788] ss:$16 sps:$4 sm:$0xff]   ;;  %v8436_v9 = vpop.f32.mrf.mxu1 }
 0x20d   :  { %v8438_v8 = vpop.f32.mrf.mxu0 }
 0x20e   :  { %5589 = vmatpush2.bf16.msra.mxu0 %v7654_v18  ;;  %v7674_v18 = vld [vmem:[#allocation5 + $0x56c] ss:$16 sps:$4 sm:$0xff]   ;;  %v8440_v60 = vpop.f32.mrf.mxu1 }
 0x20f   :  { %5642 = vmatpush2.bf16.msra.mxu1 %v7657_v28  ;;  %5590 = vmatprep.subr.bf16.mxu0 %v7662_v15  ;;  %v7677_v28 = vld [vmem:[#allocation5 + $0x76c] ss:$16 sps:$4 sm:$0xff]   ;;  %v7672_v15 = vld [vmem:[#allocation5 + $0x568] ss:$16 sps:$4 sm:$0xff]   ;;  %v8442_v59 = vpop.f32.mrf.mxu0 }
 0x210   :  { %5643 = vmatprep.subr.bf16.mxu1 %v7665_v49  ;;  %v7675_v49 = vld [vmem:[#allocation5 + $0x768] ss:$16 sps:$4 sm:$0xff]   ;;  %v8444_v44 = vpop.f32.mrf.mxu1 }
 0x211   :  { %8930 = vst [vmem:[#allocation43_spill] sm:$0xff] %v8444_v44  ;;  %v8446_v41 = vpop.f32.mrf.mxu0  ;;  %v7750_v44 = vld [vmem:[#allocation5 + $0x9c8] ss:$16 sps:$4 sm:$0xff]  }
 0x212   :  { %5591 = vmatpush2.bf16.msra.mxu0 %v7660_v53  ;;  %v7680_v53 = vld [vmem:[#allocation5 + $0x54c] ss:$16 sps:$4 sm:$0xff]   ;;  %8931 = vst [vmem:[#allocation44_spill] sm:$0xff] %v8446_v41  ;;  %v8448_v33 = vpop.f32.mrf.mxu1 }
 0x213   :  { %5644 = vmatpush2.bf16.msra.mxu1 %v7663_v10  ;;  %5592 = vmatprep.subr.bf16.mxu0 %v7668_v63  ;;  %v7683_v10 = vld [vmem:[#allocation5 + $0x74c] ss:$16 sps:$4 sm:$0xff]   ;;  %v7678_v63 = vld [vmem:[#allocation5 + $0x548] ss:$16 sps:$4 sm:$0xff]   ;;  %8932 = vst [vmem:[#allocation45_spill] sm:$0xff] %v8448_v33 }
 0x214   :  { %5645 = vmatprep.subr.bf16.mxu1 %v7671_v0  ;;  %v7681_v0 = vld [vmem:[#allocation5 + $0x748] ss:$16 sps:$4 sm:$0xff]   ;;  %v7713_v33 = vld [vmem:[#allocation5 + $0xaac] ss:$16 sps:$4 sm:$0xff]  }
 0x216   :  { %5593 = vmatpush2.bf16.msra.mxu0 %v7666_v43  ;;  %v7686_v43 = vld [vmem:[#allocation5 + $0x52c] ss:$16 sps:$4 sm:$0xff]  }
 0x217   :  { %5646 = vmatpush2.bf16.msra.mxu1 %v7669_v55  ;;  %5594 = vmatprep.subr.bf16.mxu0 %v7674_v18  ;;  %v7689_v55 = vld [vmem:[#allocation5 + $0x72c] ss:$16 sps:$4 sm:$0xff]   ;;  %v7684_v18 = vld [vmem:[#allocation5 + $0x528] ss:$16 sps:$4 sm:$0xff]  }
 0x218   :  { %5647 = vmatprep.subr.bf16.mxu1 %v7677_v28  ;;  %v7687_v28 = vld [vmem:[#allocation5 + $0x728] ss:$16 sps:$4 sm:$0xff]  }
 0x21a   :  { %5595 = vmatpush2.bf16.msra.mxu0 %v7672_v15  ;;  %v7692_v15 = vld [vmem:[#allocation5 + $0x50c] ss:$16 sps:$4 sm:$0xff]  }
 0x21b   :  { %5648 = vmatpush2.bf16.msra.mxu1 %v7675_v49  ;;  %5596 = vmatprep.subr.bf16.mxu0 %v7680_v53  ;;  %v7695_v49 = vld [vmem:[#allocation5 + $0x70c] ss:$16 sps:$4 sm:$0xff]   ;;  %v7690_v53 = vld [vmem:[#allocation5 + $0x508] ss:$16 sps:$4 sm:$0xff]  }
 0x21c   :  { %5649 = vmatprep.subr.bf16.mxu1 %v7683_v10  ;;  %v7693_v10 = vld [vmem:[#allocation5 + $0x708] ss:$16 sps:$4 sm:$0xff]  }
 0x21e   :  { %5597 = vmatpush2.bf16.msra.mxu0 %v7678_v63  ;;  %v7698_v63 = vld [vmem:[#allocation5 + $0x8ec] ss:$16 sps:$4 sm:$0xff]  }
 0x21f   :  { %5650 = vmatpush2.bf16.msra.mxu1 %v7681_v0  ;;  %5598 = vmatprep.subr.bf16.mxu0 %v7686_v43  ;;  %v7701_v0 = vld [vmem:[#allocation5 + $0xaec] ss:$16 sps:$4 sm:$0xff]   ;;  %v7696_v43 = vld [vmem:[#allocation5 + $0x8e8] ss:$16 sps:$4 sm:$0xff]  }
 0x220   :  { %5651 = vmatprep.subr.bf16.mxu1 %v7689_v55  ;;  %v7699_v55 = vld [vmem:[#allocation5 + $0xae8] ss:$16 sps:$4 sm:$0xff]  }
 0x222   :  { %5599 = vmatpush2.bf16.msra.mxu0 %v7684_v18  ;;  %v7704_v18 = vld [vmem:[#allocation5 + $0x8cc] ss:$16 sps:$4 sm:$0xff]  }
 0x223   :  { %5652 = vmatpush2.bf16.msra.mxu1 %v7687_v28  ;;  %5600 = vmatprep.subr.bf16.mxu0 %v7692_v15  ;;  %v7707_v28 = vld [vmem:[#allocation5 + $0xacc] ss:$16 sps:$4 sm:$0xff]   ;;  %v7702_v15 = vld [vmem:[#allocation5 + $0x8c8] ss:$16 sps:$4 sm:$0xff]  }
 0x224   :  { %5653 = vmatprep.subr.bf16.mxu1 %v7695_v49  ;;  %v7705_v49 = vld [vmem:[#allocation5 + $0xac8] ss:$16 sps:$4 sm:$0xff]  }
 0x226   :  { %5601 = vmatpush2.bf16.msra.mxu0 %v7690_v53  ;;  %v8452_v53 = vpop.f32.mrf.mxu0 }
 0x227   :  { %5654 = vmatpush2.bf16.msra.mxu1 %v7693_v10  ;;  %5676 = vmatprep.subr.bf16.mxu0 %v7698_v63  ;;  %8933 = vst [vmem:[#allocation46_spill] sm:$0xff] %v8452_v53  ;;  %v8454_v10 = vpop.f32.mrf.mxu1 }
 0x228   :  { %5729 = vmatprep.subr.bf16.mxu1 %v7701_v0  ;;  %8934 = vst [vmem:[#allocation47_spill] sm:$0xff] %v8454_v10  ;;  %v8458_v63 = vpop.f32.mrf.mxu0  ;;  %v7737_v10 = vld [vmem:[#allocation5 + $0xa2c] ss:$16 sps:$4 sm:$0xff]  }
 0x229   :  { %5603 = vmatmul.mubr.bf16.vlgmr.msra.gmra.mxu0 %v8236_v47  ;;  %v7708_v47 = vld [vmem:[#allocation5 + $0x8a8] ss:$16 sps:$4 sm:$0xff]   ;;  %v8460_v0 = vpop.f32.mrf.mxu1 }
 0x22a   :  { %5656 = vmatmul.mubr.bf16.vlgmr.msra.gmra.mxu1 %v8238_v48  ;;  %5677 = vmatpush1.bf16.msra.mxu0 %v7696_v43  ;;  %v7711_v48 = vld [vmem:[#allocation5 + $0xaa8] ss:$16 sps:$4 sm:$0xff]   ;;  %8935 = vst [vmem:[#allocation48_spill] sm:$0xff] %v8460_v0  ;;  %v7716_v43 = vld [vmem:[#allocation5 + $0x88c] ss:$16 sps:$4 sm:$0xff]  }
 0x22b   :  { %5730 = vmatpush1.bf16.msra.mxu1 %v7699_v55  ;;  %5678 = vmatprep.subr.bf16.mxu0 %v7704_v18  ;;  %v7719_v55 = vld [vmem:[#allocation5 + $0xa8c] ss:$16 sps:$4 sm:$0xff]   ;;  %v8462_v18 = vpop.f32.mrf.mxu1 }
 0x22c   :  { %5731 = vmatprep.subr.bf16.mxu1 %v7707_v28  ;;  %5612 = vmatprep.mubr.bf16.mxu0 %v8240_v58  ;;  %v8464_v28 = vpop.f32.mrf.mxu0  ;;  %v7714_v58 = vld [vmem:[#allocation5 + $0x888] ss:$16 sps:$4 sm:$0xff]   ;;  %v7734_v0 = vld [vmem:[#allocation5 + $0x82c] ss:$16 sps:$4 sm:$0xff]  }
 0x22d   :  { %5665 = vmatprep.mubr.bf16.mxu1 %v8242_v61  ;;  %v7717_v61 = vld [vmem:[#allocation5 + $0xa88] ss:$16 sps:$4 sm:$0xff]  }
 0x22e   :  { %5679 = vmatpush1.bf16.msra.mxu0 %v7702_v15  ;;  %v7722_v15 = vld [vmem:[#allocation5 + $0x86c] ss:$16 sps:$4 sm:$0xff]  }
 0x22f   :  { %5732 = vmatpush1.bf16.msra.mxu1 %v7705_v49  ;;  %5680 = vmatprep.subr.bf16.mxu0 %v7710_v32  ;;  %v7725_v49 = vld [vmem:[#allocation5 + $0xa6c] ss:$16 sps:$4 sm:$0xff]   ;;  %v8470_v32 = vpop.f32.mrf.mxu1 }
 0x230   :  { %5733 = vmatprep.subr.bf16.mxu1 %v7713_v33  ;;  %8936 = vst [vmem:[#allocation49_spill] sm:$0xff] %v8470_v32  ;;  %v8472_v33 = vpop.f32.mrf.mxu0 }
 0x231   :  { %5613 = vmatmul.mubr.bf16.gmra.mxu0 %v8248_v4  ;;  %v7720_v4 = vld [vmem:[#allocation5 + $0x868] ss:$16 sps:$4 sm:$0xff]  }
 0x232   :  { %5666 = vmatmul.mubr.bf16.gmra.mxu1 %v8250_v7  ;;  %5681 = vmatpush1.bf16.msra.mxu0 %v7708_v47  ;;  %v7723_v7 = vld [vmem:[#allocation5 + $0xa68] ss:$16 sps:$4 sm:$0xff]   ;;  %v7728_v47 = vld [vmem:[#allocation5 + $0x84c] ss:$16 sps:$4 sm:$0xff]  }
 0x233   :  { %5734 = vmatpush1.bf16.msra.mxu1 %v7711_v48  ;;  %5682 = vmatprep.subr.bf16.mxu0 %v7716_v43  ;;  %v7731_v48 = vld [vmem:[#allocation5 + $0xa4c] ss:$16 sps:$4 sm:$0xff]   ;;  %v8474_v43 = vpop.f32.mrf.mxu1 }
 0x234   :  { %5735 = vmatprep.subr.bf16.mxu1 %v7719_v55  ;;  %5708 = vmatprep.mubr.bf16.mxu0 %v8254_v19  ;;  %8937 = vst [vmem:[#allocation50_spill] sm:$0xff] %v8474_v43  ;;  %v8476_v55 = vpop.f32.mrf.mxu0  ;;  %v7726_v19 = vld [vmem:[#allocation5 + $0x848] ss:$16 sps:$4 sm:$0xff]  }
 0x235   :  { %5761 = vmatprep.mubr.bf16.mxu1 %v8256_v20  ;;  %8938 = vst [vmem:[#allocation51_spill] sm:$0xff] %v8476_v55  ;;  %v7729_v20 = vld [vmem:[#allocation5 + $0xa48] ss:$16 sps:$4 sm:$0xff]  }
 0x236   :  { %5683 = vmatpush1.bf16.msra.mxu0 %v7714_v58  ;;  %v968_v58 = vlaneseq  ;;  %v8480_v53 = vpop.f32.mrf.mxu0 }
 0x237   :  { %5736 = vmatpush1.bf16.msra.mxu1 %v7717_v61  ;;  %5684 = vmatprep.subr.bf16.mxu0 %v7722_v15  ;;  %v8478_v61 = vpop.f32.mrf.mxu1  ;;  %8940 = vst [vmem:[#allocation53_spill] sm:$0xff] %v8480_v53  ;;  %v7732_v15 = vld [vmem:[#allocation5 + $0x828] ss:$16 sps:$4 sm:$0xff]  }
 0x238   :  { %5737 = vmatprep.subr.bf16.mxu1 %v7725_v49  ;;  %8939 = vst [vmem:[#allocation52_spill] sm:$0xff] %v8478_v61  ;;  %v7735_v49 = vld [vmem:[#allocation5 + $0xa28] ss:$16 sps:$4 sm:$0xff]   ;;  %v8484_v55 = vshrl.u32 %v968_v58, 7 }
 0x239   :  { %v8482_v43 = vpop.f32.mrf.mxu1  ;;  %v7741_v61 = vld [vmem:[#allocation5 + $0xa08] ss:$16 sps:$4 sm:$0xff]  }
 0x23a   :  { %5685 = vmatpush1.bf16.msra.mxu0 %v7720_v4  ;;  %8941 = vst [vmem:[#allocation54_spill] sm:$0xff] %v8482_v43  ;;  %v7740_v4 = vld [vmem:[#allocation5 + $0x80c] ss:$16 sps:$4 sm:$0xff]   ;;  %8942 = vst [vmem:[#allocation55_spill] sm:$0xff] %v8484_v55  ;;  %v970_v43 = vsub.s32 0, %v8484_v55  ;;  %v974_v58 = vsub.s32 1, %v8484_v55 }
 0x23b   :  { %5738 = vmatpush1.bf16.msra.mxu1 %v7723_v7  ;;  %5686 = vmatprep.subr.bf16.mxu0 %v7728_v47  ;;  %v7743_v7 = vld [vmem:[#allocation5 + $0xa0c] ss:$16 sps:$4 sm:$0xff]   ;;  %v8486_v47 = vpop.f32.mrf.mxu0  ;;  %v8488_v32 = vpop.f32.mrf.mxu1 }
 0x23c   :  { %5739 = vmatprep.subr.bf16.mxu1 %v7731_v48  ;;  %8943 = vst [vmem:[#allocation56_spill] sm:$0xff] %v8486_v47  ;;  %v7738_v48 = vld [vmem:[#allocation5 + $0x808] ss:$16 sps:$4 sm:$0xff]   ;;  %8944 = vst [vmem:[#allocation57_spill] sm:$0xff] %v8488_v32  ;;  %v7752_v32 = vld [vmem:[#allocation5 + $0x9cc] ss:$16 sps:$4 sm:$0xff]  }
 0x23d   :  { %v7744_v47 = vld [vmem:[#allocation5 + $0x9e8] ss:$16 sps:$4 sm:$0xff]   ;;  %v7761_v55 = vld [vmem:[#allocation5 + $0xbac] ss:$16 sps:$4 sm:$0xff]  }
 0x23e   :  { %5687 = vmatpush1.bf16.msra.mxu0 %v7726_v19  ;;  %v7746_v19 = vld [vmem:[#allocation5 + $0x9ec] ss:$16 sps:$4 sm:$0xff]  }
 0x23f   :  { %5740 = vmatpush1.bf16.msra.mxu1 %v7729_v20  ;;  %5688 = vmatprep.subr.bf16.mxu0 %v7734_v0  ;;  %v7749_v20 = vld [vmem:[#allocation5 + $0xbec] ss:$16 sps:$4 sm:$0xff]   ;;  %v966_v0 = vld [vmem:[#allocation7] sm:$0xf] }
 0x240   :  { %5741 = vmatprep.subr.bf16.mxu1 %v7737_v10  ;;  %v8491_v10 = vpop.f32.mrf.mxu0  ;;  %v975_v41 = vrot.slane %v966_v0, %v974_v58 }
 0x241   :  { %8945 = vst [vmem:[#allocation58_spill] sm:$0xff] %v8491_v10  ;;  %v7753_v10 = vld [vmem:[#allocation5 + $0xbc8] ss:$16 sps:$4 sm:$0xff]  }
 0x242   :  { %5689 = vmatpush1.bf16.msra.mxu0 %v7732_v15  ;;  %v7747_v15 = vld [vmem:[#allocation5 + $0xbe8] ss:$16 sps:$4 sm:$0xff]   ;;  %v8496_v53 = vpop.f32.mrf.mxu0 }
 0x243   :  { %5742 = vmatpush1.bf16.msra.mxu1 %v7735_v49  ;;  %5690 = vmatprep.subr.bf16.mxu0 %v7740_v4  ;;  %v8494_v49 = vpop.f32.mrf.mxu1  ;;  %v7755_v4 = vld [vmem:[#allocation5 + $0xbcc] ss:$16 sps:$4 sm:$0xff]   ;;  %8947 = vst [vmem:[#allocation60_spill] sm:$0xff] %v8496_v53  ;;  %v7765_v53 = vld [vmem:[#allocation5 + $0xb88] ss:$16 sps:$4 sm:$0xff]  }
 0x244   :  { %5743 = vmatprep.subr.bf16.mxu1 %v7743_v7  ;;  %8946 = vst [vmem:[#allocation59_spill] sm:$0xff] %v8494_v49  ;;  %v971_v7 = vrot.slane %v966_v0, %v970_v43  ;;  %v4865_v43 = vadd.f32 %v8354_v35, %v975_v41  ;;  %v7759_v0 = vld [vmem:[#allocation5 + $0xba8] ss:$16 sps:$4 sm:$0xff]   ;;  %v4869_v35 = vadd.f32 %v8362_v14, %v975_v41 }
 0x245   :  { %v8498_v17 = vpop.f32.mrf.mxu1  ;;  %v4875_v14 = vadd.f32 %v8368_v50, %v975_v41  ;;  %v7776_v50 = vld [vmem:[#allocation5 + $0x94c] ss:$16 sps:$4 sm:$0xff]  }
 0x246   :  { %5691 = vmatpush1.bf16.msra.mxu0 %v7738_v48  ;;  %8948 = vst [vmem:[#allocation61_spill] sm:$0xff] %v8498_v17  ;;  %v8500_v48 = vpop.f32.mrf.mxu0  ;;  %v7767_v17 = vld [vmem:[#allocation5 + $0xb8c] ss:$16 sps:$4 sm:$0xff]  }
 0x247   :  { %5744 = vmatpush1.bf16.msra.mxu1 %v7741_v61  ;;  %5692 = vmatprep.subr.bf16.mxu0 %v7746_v19  ;;  %v7758_v61 = vld [vmem:[#allocation5 + $0x9ac] ss:$16 sps:$4 sm:$0xff]   ;;  %v4863_v19 = vadd.f32 %v8352_v54, %v971_v7  ;;  %v4918_v54 = vadd.f32 %v8360_v3, %v4865_v43 }
 0x248   :  { %5745 = vmatprep.subr.bf16.mxu1 %v7749_v20  ;;  %v8503_v20 = vpop.f32.mrf.mxu1  ;;  %v8506_v58 = vpop.f32.mrf.mxu0 }
 0x249   :  { %v4971_v3 = vadd.f32 %v8392_v22, %v4918_v54  ;;  %v7779_v22 = vld [vmem:[#allocation5 + $0xb4c] ss:$16 sps:$4 sm:$0xff]  }
 0x24a   :  { %5693 = vmatpush2.bf16.msra.mxu0 %v7744_v47  ;;  %v7756_v47 = vld [vmem:[#allocation5 + $0x9a8] ss:$16 sps:$4 sm:$0xff]   ;;  %v8510_v49 = vpop.f32.mrf.mxu1 }
 0x24b   :  { %5746 = vmatpush2.bf16.msra.mxu1 %v7747_v15  ;;  %5694 = vmatprep.subr.bf16.mxu0 %v7752_v32  ;;  %v7764_v15 = vld [vmem:[#allocation5 + $0x98c] ss:$16 sps:$4 sm:$0xff]   ;;  %v4916_v32 = vadd.f32 %v8356_v21, %v4863_v19 }
 0x24c   :  { %5747 = vmatprep.subr.bf16.mxu1 %v7755_v4  ;;  %v4867_v4 = vadd.f32 %v8358_v57, %v971_v7  ;;  %v7770_v21 = vld [vmem:[#allocation5 + $0x96c] ss:$16 sps:$4 sm:$0xff]   ;;  %v8521_v43 = vpop.f32.mrf.mxu1 }
 0x24d   :  { %v7773_v57 = vld [vmem:[#allocation5 + $0xb6c] ss:$16 sps:$4 sm:$0xff]  }
 0x24e   :  { %5695 = vmatpush2.bf16.msra.mxu0 %v7750_v44  ;;  %v4969_v44 = vadd.f32 %v8384_v45, %v4916_v32  ;;  %v4920_v19 = vadd.f32 %v8366_v34, %v4867_v4  ;;  %v4922_v45 = vadd.f32 %v8370_v6, %v4869_v35  ;;  %v4877_v34 = vadd.f32 %v8376_v2, %v971_v7  ;;  %v8536_v54 = vpop.f32.mrf.mxu1  ;;  %v7774_v35 = vld [vmem:[#allocation5 + $0x948] ss:$16 sps:$4 sm:$0xff]  }
 0x24f   :  { %5748 = vmatpush2.bf16.msra.mxu1 %v7753_v10  ;;  %5696 = vmatprep.subr.bf16.mxu0 %v7758_v61  ;;  %v7762_v10 = vld [vmem:[#allocation5 + $0x988] ss:$16 sps:$4 sm:$0xff]   ;;  %v8516_v61 = vpop.f32.mrf.mxu0  ;;  %v5024_v6 = vadd.f32 %v8400_v51, %v4971_v3  ;;  %v4879_v4 = vadd.f32 %v8382_v13, %v975_v41  ;;  %v7782_v41 = vld [vmem:[#allocation5 + $0x92c] ss:$16 sps:$4 sm:$0xff]  }
 0x250   :  { %5749 = vmatprep.subr.bf16.mxu1 %v7761_v55  ;;  %v4873_v55 = vadd.f32 %v8364_v23, %v971_v7  ;;  %v4973_v23 = vadd.f32 %v8398_v38, %v4920_v19  ;;  %v7777_v51 = vld [vmem:[#allocation5 + $0xb48] ss:$16 sps:$4 sm:$0xff]   ;;  %v7785_v13 = vld [vmem:[#allocation5 + $0xb2c] ss:$16 sps:$4 sm:$0xff]  }
 0x251   :  { %v8528_v32 = vpop.f32.mrf.mxu0  ;;  %v5077_v7 = vadd.f32 %v8426_v16, %v5024_v6  ;;  %v7780_v19 = vld [vmem:[#allocation5 + $0x928] ss:$16 sps:$4 sm:$0xff]  }
 0x252   :  { %5697 = vmatpush2.bf16.msra.mxu0 %v7756_v47  ;;  %v5022_v47 = vadd.f32 %v8396_v31, %v4969_v44  ;;  %v4975_v31 = vadd.f32 %v8402_v52, %v4922_v45  ;;  %v5026_v2 = vadd.f32 %v8404_v11, %v4973_v23  ;;  %v4930_v52 = vadd.f32 %v8388_v37, %v4877_v34  ;;  %v7789_v23 = vld [vmem:[#allocation5 + $0xb08] ss:$16 sps:$4 sm:$0xff]  }
 0x253   :  { %5750 = vmatpush2.bf16.msra.mxu1 %v7759_v0  ;;  %5698 = vmatprep.subr.bf16.mxu0 %v7764_v15  ;;  %v7768_v0 = vld [vmem:[#allocation5 + $0x968] ss:$16 sps:$4 sm:$0xff]   ;;  %v4926_v15 = vadd.f32 %v8374_v62, %v4873_v55  ;;  %v8542_v44 = vpop.f32.mrf.mxu0  ;;  %v5130_v55 = vadd.f32 %v8432_v40, %v5077_v7  ;;  %v7788_v40 = vld [vmem:[#allocation5 + $0x90c] ss:$16 sps:$4 sm:$0xff]  }
 0x254   :  { %5751 = vmatprep.subr.bf16.mxu1 %v7767_v17  ;;  %v7771_v17 = vld [vmem:[#allocation5 + $0xb68] ss:$16 sps:$4 sm:$0xff]   ;;  %v5075_v38 = vadd.f32 %v8422_v24, %v5022_v47  ;;  %v5028_v11 = vadd.f32 %v8408_v29, %v4975_v31 }
 0x255   :  { %v4979_v62 = vadd.f32 %v8406_v5, %v4926_v15  ;;  %v5079_v5 = vadd.f32 %v8430_v56, %v5026_v2  ;;  %v7783_v29 = vld [vmem:[#allocation5 + $0xb28] ss:$16 sps:$4 sm:$0xff]   ;;  %v8558_v3 = vpop.f32.mrf.mxu0  ;;  %v8950_v15 = vld [vmem:[#allocation43_spill] sm:$0xff]  ;;  %v8956_v2 = vld [vmem:[#allocation53_spill] sm:$0xff] }
 0x256   :  { %5699 = vmatpush2.bf16.msra.mxu0 %v7762_v10  ;;  %v5128_v16 = vadd.f32 %v8428_v1, %v5075_v38  ;;  %v4932_v10 = vadd.f32 %v8394_v42, %v4879_v4  ;;  %v7786_v47 = vld [vmem:[#allocation5 + $0x908] ss:$16 sps:$4 sm:$0xff]   ;;  %v8954_v38 = vld [vmem:[#allocation45_spill] sm:$0xff] }
 0x257   :  { %5752 = vmatpush2.bf16.msra.mxu1 %v7765_v53  ;;  %5700 = vmatprep.subr.bf16.mxu0 %v7770_v21  ;;  %v4928_v53 = vadd.f32 %v8380_v12, %v4875_v14  ;;  %v8544_v12 = vpop.f32.mrf.mxu1  ;;  %v5032_v37 = vadd.f32 %v8412_v46, %v4979_v62  ;;  %v5081_v21 = vadd.f32 %v8434_v39, %v5028_v11  ;;  %v7791_v39 = vld [vmem:[#allocation5 + $0xb0c] ss:$16 sps:$4 sm:$0xff]   ;;  %v8951_v34 = vld [vmem:[#allocation44_spill] sm:$0xff]  ;;  %v8955_v4 = vld [vmem:[#allocation46_spill] sm:$0xff] }
 0x258   :  { %5753 = vmatprep.subr.bf16.mxu1 %v7773_v57  ;;  %v5181_v57 = vadd.f32 %v8458_v63, %v5128_v16  ;;  %v4985_v56 = vadd.f32 %v8418_v26, %v4932_v10  ;;  %v5183_v63 = vadd.f32 %v8464_v28, %v5130_v55  ;;  %v8959_v16 = vld [vmem:[#allocation56_spill] sm:$0xff] }
 0x259   :  { %v4981_v24 = vadd.f32 %v8410_v30, %v4928_v53  ;;  %v4983_v30 = vadd.f32 %v8414_v36, %v4930_v52  ;;  %v5085_v42 = vadd.f32 %v8438_v8, %v5032_v37  ;;  %v8560_v46 = vpop.f32.mrf.mxu1  ;;  %v5132_v36 = vadd.f32 %v8436_v9, %v5079_v5  ;;  %v7800_v37 = vld [vmem:[#allocation5 + $0xccc] ss:$16 sps:$4 sm:$0xff]   ;;  %v8960_v55 = vld [vmem:[#allocation52_spill] sm:$0xff] }
 0x25a   :  { %5701 = vmatpush2.bf16.msra.mxu0 %v7768_v0  ;;  %v5134_v26 = vadd.f32 %v8440_v60, %v5081_v21  ;;  %v5234_v8 = vadd.f32 %v8462_v18, %v5181_v57  ;;  %v8949_v0 = vld [vmem:[#allocation42_spill] sm:$0xff]  ;;  %v7797_v60 = vld [vmem:[#allocation5 + $0xeec] ss:$16 sps:$4 sm:$0xff]  }
 0x25b   :  { %5754 = vmatpush2.bf16.msra.mxu1 %v7771_v17  ;;  %5702 = vmatprep.subr.bf16.mxu0 %v7776_v50  ;;  %v5034_v1 = vadd.f32 %v8416_v27, %v4981_v24  ;;  %v5036_v14 = vadd.f32 %v8420_v25, %v4983_v30  ;;  %v5185_v45 = vadd.f32 %v8472_v33, %v5132_v36  ;;  %v8572_v50 = vpop.f32.mrf.mxu0  ;;  %v8574_v25 = vpop.f32.mrf.mxu1  ;;  %v8952_v18 = vld [vmem:[#allocation49_spill] sm:$0xff]  ;;  %v7792_v24 = vld [vmem:[#allocation5 + $0xce8] ss:$16 sps:$4 sm:$0xff]  }
 0x25c   :  { %5755 = vmatprep.subr.bf16.mxu1 %v7779_v22  ;;  %v5038_v17 = vadd.f32 %v8949_v0, %v4985_v56  ;;  %v5138_v9 = vadd.f32 %v8950_v15, %v5085_v42  ;;  %v5236_v33 = vadd.f32 %v8952_v18, %v5183_v63  ;;  %v8953_v22 = vld [vmem:[#allocation51_spill] sm:$0xff]  ;;  %v5287_v31 = vadd.f32 %v8500_v48, %v5234_v8  ;;  %v8963_v42 = vld [vmem:[#allocation58_spill] sm:$0xff]  ;;  %v8964_v63 = vld [vmem:[#allocation12_spill] sm:$0xff] }
 0x25d   :  { %v5087_v27 = vadd.f32 %v8442_v59, %v5034_v1  ;;  %v5089_v28 = vadd.f32 %v8951_v34, %v5036_v14  ;;  %v7794_v59 = vld [vmem:[#allocation5 + $0xcec] ss:$16 sps:$4 sm:$0xff]   ;;  %v5187_v6 = vadd.f32 %v8953_v22, %v5134_v26  ;;  %v8586_v10 = vpop.f32.mrf.mxu0  ;;  %v8588_v48 = vpop.f32.mrf.mxu1  ;;  %v8962_v1 = vld [vmem:[#allocation54_spill] sm:$0xff] }
 0x25e   :  { %5703 = vmatpush2.bf16.msra.mxu0 %v7774_v35  ;;  %v5091_v62 = vadd.f32 %v8955_v4, %v5038_v17  ;;  %v5191_v7 = vadd.f32 %v8956_v2, %v5138_v9  ;;  %v8957_v35 = vld [vmem:[#allocation50_spill] sm:$0xff]  ;;  %v5289_v52 = vadd.f32 %v8506_v58, %v5236_v33  ;;  %v7803_v30 = vld [vmem:[#allocation5 + $0xecc] ss:$16 sps:$4 sm:$0xff]   ;;  %v5340_v58 = vadd.f32 %v8503_v20, %v5287_v31 }
 0x25f   :  { %5756 = vmatpush2.bf16.msra.mxu1 %v7777_v51  ;;  %5704 = vmatprep.subr.bf16.mxu0 %v7782_v41  ;;  %v5140_v53 = vadd.f32 %v8954_v38, %v5087_v27  ;;  %v5238_v51 = vadd.f32 %v8957_v35, %v5185_v45  ;;  %v7795_v41 = vld [vmem:[#allocation5 + $0xee8] ss:$16 sps:$4 sm:$0xff]   ;;  %v5240_v21 = vadd.f32 %v8960_v55, %v5187_v6  ;;  %v8965_v14 = vld [vmem:[#allocation13_spill] sm:$0xff]  ;;  %v8969_v18 = vld [vmem:[#allocation15_spill] sm:$0xff] }
 0x260   :  { %5757 = vmatprep.subr.bf16.mxu1 %v7785_v13  ;;  %v8958_v13 = vld [vmem:[#allocation47_spill] sm:$0xff]  ;;  %v5244_v56 = vadd.f32 %v8962_v1, %v5191_v7  ;;  %v5342_v27 = vadd.f32 %v8510_v49, %v5289_v52  ;;  %v7798_v20 = vld [vmem:[#allocation5 + $0xcc8] ss:$16 sps:$4 sm:$0xff]   ;;  %v8966_v45 = vld [vmem:[#allocation57_spill] sm:$0xff] }
 0x261   :  { %v5142_v11 = vadd.f32 %v8958_v13, %v5089_v28  ;;  %v5193_v5 = vadd.f32 %v8959_v16, %v5140_v53  ;;  %v5291_v57 = vadd.f32 %v8516_v61, %v5238_v51  ;;  %v5293_v26 = vadd.f32 %v8528_v32, %v5240_v21  ;;  %v7801_v61 = vld [vmem:[#allocation5 + $0xec8] ss:$16 sps:$4 sm:$0xff]   ;;  %v7806_v34 = vld [vmem:[#allocation5 + $0xcac] ss:$16 sps:$4 sm:$0xff]  }
 0x262   :  { %5705 = vmatpush2.bf16.msra.mxu0 %v7780_v19  ;;  %v8961_v19 = vld [vmem:[#allocation48_spill] sm:$0xff]  ;;  %v5297_v17 = vadd.f32 %v8542_v44, %v5244_v56  ;;  %v7809_v28 = vld [vmem:[#allocation5 + $0xeac] ss:$16 sps:$4 sm:$0xff]  }
 0x263   :  { %5758 = vmatpush2.bf16.msra.mxu1 %v7783_v29  ;;  %5706 = vmatprep.subr.bf16.mxu0 %v7788_v40  ;;  %v5144_v29 = vadd.f32 %v8961_v19, %v5091_v62  ;;  %v5195_v40 = vadd.f32 %v8963_v42, %v5142_v11  ;;  %v5344_v49 = vadd.f32 %v8521_v43, %v5291_v57  ;;  %v8970_v33 = vld [vmem:[#allocation59_spill] sm:$0xff]  ;;  %v7804_v43 = vld [vmem:[#allocation5 + $0xca8] ss:$16 sps:$4 sm:$0xff]   ;;  %v8971_v7 = vld [vmem:[#allocation61_spill] sm:$0xff] }
 0x264   :  { %5759 = vmatprep.subr.bf16.mxu1 %v7791_v39  ;;  %v5346_v38 = vadd.f32 %v8536_v54, %v5293_v26  ;;  %v7807_v2 = vld [vmem:[#allocation5 + $0xea8] ss:$16 sps:$4 sm:$0xff]   ;;  %v5350_v51 = vadd.f32 %v8544_v12, %v5297_v17  ;;  %v8973_v21 = vld [vmem:[#allocation17_spill] sm:$0xff] }
 0x265   :  { %v5248_v22 = vadd.f32 %v8970_v33, %v5195_v40  ;;  %v7821_v42 = vld [vmem:[#allocation5 + $0xe6c] ss:$16 sps:$4 sm:$0xff]  }
 0x266   :  { %5707 = vmatpush2.bf16.msra.mxu0 %v7786_v47  ;;  %v5246_v47 = vadd.f32 %v8966_v45, %v5193_v5  ;;  %v7824_v17 = vld [vmem:[#allocation5 + $0xc4c] ss:$16 sps:$4 sm:$0xff]  }
 0x267   :  { %5760 = vmatpush2.bf16.msra.mxu1 %v7789_v23  ;;  %5782 = vmatprep.subr.bf16.mxu0 %v7794_v59  ;;  %v8967_v23 = vld [vmem:[#allocation60_spill] sm:$0xff]  ;;  %v5301_v13 = vadd.f32 %v8572_v50, %v5248_v22 }
 0x268   :  { %5835 = vmatprep.subr.bf16.mxu1 %v7797_v60  ;;  %v5197_v0 = vadd.f32 %v8967_v23, %v5144_v29  ;;  %v8968_v60 = vld [vmem:[#allocation14_spill] sm:$0xff]  ;;  %v5299_v6 = vadd.f32 %v8558_v3, %v5246_v47  ;;  %v7812_v3 = vld [vmem:[#allocation5 + $0xc8c] ss:$16 sps:$4 sm:$0xff]  }
 0x269   :  { %v5392_v39 = vpop.f32.mrf.mxu0  ;;  %5709 = vmatmul.mubr.bf16.vlgmr.msra.gmra.mxu0 %v8964_v63  ;;  %v7810_v50 = vld [vmem:[#allocation5 + $0xc88] ss:$16 sps:$4 sm:$0xff]   ;;  %v5354_v40 = vadd.f32 %v8574_v25, %v5301_v13 }
 0x26a   :  { %v5445_v36 = vpop.f32.mrf.mxu1  ;;  %5762 = vmatmul.mubr.bf16.vlgmr.msra.gmra.mxu1 %v8965_v14  ;;  %v5393_v8 = vadd.f32 %v5392_v39, %v5340_v58  ;;  %5783 = vmatpush1.bf16.msra.mxu0 %v7792_v24  ;;  %v5250_v35 = vadd.f32 %v8971_v7, %v5197_v0  ;;  %v5352_v5 = vadd.f32 %v8560_v46, %v5299_v6  ;;  %v7813_v29 = vld [vmem:[#allocation5 + $0xe88] ss:$16 sps:$4 sm:$0xff]   ;;  %v7818_v46 = vld [vmem:[#allocation5 + $0xc6c] ss:$16 sps:$4 sm:$0xff]  }
 0x26b   :  { %5836 = vmatpush1.bf16.msra.mxu1 %v7795_v41  ;;  %v5394_v15 = vpop.f32.mrf.mxu0  ;;  %5784 = vmatprep.subr.bf16.mxu0 %v7800_v37  ;;  %v7815_v41 = vld [vmem:[#allocation5 + $0xe8c] ss:$16 sps:$4 sm:$0xff]   ;;  %v8974_v63 = vld [vmem:[#allocation18_spill] sm:$0xff] }
 0x26c   :  { %v5447_v9 = vpop.f32.mrf.mxu1  ;;  %5837 = vmatprep.subr.bf16.mxu1 %v7803_v30  ;;  %v5446_v32 = vadd.f32 %v5445_v36, %v5393_v8  ;;  %v5395_v59 = vadd.f32 %v5394_v15, %v5342_v27  ;;  %5718 = vmatprep.mubr.bf16.mxu0 %v8968_v60  ;;  %v8972_v30 = vld [vmem:[#allocation16_spill] sm:$0xff]  ;;  %v5303_v12 = vadd.f32 %v8586_v10, %v5250_v35  ;;  %v8975_v14 = vld [vmem:[#allocation19_spill] sm:$0xff] }
 0x26d   :  { %5771 = vmatprep.mubr.bf16.mxu1 %v8969_v18  ;;  %v5396_v31 = vpop.f32.mrf.mxu0  ;;  %v7816_v47 = vld [vmem:[#allocation5 + $0xc68] ss:$16 sps:$4 sm:$0xff]   ;;  %v7827_v15 = vld [vmem:[#allocation5 + $0xe4c] ss:$16 sps:$4 sm:$0xff]  }
 0x26e   :  { %v5449_v44 = vpop.f32.mrf.mxu1  ;;  %v6100_v53 = vmax.f32 %v5446_v32, 0.0  ;;  %v5448_v4 = vadd.f32 %v5447_v9, %v5395_v59  ;;  %v5397_v62 = vadd.f32 %v5396_v31, %v5344_v49  ;;  %5785 = vmatpush1.bf16.msra.mxu0 %v7798_v20  ;;  %v5356_v8 = vadd.f32 %v8588_v48, %v5303_v12  ;;  %v7819_v25 = vld [vmem:[#allocation5 + $0xe68] ss:$16 sps:$4 sm:$0xff]   ;;  %v7830_v60 = vld [vmem:[#allocation5 + $0xc2c] ss:$16 sps:$4 sm:$0xff]  }
 0x26f   :  { %5838 = vmatpush1.bf16.msra.mxu1 %v7801_v61  ;;  %v5398_v52 = vpop.f32.mrf.mxu0  ;;  %5786 = vmatprep.subr.bf16.mxu0 %v7806_v34  ;;  %v7822_v32 = vld [vmem:[#allocation5 + $0xc48] ss:$16 sps:$4 sm:$0xff]   ;;  %v7833_v18 = vld [vmem:[#allocation5 + $0xe2c] ss:$16 sps:$4 sm:$0xff]  }
 0x270   :  { %v5451_v24 = vpop.f32.mrf.mxu1  ;;  %5839 = vmatprep.subr.bf16.mxu1 %v7809_v28  ;;  %6116 = vst [vmem:[#allocation8] sm:$0xff] %v6100_v53  ;;  %v6101_v54 = vmax.f32 %v5448_v4, 0.0  ;;  %v5450_v11 = vadd.f32 %v5449_v44, %v5397_v62  ;;  %v5399_v16 = vadd.f32 %v5398_v52, %v5346_v38  ;;  %v7825_v59 = vld [vmem:[#allocation5 + $0xe48] ss:$16 sps:$4 sm:$0xff]   ;;  %v7836_v31 = vld [vmem:[#allocation5 + $0xc0c] ss:$16 sps:$4 sm:$0xff]  }
 0x271   :  { %v5402_v37 = vpop.f32.mrf.mxu0  ;;  %5719 = vmatmul.mubr.bf16.gmra.mxu0 %v8972_v30  ;;  %v7828_v22 = vld [vmem:[#allocation5 + $0xc28] ss:$16 sps:$4 sm:$0xff]   ;;  %v7839_v44 = vld [vmem:[#allocation5 + $0xe0c] ss:$16 sps:$4 sm:$0xff]  }
 0x272   :  { %v5455_v55 = vpop.f32.mrf.mxu1  ;;  %5772 = vmatmul.mubr.bf16.gmra.mxu1 %v8973_v21  ;;  %6117 = vst [vmem:[#allocation8 + $0x8] sm:$0xff] %v6101_v54  ;;  %v6104_v58 = vmax.f32 %v5450_v11, 0.0  ;;  %v5452_v57 = vadd.f32 %v5451_v24, %v5399_v16  ;;  %v5403_v19 = vadd.f32 %v5402_v37, %v5350_v51  ;;  %5787 = vmatpush1.bf16.msra.mxu0 %v7804_v43  ;;  %v7831_v6 = vld [vmem:[#allocation5 + $0xe28] ss:$16 sps:$4 sm:$0xff]   ;;  %v7842_v4 = vld [vmem:[#allocation5 + $0xdec] ss:$16 sps:$4 sm:$0xff]  }
 0x273   :  { %5840 = vmatpush1.bf16.msra.mxu1 %v7807_v2  ;;  %v5404_v1 = vpop.f32.mrf.mxu0  ;;  %5788 = vmatprep.subr.bf16.mxu0 %v7812_v3  ;;  %v7834_v38 = vld [vmem:[#allocation5 + $0xc08] ss:$16 sps:$4 sm:$0xff]   ;;  %v7845_v62 = vld [vmem:[#allocation5 + $0xfec] ss:$16 sps:$4 sm:$0xff]  }
 0x274   :  { %v5457_v56 = vpop.f32.mrf.mxu1  ;;  %5841 = vmatprep.subr.bf16.mxu1 %v7815_v41  ;;  %6120 = vst [vmem:[#allocation8 + $0x20] sm:$0xff] %v6104_v58  ;;  %v6105_v39 = vmax.f32 %v5452_v57, 0.0  ;;  %v5405_v36 = vadd.f32 %v5404_v1, %v5352_v5  ;;  %v5456_v10 = vadd.f32 %v5455_v55, %v5403_v19  ;;  %5814 = vmatprep.mubr.bf16.mxu0 %v8974_v63  ;;  %v7837_v53 = vld [vmem:[#allocation5 + $0xe08] ss:$16 sps:$4 sm:$0xff]   ;;  %v7848_v7 = vld [vmem:[#allocation5 + $0xdcc] ss:$16 sps:$4 sm:$0xff]  }
 0x275   :  { %5867 = vmatprep.mubr.bf16.mxu1 %v8975_v14  ;;  %v5406_v27 = vpop.f32.mrf.mxu0  ;;  %v7840_v43 = vld [vmem:[#allocation5 + $0xde8] ss:$16 sps:$4 sm:$0xff]   ;;  %v7851_v35 = vld [vmem:[#allocation5 + $0xfcc] ss:$16 sps:$4 sm:$0xff]  }
 0x276   :  { %v5459_v26 = vpop.f32.mrf.mxu1  ;;  %6121 = vst [vmem:[#allocation8 + $0x28] sm:$0xff] %v6105_v39  ;;  %v6108_v20 = vmax.f32 %v5456_v10, 0.0  ;;  %v5407_v61 = vadd.f32 %v5406_v27, %v5354_v40  ;;  %v5458_v45 = vadd.f32 %v5457_v56, %v5405_v36  ;;  %5789 = vmatpush1.bf16.msra.mxu0 %v7810_v50  ;;  %v7843_v2 = vld [vmem:[#allocation5 + $0xfe8] ss:$16 sps:$4 sm:$0xff]   ;;  %v7854_v24 = vld [vmem:[#allocation5 + $0xdac] ss:$16 sps:$4 sm:$0xff]  }
 0x277   :  { %5842 = vmatpush1.bf16.msra.mxu1 %v7813_v29  ;;  %v5408_v23 = vpop.f32.mrf.mxu0  ;;  %5790 = vmatprep.subr.bf16.mxu0 %v7818_v46  ;;  %v7846_v51 = vld [vmem:[#allocation5 + $0xdc8] ss:$16 sps:$4 sm:$0xff]   ;;  %v7857_v3 = vld [vmem:[#allocation5 + $0xfac] ss:$16 sps:$4 sm:$0xff]  }
 0x278   :  { %v5461_v0 = vpop.f32.mrf.mxu1  ;;  %5843 = vmatprep.subr.bf16.mxu1 %v7821_v42  ;;  %6124 = vst [vmem:[#allocation8 + $0x40] sm:$0xff] %v6108_v20  ;;  %v6109_v9 = vmax.f32 %v5458_v45, 0.0  ;;  %v5409_v34 = vadd.f32 %v5408_v23, %v5356_v8  ;;  %v5460_v28 = vadd.f32 %v5459_v26, %v5407_v61  ;;  %v7849_v52 = vld [vmem:[#allocation5 + $0xfc8] ss:$16 sps:$4 sm:$0xff]   ;;  %v7860_v54 = vld [vmem:[#allocation5 + $0xd8c] ss:$16 sps:$4 sm:$0xff]  }
 0x279   :  { %v7852_v41 = vld [vmem:[#allocation5 + $0xda8] ss:$16 sps:$4 sm:$0xff]   ;;  %v7863_v11 = vld [vmem:[#allocation5 + $0xf8c] ss:$16 sps:$4 sm:$0xff]  }
 0x27a   :  { %6125 = vst [vmem:[#allocation8 + $0x48] sm:$0xff] %v6109_v9  ;;  %v6112_v48 = vmax.f32 %v5460_v28, 0.0  ;;  %v5462_v49 = vadd.f32 %v5461_v0, %v5409_v34  ;;  %5791 = vmatpush1.bf16.msra.mxu0 %v7816_v47  ;;  %v7855_v13 = vld [vmem:[#allocation5 + $0xfa8] ss:$16 sps:$4 sm:$0xff]   ;;  %v7866_v37 = vld [vmem:[#allocation5 + $0xd6c] ss:$16 sps:$4 sm:$0xff]  }
 0x27b   :  { %5844 = vmatpush1.bf16.msra.mxu1 %v7819_v25  ;;  %5792 = vmatprep.subr.bf16.mxu0 %v7824_v17  ;;  %v7858_v16 = vld [vmem:[#allocation5 + $0xd88] ss:$16 sps:$4 sm:$0xff]   ;;  %v7869_v30 = vld [vmem:[#allocation5 + $0xf6c] ss:$16 sps:$4 sm:$0xff]  }
 0x27c   :  { %5845 = vmatprep.subr.bf16.mxu1 %v7827_v15  ;;  %6128 = vst [vmem:[#allocation8 + $0x60] sm:$0xff] %v6112_v48  ;;  %v6113_v33 = vmax.f32 %v5462_v49, 0.0  ;;  %v7861_v5 = vld [vmem:[#allocation5 + $0xf88] ss:$16 sps:$4 sm:$0xff]   ;;  %v7872_v12 = vld [vmem:[#allocation5 + $0xd4c] ss:$16 sps:$4 sm:$0xff]  }
 0x27d   :  { %v7864_v55 = vld [vmem:[#allocation5 + $0xd68] ss:$16 sps:$4 sm:$0xff]   ;;  %v7875_v58 = vld [vmem:[#allocation5 + $0xf4c] ss:$16 sps:$4 sm:$0xff]  }
 0x27e   :  { %6129 = vst [vmem:[#allocation8 + $0x68] sm:$0xff] %v6113_v33  ;;  %5793 = vmatpush1.bf16.msra.mxu0 %v7822_v32  ;;  %v7867_v21 = vld [vmem:[#allocation5 + $0xf68] ss:$16 sps:$4 sm:$0xff]   ;;  %v7878_v50 = vld [vmem:[#allocation5 + $0xd2c] ss:$16 sps:$4 sm:$0xff]  }
 0x27f   :  { %5846 = vmatpush1.bf16.msra.mxu1 %v7825_v59  ;;  %5794 = vmatprep.subr.bf16.mxu0 %v7830_v60  ;;  %v7870_v57 = vld [vmem:[#allocation5 + $0xd48] ss:$16 sps:$4 sm:$0xff]   ;;  %v7881_v29 = vld [vmem:[#allocation5 + $0xf2c] ss:$16 sps:$4 sm:$0xff]  }
 0x280   :  { %5847 = vmatprep.subr.bf16.mxu1 %v7833_v18  ;;  %v7873_v19 = vld [vmem:[#allocation5 + $0xf48] ss:$16 sps:$4 sm:$0xff]   ;;  %v7884_v46 = vld [vmem:[#allocation5 + $0xd0c] ss:$16 sps:$4 sm:$0xff]  }
 0x281   :  { %v7876_v1 = vld [vmem:[#allocation5 + $0xd28] ss:$16 sps:$4 sm:$0xff]   ;;  %v7887_v42 = vld [vmem:[#allocation5 + $0xf0c] ss:$16 sps:$4 sm:$0xff]  }
 0x282   :  { %5795 = vmatpush1.bf16.msra.mxu0 %v7828_v22  ;;  %v7879_v56 = vld [vmem:[#allocation5 + $0xf28] ss:$16 sps:$4 sm:$0xff]   ;;  %v7890_v36 = vld [vmem:[#allocation5 + $0x10ec] ss:$16 sps:$4 sm:$0xff]  }
 0x283   :  { %5848 = vmatpush1.bf16.msra.mxu1 %v7831_v6  ;;  %5796 = vmatprep.subr.bf16.mxu0 %v7836_v31  ;;  %v7882_v40 = vld [vmem:[#allocation5 + $0xd08] ss:$16 sps:$4 sm:$0xff]   ;;  %v7893_v10 = vld [vmem:[#allocation5 + $0x12ec] ss:$16 sps:$4 sm:$0xff]  }
 0x284   :  { %5849 = vmatprep.subr.bf16.mxu1 %v7839_v44  ;;  %v7885_v39 = vld [vmem:[#allocation5 + $0xf08] ss:$16 sps:$4 sm:$0xff]   ;;  %v7896_v27 = vld [vmem:[#allocation5 + $0x10cc] ss:$16 sps:$4 sm:$0xff]  }
 0x285   :  { %v7888_v63 = vld [vmem:[#allocation5 + $0x10e8] ss:$16 sps:$4 sm:$0xff]   ;;  %v7899_v26 = vld [vmem:[#allocation5 + $0x12cc] ss:$16 sps:$4 sm:$0xff]  }
 0x286   :  { %5797 = vmatpush1.bf16.msra.mxu0 %v7834_v38  ;;  %v7891_v14 = vld [vmem:[#allocation5 + $0x12e8] ss:$16 sps:$4 sm:$0xff]   ;;  %v8977_v20 = vld [vmem:[#allocation21_spill] sm:$0xff]  ;;  %v8979_v0 = vld [vmem:[#allocation23_spill] sm:$0xff] }
 0x287   :  { %5850 = vmatpush1.bf16.msra.mxu1 %v7837_v53  ;;  %5798 = vmatprep.subr.bf16.mxu0 %v7842_v4  ;;  %v8976_v8 = vld [vmem:[#allocation20_spill] sm:$0xff]  ;;  %v7902_v47 = vld [vmem:[#allocation5 + $0x10ac] ss:$16 sps:$4 sm:$0xff]   ;;  %v8978_v23 = vld [vmem:[#allocation22_spill] sm:$0xff] }
 0x288   :  { %5851 = vmatprep.subr.bf16.mxu1 %v7845_v62  ;;  %v7894_v61 = vld [vmem:[#allocation5 + $0x10c8] ss:$16 sps:$4 sm:$0xff]   ;;  %v7905_v25 = vld [vmem:[#allocation5 + $0x12ac] ss:$16 sps:$4 sm:$0xff]  }
 0x289   :  { %v7897_v45 = vld [vmem:[#allocation5 + $0x12c8] ss:$16 sps:$4 sm:$0xff]   ;;  %v7908_v9 = vld [vmem:[#allocation5 + $0x108c] ss:$16 sps:$4 sm:$0xff]  }
 0x28a   :  { %5799 = vmatpush2.bf16.msra.mxu0 %v7840_v43  ;;  %v7900_v17 = vld [vmem:[#allocation5 + $0x10a8] ss:$16 sps:$4 sm:$0xff]   ;;  %v7911_v34 = vld [vmem:[#allocation5 + $0x128c] ss:$16 sps:$4 sm:$0xff]  }
 0x28b   :  { %5852 = vmatpush2.bf16.msra.mxu1 %v7843_v2  ;;  %5800 = vmatprep.subr.bf16.mxu0 %v7848_v7  ;;  %v7903_v15 = vld [vmem:[#allocation5 + $0x12a8] ss:$16 sps:$4 sm:$0xff]   ;;  %v8981_v48 = vld [vmem:[#allocation25_spill] sm:$0xff]  ;;  %v8983_v33 = vld [vmem:[#allocation27_spill] sm:$0xff] }
 0x28c   :  { %5853 = vmatprep.subr.bf16.mxu1 %v7851_v35  ;;  %v8980_v28 = vld [vmem:[#allocation24_spill] sm:$0xff]  ;;  %v7914_v59 = vld [vmem:[#allocation5 + $0x106c] ss:$16 sps:$4 sm:$0xff]   ;;  %v8982_v18 = vld [vmem:[#allocation26_spill] sm:$0xff] }
 0x28d   :  { %v7906_v49 = vld [vmem:[#allocation5 + $0x1088] ss:$16 sps:$4 sm:$0xff]   ;;  %v7917_v60 = vld [vmem:[#allocation5 + $0x126c] ss:$16 sps:$4 sm:$0xff]  }
 0x28e   :  { %5801 = vmatpush2.bf16.msra.mxu0 %v7846_v51  ;;  %v7909_v32 = vld [vmem:[#allocation5 + $0x1288] ss:$16 sps:$4 sm:$0xff]   ;;  %v7920_v31 = vld [vmem:[#allocation5 + $0x104c] ss:$16 sps:$4 sm:$0xff]  }
 0x28f   :  { %5854 = vmatpush2.bf16.msra.mxu1 %v7849_v52  ;;  %5802 = vmatprep.subr.bf16.mxu0 %v7854_v24  ;;  %v7912_v22 = vld [vmem:[#allocation5 + $0x1068] ss:$16 sps:$4 sm:$0xff]   ;;  %v7923_v44 = vld [vmem:[#allocation5 + $0x124c] ss:$16 sps:$4 sm:$0xff]  }
 0x290   :  { %5855 = vmatprep.subr.bf16.mxu1 %v7857_v3  ;;  %v7915_v6 = vld [vmem:[#allocation5 + $0x1268] ss:$16 sps:$4 sm:$0xff]   ;;  %v7926_v4 = vld [vmem:[#allocation5 + $0x102c] ss:$16 sps:$4 sm:$0xff]  }
 0x291   :  { %v7918_v38 = vld [vmem:[#allocation5 + $0x1048] ss:$16 sps:$4 sm:$0xff]   ;;  %v7929_v62 = vld [vmem:[#allocation5 + $0x122c] ss:$16 sps:$4 sm:$0xff]  }
 0x292   :  { %5803 = vmatpush2.bf16.msra.mxu0 %v7852_v41  ;;  %v7921_v53 = vld [vmem:[#allocation5 + $0x1248] ss:$16 sps:$4 sm:$0xff]   ;;  %v7932_v7 = vld [vmem:[#allocation5 + $0x100c] ss:$16 sps:$4 sm:$0xff]  }
 0x293   :  { %5856 = vmatpush2.bf16.msra.mxu1 %v7855_v13  ;;  %5804 = vmatprep.subr.bf16.mxu0 %v7860_v54  ;;  %v7924_v43 = vld [vmem:[#allocation5 + $0x1028] ss:$16 sps:$4 sm:$0xff]   ;;  %v7935_v35 = vld [vmem:[#allocation5 + $0x120c] ss:$16 sps:$4 sm:$0xff]  }
 0x294   :  { %5857 = vmatprep.subr.bf16.mxu1 %v7863_v11  ;;  %v7927_v2 = vld [vmem:[#allocation5 + $0x1228] ss:$16 sps:$4 sm:$0xff]   ;;  %v7938_v24 = vld [vmem:[#allocation5 + $0x11ec] ss:$16 sps:$4 sm:$0xff]  }
 0x295   :  { %v7930_v51 = vld [vmem:[#allocation5 + $0x1008] ss:$16 sps:$4 sm:$0xff]   ;;  %v7941_v3 = vld [vmem:[#allocation5 + $0x13ec] ss:$16 sps:$4 sm:$0xff]  }
 0x296   :  { %5805 = vmatpush2.bf16.msra.mxu0 %v7858_v16  ;;  %v7933_v52 = vld [vmem:[#allocation5 + $0x1208] ss:$16 sps:$4 sm:$0xff]   ;;  %v7944_v54 = vld [vmem:[#allocation5 + $0x11cc] ss:$16 sps:$4 sm:$0xff]  }
 0x297   :  { %5858 = vmatpush2.bf16.msra.mxu1 %v7861_v5  ;;  %5806 = vmatprep.subr.bf16.mxu0 %v7866_v37  ;;  %v7936_v41 = vld [vmem:[#allocation5 + $0x11e8] ss:$16 sps:$4 sm:$0xff]   ;;  %v7947_v11 = vld [vmem:[#allocation5 + $0x13cc] ss:$16 sps:$4 sm:$0xff]  }
 0x298   :  { %5859 = vmatprep.subr.bf16.mxu1 %v7869_v30  ;;  %v7939_v13 = vld [vmem:[#allocation5 + $0x13e8] ss:$16 sps:$4 sm:$0xff]   ;;  %v7950_v37 = vld [vmem:[#allocation5 + $0x11ac] ss:$16 sps:$4 sm:$0xff]  }
 0x299   :  { %v7942_v16 = vld [vmem:[#allocation5 + $0x11c8] ss:$16 sps:$4 sm:$0xff]   ;;  %v7953_v30 = vld [vmem:[#allocation5 + $0x13ac] ss:$16 sps:$4 sm:$0xff]  }
 0x29a   :  { %5807 = vmatpush2.bf16.msra.mxu0 %v7864_v55  ;;  %v7945_v5 = vld [vmem:[#allocation5 + $0x13c8] ss:$16 sps:$4 sm:$0xff]  }
 0x29b   :  { %5860 = vmatpush2.bf16.msra.mxu1 %v7867_v21  ;;  %5808 = vmatprep.subr.bf16.mxu0 %v7872_v12  ;;  %v7948_v55 = vld [vmem:[#allocation5 + $0x11a8] ss:$16 sps:$4 sm:$0xff]   ;;  %v7956_v12 = vld [vmem:[#allocation5 + $0x118c] ss:$16 sps:$4 sm:$0xff]  }
 0x29c   :  { %5861 = vmatprep.subr.bf16.mxu1 %v7875_v58  ;;  %v7951_v21 = vld [vmem:[#allocation5 + $0x13a8] ss:$16 sps:$4 sm:$0xff]   ;;  %v7959_v58 = vld [vmem:[#allocation5 + $0x138c] ss:$16 sps:$4 sm:$0xff]  }
 0x29e   :  { %5809 = vmatpush2.bf16.msra.mxu0 %v7870_v57  ;;  %v7954_v57 = vld [vmem:[#allocation5 + $0x1188] ss:$16 sps:$4 sm:$0xff]  }
 0x29f   :  { %5862 = vmatpush2.bf16.msra.mxu1 %v7873_v19  ;;  %5810 = vmatprep.subr.bf16.mxu0 %v7878_v50  ;;  %v7957_v19 = vld [vmem:[#allocation5 + $0x1388] ss:$16 sps:$4 sm:$0xff]   ;;  %v7962_v50 = vld [vmem:[#allocation5 + $0x116c] ss:$16 sps:$4 sm:$0xff]  }
 0x2a0   :  { %5863 = vmatprep.subr.bf16.mxu1 %v7881_v29  ;;  %v7965_v29 = vld [vmem:[#allocation5 + $0x136c] ss:$16 sps:$4 sm:$0xff]  }
 0x2a2   :  { %5811 = vmatpush2.bf16.msra.mxu0 %v7876_v1  ;;  %v7960_v1 = vld [vmem:[#allocation5 + $0x1168] ss:$16 sps:$4 sm:$0xff]  }
 0x2a3   :  { %5864 = vmatpush2.bf16.msra.mxu1 %v7879_v56  ;;  %5812 = vmatprep.subr.bf16.mxu0 %v7884_v46  ;;  %v7963_v56 = vld [vmem:[#allocation5 + $0x1368] ss:$16 sps:$4 sm:$0xff]   ;;  %v7968_v46 = vld [vmem:[#allocation5 + $0x114c] ss:$16 sps:$4 sm:$0xff]  }
 0x2a4   :  { %5865 = vmatprep.subr.bf16.mxu1 %v7887_v42  ;;  %v7971_v42 = vld [vmem:[#allocation5 + $0x134c] ss:$16 sps:$4 sm:$0xff]  }
 0x2a6   :  { %5813 = vmatpush2.bf16.msra.mxu0 %v7882_v40  ;;  %v7966_v40 = vld [vmem:[#allocation5 + $0x1148] ss:$16 sps:$4 sm:$0xff]  }
 0x2a7   :  { %5866 = vmatpush2.bf16.msra.mxu1 %v7885_v39  ;;  %5888 = vmatprep.subr.bf16.mxu0 %v7890_v36  ;;  %v7969_v39 = vld [vmem:[#allocation5 + $0x1348] ss:$16 sps:$4 sm:$0xff]   ;;  %v7974_v36 = vld [vmem:[#allocation5 + $0x112c] ss:$16 sps:$4 sm:$0xff]  }
 0x2a8   :  { %5941 = vmatprep.subr.bf16.mxu1 %v7893_v10  ;;  %v7977_v10 = vld [vmem:[#allocation5 + $0x132c] ss:$16 sps:$4 sm:$0xff]  }
 0x2a9   :  { %5815 = vmatmul.mubr.bf16.vlgmr.msra.gmra.mxu0 %v8976_v8  ;;  %v7978_v8 = vld [vmem:[#allocation5 + $0x1108] ss:$16 sps:$4 sm:$0xff]  }
 0x2aa   :  { %5868 = vmatmul.mubr.bf16.vlgmr.msra.gmra.mxu1 %v8977_v20  ;;  %5889 = vmatpush1.bf16.msra.mxu0 %v7888_v63  ;;  %v7972_v63 = vld [vmem:[#allocation5 + $0x1128] ss:$16 sps:$4 sm:$0xff]  }
 0x2ab   :  { %5942 = vmatpush1.bf16.msra.mxu1 %v7891_v14  ;;  %5890 = vmatprep.subr.bf16.mxu0 %v7896_v27  ;;  %v7975_v14 = vld [vmem:[#allocation5 + $0x1328] ss:$16 sps:$4 sm:$0xff]   ;;  %v7980_v27 = vld [vmem:[#allocation5 + $0x110c] ss:$16 sps:$4 sm:$0xff]  }
 0x2ac   :  { %5943 = vmatprep.subr.bf16.mxu1 %v7899_v26  ;;  %5824 = vmatprep.mubr.bf16.mxu0 %v8978_v23  ;;  %v7983_v26 = vld [vmem:[#allocation5 + $0x130c] ss:$16 sps:$4 sm:$0xff]   ;;  %v7981_v20 = vld [vmem:[#allocation5 + $0x1308] ss:$16 sps:$4 sm:$0xff]  }
 0x2ad   :  { %5877 = vmatprep.mubr.bf16.mxu1 %v8979_v0  ;;  %v7992_v23 = vld [vmem:[#allocation5 + $0x14cc] ss:$16 sps:$4 sm:$0xff]  }
 0x2ae   :  { %5891 = vmatpush1.bf16.msra.mxu0 %v7894_v61  ;;  %v7986_v61 = vld [vmem:[#allocation5 + $0x14ec] ss:$16 sps:$4 sm:$0xff]  }
 0x2af   :  { %5944 = vmatpush1.bf16.msra.mxu1 %v7897_v45  ;;  %5892 = vmatprep.subr.bf16.mxu0 %v7902_v47  ;;  %v7989_v45 = vld [vmem:[#allocation5 + $0x16ec] ss:$16 sps:$4 sm:$0xff]   ;;  %v7984_v47 = vld [vmem:[#allocation5 + $0x14e8] ss:$16 sps:$4 sm:$0xff]  }
 0x2b0   :  { %5945 = vmatprep.subr.bf16.mxu1 %v7905_v25  ;;  %v7987_v25 = vld [vmem:[#allocation5 + $0x16e8] ss:$16 sps:$4 sm:$0xff]   ;;  %v7995_v0 = vld [vmem:[#allocation5 + $0x16cc] ss:$16 sps:$4 sm:$0xff]  }
 0x2b1   :  { %5825 = vmatmul.mubr.bf16.gmra.mxu0 %v8980_v28  ;;  %v7998_v28 = vld [vmem:[#allocation5 + $0x14ac] ss:$16 sps:$4 sm:$0xff]  }
 0x2b2   :  { %5878 = vmatmul.mubr.bf16.gmra.mxu1 %v8981_v48  ;;  %5893 = vmatpush1.bf16.msra.mxu0 %v7900_v17  ;;  %v8984_v17 = vld [vmem:[#allocation28_spill] sm:$0xff]  ;;  %v8001_v48 = vld [vmem:[#allocation5 + $0x16ac] ss:$16 sps:$4 sm:$0xff]  }
 0x2b3   :  { %5946 = vmatpush1.bf16.msra.mxu1 %v7903_v15  ;;  %5894 = vmatprep.subr.bf16.mxu0 %v7908_v9  ;;  %v8985_v15 = vld [vmem:[#allocation29_spill] sm:$0xff]  ;;  %v7990_v9 = vld [vmem:[#allocation5 + $0x14c8] ss:$16 sps:$4 sm:$0xff]  }
 0x2b4   :  { %5947 = vmatprep.subr.bf16.mxu1 %v7911_v34  ;;  %5920 = vmatprep.mubr.bf16.mxu0 %v8982_v18  ;;  %v7993_v34 = vld [vmem:[#allocation5 + $0x16c8] ss:$16 sps:$4 sm:$0xff]   ;;  %v8004_v18 = vld [vmem:[#allocation5 + $0x148c] ss:$16 sps:$4 sm:$0xff]  }
 0x2b5   :  { %5973 = vmatprep.mubr.bf16.mxu1 %v8983_v33  ;;  %v8007_v33 = vld [vmem:[#allocation5 + $0x168c] ss:$16 sps:$4 sm:$0xff]  }
 0x2b6   :  { %5895 = vmatpush1.bf16.msra.mxu0 %v7906_v49  ;;  %v8986_v49 = vld [vmem:[#allocation30_spill] sm:$0xff] }
 0x2b7   :  { %5948 = vmatpush1.bf16.msra.mxu1 %v7909_v32  ;;  %5896 = vmatprep.subr.bf16.mxu0 %v7914_v59  ;;  %v8987_v32 = vld [vmem:[#allocation31_spill] sm:$0xff]  ;;  %v7996_v59 = vld [vmem:[#allocation5 + $0x14a8] ss:$16 sps:$4 sm:$0xff]  }
 0x2b8   :  { %5949 = vmatprep.subr.bf16.mxu1 %v7917_v60  ;;  %v7999_v60 = vld [vmem:[#allocation5 + $0x16a8] ss:$16 sps:$4 sm:$0xff]  }
 0x2ba   :  { %5897 = vmatpush1.bf16.msra.mxu0 %v7912_v22  ;;  %v8988_v22 = vld [vmem:[#allocation32_spill] sm:$0xff] }
 0x2bb   :  { %5950 = vmatpush1.bf16.msra.mxu1 %v7915_v6  ;;  %5898 = vmatprep.subr.bf16.mxu0 %v7920_v31  ;;  %v8989_v6 = vld [vmem:[#allocation33_spill] sm:$0xff]  ;;  %v8002_v31 = vld [vmem:[#allocation5 + $0x1488] ss:$16 sps:$4 sm:$0xff]  }
 0x2bc   :  { %5951 = vmatprep.subr.bf16.mxu1 %v7923_v44  ;;  %v8005_v44 = vld [vmem:[#allocation5 + $0x1688] ss:$16 sps:$4 sm:$0xff]  }
 0x2be   :  { %5899 = vmatpush1.bf16.msra.mxu0 %v7918_v38  ;;  %v8010_v38 = vld [vmem:[#allocation5 + $0x146c] ss:$16 sps:$4 sm:$0xff]  }
 0x2bf   :  { %5952 = vmatpush1.bf16.msra.mxu1 %v7921_v53  ;;  %5900 = vmatprep.subr.bf16.mxu0 %v7926_v4  ;;  %v8013_v53 = vld [vmem:[#allocation5 + $0x166c] ss:$16 sps:$4 sm:$0xff]   ;;  %v8990_v4 = vld [vmem:[#allocation34_spill] sm:$0xff] }
 0x2c0   :  { %5953 = vmatprep.subr.bf16.mxu1 %v7929_v62  ;;  %v8991_v62 = vld [vmem:[#allocation35_spill] sm:$0xff] }
 0x2c2   :  { %5901 = vmatpush1.bf16.msra.mxu0 %v7924_v43  ;;  %v8008_v43 = vld [vmem:[#allocation5 + $0x1468] ss:$16 sps:$4 sm:$0xff]  }
 0x2c3   :  { %5954 = vmatpush1.bf16.msra.mxu1 %v7927_v2  ;;  %5902 = vmatprep.subr.bf16.mxu0 %v7932_v7  ;;  %v8011_v2 = vld [vmem:[#allocation5 + $0x1668] ss:$16 sps:$4 sm:$0xff]   ;;  %v8016_v7 = vld [vmem:[#allocation5 + $0x144c] ss:$16 sps:$4 sm:$0xff]  }
 0x2c4   :  { %5955 = vmatprep.subr.bf16.mxu1 %v7935_v35  ;;  %v8019_v35 = vld [vmem:[#allocation5 + $0x164c] ss:$16 sps:$4 sm:$0xff]  }
 0x2c6   :  { %5903 = vmatpush1.bf16.msra.mxu0 %v7930_v51  ;;  %v8014_v51 = vld [vmem:[#allocation5 + $0x1448] ss:$16 sps:$4 sm:$0xff]  }
 0x2c7   :  { %5956 = vmatpush1.bf16.msra.mxu1 %v7933_v52  ;;  %5904 = vmatprep.subr.bf16.mxu0 %v7938_v24  ;;  %v8017_v52 = vld [vmem:[#allocation5 + $0x1648] ss:$16 sps:$4 sm:$0xff]   ;;  %v8022_v24 = vld [vmem:[#allocation5 + $0x142c] ss:$16 sps:$4 sm:$0xff]  }
 0x2c8   :  { %5957 = vmatprep.subr.bf16.mxu1 %v7941_v3  ;;  %v8025_v3 = vld [vmem:[#allocation5 + $0x162c] ss:$16 sps:$4 sm:$0xff]  }
 0x2ca   :  { %5905 = vmatpush2.bf16.msra.mxu0 %v7936_v41  ;;  %v8020_v41 = vld [vmem:[#allocation5 + $0x1428] ss:$16 sps:$4 sm:$0xff]  }
 0x2cb   :  { %5958 = vmatpush2.bf16.msra.mxu1 %v7939_v13  ;;  %5906 = vmatprep.subr.bf16.mxu0 %v7944_v54  ;;  %v8023_v13 = vld [vmem:[#allocation5 + $0x1628] ss:$16 sps:$4 sm:$0xff]   ;;  %v8028_v54 = vld [vmem:[#allocation5 + $0x140c] ss:$16 sps:$4 sm:$0xff]  }
 0x2cc   :  { %5959 = vmatprep.subr.bf16.mxu1 %v7947_v11  ;;  %v8031_v11 = vld [vmem:[#allocation5 + $0x160c] ss:$16 sps:$4 sm:$0xff]  }
 0x2ce   :  { %5907 = vmatpush2.bf16.msra.mxu0 %v7942_v16  ;;  %v8026_v16 = vld [vmem:[#allocation5 + $0x1408] ss:$16 sps:$4 sm:$0xff]  }
 0x2cf   :  { %5960 = vmatpush2.bf16.msra.mxu1 %v7945_v5  ;;  %5908 = vmatprep.subr.bf16.mxu0 %v7950_v37  ;;  %v8029_v5 = vld [vmem:[#allocation5 + $0x1608] ss:$16 sps:$4 sm:$0xff]   ;;  %v8034_v37 = vld [vmem:[#allocation5 + $0x15ec] ss:$16 sps:$4 sm:$0xff]  }
 0x2d0   :  { %5961 = vmatprep.subr.bf16.mxu1 %v7953_v30  ;;  %v8037_v30 = vld [vmem:[#allocation5 + $0x17ec] ss:$16 sps:$4 sm:$0xff]  }
 0x2d2   :  { %5909 = vmatpush2.bf16.msra.mxu0 %v7948_v55  ;;  %v8032_v55 = vld [vmem:[#allocation5 + $0x15e8] ss:$16 sps:$4 sm:$0xff]  }
 0x2d3   :  { %5962 = vmatpush2.bf16.msra.mxu1 %v7951_v21  ;;  %5910 = vmatprep.subr.bf16.mxu0 %v7956_v12  ;;  %v8035_v21 = vld [vmem:[#allocation5 + $0x17e8] ss:$16 sps:$4 sm:$0xff]   ;;  %v8040_v12 = vld [vmem:[#allocation5 + $0x15cc] ss:$16 sps:$4 sm:$0xff]  }
 0x2d4   :  { %5963 = vmatprep.subr.bf16.mxu1 %v7959_v58  ;;  %v8043_v58 = vld [vmem:[#allocation5 + $0x17cc] ss:$16 sps:$4 sm:$0xff]  }
 0x2d6   :  { %5911 = vmatpush2.bf16.msra.mxu0 %v7954_v57  ;;  %v8038_v57 = vld [vmem:[#allocation5 + $0x15c8] ss:$16 sps:$4 sm:$0xff]  }
 0x2d7   :  { %5964 = vmatpush2.bf16.msra.mxu1 %v7957_v19  ;;  %5912 = vmatprep.subr.bf16.mxu0 %v7962_v50  ;;  %v8041_v19 = vld [vmem:[#allocation5 + $0x17c8] ss:$16 sps:$4 sm:$0xff]   ;;  %v8046_v50 = vld [vmem:[#allocation5 + $0x15ac] ss:$16 sps:$4 sm:$0xff]  }
 0x2d8   :  { %5965 = vmatprep.subr.bf16.mxu1 %v7965_v29  ;;  %v8049_v29 = vld [vmem:[#allocation5 + $0x17ac] ss:$16 sps:$4 sm:$0xff]  }
 0x2da   :  { %5913 = vmatpush2.bf16.msra.mxu0 %v7960_v1  ;;  %v8044_v1 = vld [vmem:[#allocation5 + $0x15a8] ss:$16 sps:$4 sm:$0xff]  }
 0x2db   :  { %5966 = vmatpush2.bf16.msra.mxu1 %v7963_v56  ;;  %5914 = vmatprep.subr.bf16.mxu0 %v7968_v46  ;;  %v8047_v56 = vld [vmem:[#allocation5 + $0x17a8] ss:$16 sps:$4 sm:$0xff]   ;;  %v8052_v46 = vld [vmem:[#allocation5 + $0x158c] ss:$16 sps:$4 sm:$0xff]  }
 0x2dc   :  { %5967 = vmatprep.subr.bf16.mxu1 %v7971_v42  ;;  %v8055_v42 = vld [vmem:[#allocation5 + $0x178c] ss:$16 sps:$4 sm:$0xff]  }
 0x2de   :  { %5915 = vmatpush2.bf16.msra.mxu0 %v7966_v40  ;;  %v8050_v40 = vld [vmem:[#allocation5 + $0x1588] ss:$16 sps:$4 sm:$0xff]  }
 0x2df   :  { %5968 = vmatpush2.bf16.msra.mxu1 %v7969_v39  ;;  %5916 = vmatprep.subr.bf16.mxu0 %v7974_v36  ;;  %v8053_v39 = vld [vmem:[#allocation5 + $0x1788] ss:$16 sps:$4 sm:$0xff]   ;;  %v8058_v36 = vld [vmem:[#allocation5 + $0x156c] ss:$16 sps:$4 sm:$0xff]  }
 0x2e0   :  { %5969 = vmatprep.subr.bf16.mxu1 %v7977_v10  ;;  %v8061_v10 = vld [vmem:[#allocation5 + $0x176c] ss:$16 sps:$4 sm:$0xff]  }
 0x2e2   :  { %5917 = vmatpush2.bf16.msra.mxu0 %v7972_v63  ;;  %v8056_v63 = vld [vmem:[#allocation5 + $0x1568] ss:$16 sps:$4 sm:$0xff]  }
 0x2e3   :  { %5970 = vmatpush2.bf16.msra.mxu1 %v7975_v14  ;;  %5918 = vmatprep.subr.bf16.mxu0 %v7980_v27  ;;  %v8059_v14 = vld [vmem:[#allocation5 + $0x1768] ss:$16 sps:$4 sm:$0xff]   ;;  %v8064_v27 = vld [vmem:[#allocation5 + $0x154c] ss:$16 sps:$4 sm:$0xff]  }
 0x2e4   :  { %5971 = vmatprep.subr.bf16.mxu1 %v7983_v26  ;;  %v8067_v26 = vld [vmem:[#allocation5 + $0x174c] ss:$16 sps:$4 sm:$0xff]  }
 0x2e6   :  { %5919 = vmatpush2.bf16.msra.mxu0 %v7978_v8  ;;  %v8062_v8 = vld [vmem:[#allocation5 + $0x1548] ss:$16 sps:$4 sm:$0xff]  }
 0x2e7   :  { %5972 = vmatpush2.bf16.msra.mxu1 %v7981_v20  ;;  %5994 = vmatprep.subr.bf16.mxu0 %v7986_v61  ;;  %v8065_v20 = vld [vmem:[#allocation5 + $0x1748] ss:$16 sps:$4 sm:$0xff]   ;;  %v8070_v61 = vld [vmem:[#allocation5 + $0x152c] ss:$16 sps:$4 sm:$0xff]  }
 0x2e8   :  { %6047 = vmatprep.subr.bf16.mxu1 %v7989_v45  ;;  %v8073_v45 = vld [vmem:[#allocation5 + $0x172c] ss:$16 sps:$4 sm:$0xff]  }
 0x2e9   :  { %5921 = vmatmul.mubr.bf16.vlgmr.msra.gmra.mxu0 %v8984_v17  ;;  %v8074_v17 = vld [vmem:[#allocation5 + $0x1508] ss:$16 sps:$4 sm:$0xff]  }
 0x2ea   :  { %5974 = vmatmul.mubr.bf16.vlgmr.msra.gmra.mxu1 %v8985_v15  ;;  %5995 = vmatpush1.bf16.msra.mxu0 %v7984_v47  ;;  %v8068_v47 = vld [vmem:[#allocation5 + $0x1528] ss:$16 sps:$4 sm:$0xff]  }
 0x2eb   :  { %6048 = vmatpush1.bf16.msra.mxu1 %v7987_v25  ;;  %5996 = vmatprep.subr.bf16.mxu0 %v7992_v23  ;;  %v8071_v25 = vld [vmem:[#allocation5 + $0x1728] ss:$16 sps:$4 sm:$0xff]   ;;  %v8076_v23 = vld [vmem:[#allocation5 + $0x150c] ss:$16 sps:$4 sm:$0xff]  }
 0x2ec   :  { %6049 = vmatprep.subr.bf16.mxu1 %v7995_v0  ;;  %5930 = vmatprep.mubr.bf16.mxu0 %v8986_v49  ;;  %v8079_v0 = vld [vmem:[#allocation5 + $0x170c] ss:$16 sps:$4 sm:$0xff]   ;;  %v8077_v15 = vld [vmem:[#allocation5 + $0x1708] ss:$16 sps:$4 sm:$0xff]  }
 0x2ed   :  { %5983 = vmatprep.mubr.bf16.mxu1 %v8987_v32  ;;  %v8996_v49 = vld [vmem:[#allocation40_spill] sm:$0xff]  ;;  %v8997_v32 = vld [vmem:[#allocation41_spill] sm:$0xff] }
 0x2ee   :  { %5997 = vmatpush1.bf16.msra.mxu0 %v7990_v9  ;;  %v8992_v9 = vld [vmem:[#allocation36_spill] sm:$0xff] }
 0x2ef   :  { %6050 = vmatpush1.bf16.msra.mxu1 %v7993_v34  ;;  %5998 = vmatprep.subr.bf16.mxu0 %v7998_v28  ;;  %v8993_v34 = vld [vmem:[#allocation37_spill] sm:$0xff]  ;;  %v8994_v28 = vld [vmem:[#allocation38_spill] sm:$0xff] }
 0x2f0   :  { %6051 = vmatprep.subr.bf16.mxu1 %v8001_v48  ;;  %v8995_v48 = vld [vmem:[#allocation39_spill] sm:$0xff] }
 0x2f1   :  { %5931 = vmatmul.mubr.bf16.gmra.mxu0 %v8988_v22 }
 0x2f2   :  { %5984 = vmatmul.mubr.bf16.gmra.mxu1 %v8989_v6  ;;  %5999 = vmatpush1.bf16.msra.mxu0 %v7996_v59  ;;  %v8642_v59 = vpop.f32.mrf.mxu0 }
 0x2f3   :  { %6052 = vmatpush1.bf16.msra.mxu1 %v7999_v60  ;;  %6000 = vmatprep.subr.bf16.mxu0 %v8004_v18  ;;  %v8646_v18 = vpop.f32.mrf.mxu1 }
 0x2f4   :  { %6053 = vmatprep.subr.bf16.mxu1 %v8007_v33  ;;  %6026 = vmatprep.mubr.bf16.mxu0 %v8990_v4  ;;  %v8644_v60 = vpop.f32.mrf.mxu0 }
 0x2f5   :  { %6079 = vmatprep.mubr.bf16.mxu1 %v8991_v62  ;;  %v8650_v22 = vpop.f32.mrf.mxu1 }
 0x2f6   :  { %6001 = vmatpush1.bf16.msra.mxu0 %v8002_v31  ;;  %v8648_v33 = vpop.f32.mrf.mxu0 }
 0x2f7   :  { %6054 = vmatpush1.bf16.msra.mxu1 %v8005_v44  ;;  %6002 = vmatprep.subr.bf16.mxu0 %v8010_v38  ;;  %v8656_v44 = vpop.f32.mrf.mxu1 }
 0x2f8   :  { %6055 = vmatprep.subr.bf16.mxu1 %v8013_v53  ;;  %v8652_v6 = vpop.f32.mrf.mxu0 }
 0x2f9   :  { %v8660_v53 = vpop.f32.mrf.mxu1 }
 0x2fa   :  { %6003 = vmatpush1.bf16.msra.mxu0 %v8008_v43  ;;  %v8654_v31 = vpop.f32.mrf.mxu0 }
 0x2fb   :  { %6056 = vmatpush1.bf16.msra.mxu1 %v8011_v2  ;;  %6004 = vmatprep.subr.bf16.mxu0 %v8016_v7  ;;  %v8662_v4 = vpop.f32.mrf.mxu1 }
 0x2fc   :  { %6057 = vmatprep.subr.bf16.mxu1 %v8019_v35  ;;  %v8658_v38 = vpop.f32.mrf.mxu0 }
 0x2fd   :  { %v8666_v43 = vpop.f32.mrf.mxu1 }
 0x2fe   :  { %6005 = vmatpush1.bf16.msra.mxu0 %v8014_v51  ;;  %v8664_v62 = vpop.f32.mrf.mxu0 }
 0x2ff   :  { %6058 = vmatpush1.bf16.msra.mxu1 %v8017_v52  ;;  %6006 = vmatprep.subr.bf16.mxu0 %v8022_v24  ;;  %v8672_v35 = vpop.f32.mrf.mxu1 }
 0x300   :  { %6059 = vmatprep.subr.bf16.mxu1 %v8025_v3  ;;  %v8668_v2 = vpop.f32.mrf.mxu0 }
 0x301   :  { %v8676_v52 = vpop.f32.mrf.mxu1 }
 0x302   :  { %6007 = vmatpush1.bf16.msra.mxu0 %v8020_v41  ;;  %v8670_v7 = vpop.f32.mrf.mxu0 }
 0x303   :  { %6060 = vmatpush1.bf16.msra.mxu1 %v8023_v13  ;;  %6008 = vmatprep.subr.bf16.mxu0 %v8028_v54  ;;  %v8678_v24 = vpop.f32.mrf.mxu1 }
 0x304   :  { %6061 = vmatprep.subr.bf16.mxu1 %v8031_v11  ;;  %v8674_v51 = vpop.f32.mrf.mxu0 }
 0x305   :  { %v8682_v41 = vpop.f32.mrf.mxu1 }
 0x306   :  { %6009 = vmatpush1.bf16.msra.mxu0 %v8026_v16  ;;  %v8680_v3 = vpop.f32.mrf.mxu0 }
 0x307   :  { %6062 = vmatpush1.bf16.msra.mxu1 %v8029_v5  ;;  %6010 = vmatprep.subr.bf16.mxu0 %v8034_v37  ;;  %v8686_v54 = vpop.f32.mrf.mxu1 }
 0x308   :  { %6063 = vmatprep.subr.bf16.mxu1 %v8037_v30  ;;  %v8684_v13 = vpop.f32.mrf.mxu0 }
 0x309   :  { %v8690_v16 = vpop.f32.mrf.mxu1 }
 0x30a   :  { %6011 = vmatpush2.bf16.msra.mxu0 %v8032_v55  ;;  %v8688_v11 = vpop.f32.mrf.mxu0 }
 0x30b   :  { %6064 = vmatpush2.bf16.msra.mxu1 %v8035_v21  ;;  %6012 = vmatprep.subr.bf16.mxu0 %v8040_v12  ;;  %v8694_v37 = vpop.f32.mrf.mxu1 }
 0x30c   :  { %6065 = vmatprep.subr.bf16.mxu1 %v8043_v58  ;;  %v8692_v5 = vpop.f32.mrf.mxu0 }
 0x30d   :  { %v8698_v55 = vpop.f32.mrf.mxu1 }
 0x30e   :  { %6013 = vmatpush2.bf16.msra.mxu0 %v8038_v57  ;;  %v8696_v30 = vpop.f32.mrf.mxu0 }
 0x30f   :  { %6066 = vmatpush2.bf16.msra.mxu1 %v8041_v19  ;;  %6014 = vmatprep.subr.bf16.mxu0 %v8046_v50  ;;  %v8702_v12 = vpop.f32.mrf.mxu1 }
 0x310   :  { %6067 = vmatprep.subr.bf16.mxu1 %v8049_v29  ;;  %v8700_v21 = vpop.f32.mrf.mxu0 }
 0x311   :  { %v8706_v57 = vpop.f32.mrf.mxu1 }
 0x312   :  { %6015 = vmatpush2.bf16.msra.mxu0 %v8044_v1 }
 0x313   :  { %6068 = vmatpush2.bf16.msra.mxu1 %v8047_v56  ;;  %6016 = vmatprep.subr.bf16.mxu0 %v8052_v46 }
 0x314   :  { %6069 = vmatprep.subr.bf16.mxu1 %v8055_v42 }
 0x316   :  { %6017 = vmatpush2.bf16.msra.mxu0 %v8050_v40 }
 0x317   :  { %6070 = vmatpush2.bf16.msra.mxu1 %v8053_v39  ;;  %6018 = vmatprep.subr.bf16.mxu0 %v8058_v36 }
 0x318   :  { %6071 = vmatprep.subr.bf16.mxu1 %v8061_v10 }
 0x31a   :  { %6019 = vmatpush2.bf16.msra.mxu0 %v8056_v63 }
 0x31b   :  { %6072 = vmatpush2.bf16.msra.mxu1 %v8059_v14  ;;  %6020 = vmatprep.subr.bf16.mxu0 %v8064_v27 }
 0x31c   :  { %6073 = vmatprep.subr.bf16.mxu1 %v8067_v26 }
 0x31e   :  { %6021 = vmatpush2.bf16.msra.mxu0 %v8062_v8 }
 0x31f   :  { %6074 = vmatpush2.bf16.msra.mxu1 %v8065_v20  ;;  %6022 = vmatprep.subr.bf16.mxu0 %v8070_v61 }
 0x320   :  { %6075 = vmatprep.subr.bf16.mxu1 %v8073_v45 }
 0x322   :  { %6023 = vmatpush2.bf16.msra.mxu0 %v8068_v47 }
 0x323   :  { %6076 = vmatpush2.bf16.msra.mxu1 %v8071_v25  ;;  %6024 = vmatprep.subr.bf16.mxu0 %v8076_v23 }
 0x324   :  { %6077 = vmatprep.subr.bf16.mxu1 %v8079_v0 }
 0x326   :  { %6025 = vmatpush2.bf16.msra.mxu0 %v8074_v17 }
 0x327   :  { %6078 = vmatpush2.bf16.msra.mxu1 %v8077_v15 }
 0x329   :  { %6027 = vmatmul.mubr.bf16.vlgmr.msra.gmra.mxu0 %v8992_v9  ;;  %v8704_v58 = vpop.f32.mrf.mxu0 }
 0x32a   :  { %6080 = vmatmul.mubr.bf16.vlgmr.msra.gmra.mxu1 %v8993_v34  ;;  %6036 = vmatprep.mubr.bf16.mxu0 %v8994_v28  ;;  %v8710_v50 = vpop.f32.mrf.mxu1  ;;  %v9008_v28 = vld [vmem:[#allocation55_spill] sm:$0xff] }
 0x32b   :  { %6089 = vmatprep.mubr.bf16.mxu1 %v8995_v48  ;;  %v8708_v19 = vpop.f32.mrf.mxu0  ;;  %v978_v48 = vsub.s32 2, %v9008_v28 }
 0x32c   :  { %v8714_v1 = vpop.f32.mrf.mxu1 }
 0x32d   :  { %v8712_v29 = vpop.f32.mrf.mxu0 }
 0x32e   :  { %v8718_v46 = vpop.f32.mrf.mxu1 }
 0x32f   :  { %v8716_v56 = vpop.f32.mrf.mxu0 }
 0x330   :  { %v8722_v40 = vpop.f32.mrf.mxu1 }
 0x331   :  { %6037 = vmatmul.mubr.bf16.gmra.mxu0 %v8996_v49  ;;  %v8720_v42 = vpop.f32.mrf.mxu0 }
 0x332   :  { %6090 = vmatmul.mubr.bf16.gmra.mxu1 %v8997_v32  ;;  %v8726_v36 = vpop.f32.mrf.mxu1  ;;  %v982_v32 = vsub.s32 3, %v9008_v28 }
 0x333   :  { %v8724_v39 = vpop.f32.mrf.mxu0 }
 0x334   :  { %v8730_v63 = vpop.f32.mrf.mxu1 }
 0x335   :  { %v8728_v10 = vpop.f32.mrf.mxu0  ;;  %8998 = vst [vmem:[#allocation42_spill] sm:$0xff] %v8730_v63 }
 0x336   :  { %v8734_v27 = vpop.f32.mrf.mxu1 }
 0x337   :  { %v8732_v14 = vpop.f32.mrf.mxu0  ;;  %9000 = vst [vmem:[#allocation44_spill] sm:$0xff] %v8734_v27  ;;  %v8080_v27 = vld [vmem:[#allocation7] sm:$0xf] }
 0x338   :  { %8999 = vst [vmem:[#allocation43_spill] sm:$0xff] %v8732_v14  ;;  %v8738_v8 = vpop.f32.mrf.mxu1 }
 0x339   :  { %9001 = vst [vmem:[#allocation49_spill] sm:$0xff] %v8738_v8 }
 0x369   :  { %v8736_v26 = vpop.f32.mrf.mxu0 }
 0x36a   :  { %v8740_v20 = vpop.f32.mrf.mxu1 }
 0x36b   :  { %v8742_v61 = vpop.f32.mrf.mxu0 }
 0x36c   :  { %v8744_v45 = vpop.f32.mrf.mxu1 }
 0x36d   :  { %v8746_v47 = vpop.f32.mrf.mxu0 }
 0x36e   :  { %v8748_v25 = vpop.f32.mrf.mxu1 }
 0x36f   :  { %9002 = vst [vmem:[#allocation51_spill] sm:$0xff] %v8748_v25  ;;  %v8750_v23 = vpop.f32.mrf.mxu0  ;;  %v979_v25 = vrot.slane %v8080_v27, %v978_v48 }
 0x370   :  { %v8752_v0 = vpop.f32.mrf.mxu1 }
 0x371   :  { %9003 = vst [vmem:[#allocation45_spill] sm:$0xff] %v8752_v0  ;;  %v8754_v17 = vpop.f32.mrf.mxu0  ;;  %v983_v0 = vrot.slane %v8080_v27, %v982_v32 }
 0x372   :  { %9004 = vst [vmem:[#allocation46_spill] sm:$0xff] %v8754_v17  ;;  %v8756_v15 = vpop.f32.mrf.mxu1 }
 0x373   :  { %9005 = vst [vmem:[#allocation53_spill] sm:$0xff] %v8756_v15  ;;  %v8758_v9 = vpop.f32.mrf.mxu0  ;;  %v5501_v63 = vadd.f32 %v8644_v60, %v983_v0  ;;  %v5505_v32 = vadd.f32 %v8652_v6, %v983_v0 }
 0x374   :  { %9006 = vst [vmem:[#allocation50_spill] sm:$0xff] %v8758_v9  ;;  %v8760_v34 = vpop.f32.mrf.mxu1  ;;  %v5499_v9 = vadd.f32 %v8642_v59, %v979_v25  ;;  %v5509_v59 = vadd.f32 %v8654_v31, %v979_v25  ;;  %v5513_v31 = vadd.f32 %v8664_v62, %v979_v25 }
 0x375   :  { %9007 = vst [vmem:[#allocation47_spill] sm:$0xff] %v8760_v34  ;;  %v8763_v49 = vpop.f32.mrf.mxu0  ;;  %v5554_v27 = vadd.f32 %v8650_v22, %v5501_v63 }
 0x376   :  { %9009 = vst [vmem:[#allocation56_spill] sm:$0xff] %v8763_v49  ;;  %v8766_v8 = vpop.f32.mrf.mxu1  ;;  %v5552_v28 = vadd.f32 %v8646_v18, %v5499_v9  ;;  %v5511_v18 = vadd.f32 %v8658_v38, %v983_v0  ;;  %v5566_v62 = vadd.f32 %v8672_v35, %v5513_v31 }
 0x377   :  { %9010 = vst [vmem:[#allocation52_spill] sm:$0xff] %v8766_v8  ;;  %v8768_v14 = vpop.f32.mrf.mxu0  ;;  %v5503_v8 = vadd.f32 %v8648_v33, %v979_v25  ;;  %v5558_v33 = vadd.f32 %v8660_v53, %v5505_v32 }
 0x378   :  { %9011 = vst [vmem:[#allocation48_spill] sm:$0xff] %v8768_v14  ;;  %v8770_v17 = vpop.f32.mrf.mxu1  ;;  %v5564_v38 = vadd.f32 %v8666_v43, %v5511_v18 }
 0x379   :  { %9012 = vst [vmem:[#allocation54_spill] sm:$0xff] %v8770_v17  ;;  %v5605_v17 = vadd.f32 %v8670_v7, %v5552_v28  ;;  %v5556_v60 = vadd.f32 %v8656_v44, %v5503_v8  ;;  %v5562_v7 = vadd.f32 %v8662_v4, %v5509_v59  ;;  %v5611_v44 = vadd.f32 %v8684_v13, %v5558_v33  ;;  %v9014_v59 = vld [vmem:[#allocation42_spill] sm:$0xff]  ;;  %v9017_v33 = vld [vmem:[#allocation51_spill] sm:$0xff] }
 0x37a   :  { %v5515_v8 = vadd.f32 %v8668_v2, %v983_v0  ;;  %v9016_v18 = vld [vmem:[#allocation46_spill] sm:$0xff] }
 0x37b   :  { %v5658_v22 = vadd.f32 %v8678_v24, %v5605_v17  ;;  %v5609_v6 = vadd.f32 %v8680_v3, %v5556_v60  ;;  %v5615_v53 = vadd.f32 %v8688_v11, %v5562_v7  ;;  %v9015_v60 = vld [vmem:[#allocation43_spill] sm:$0xff] }
 0x37c   :  { %v5568_v11 = vadd.f32 %v8676_v52, %v5515_v8 }
 0x37d   :  { %v5662_v3 = vadd.f32 %v8686_v54, %v5609_v6  ;;  %v5668_v0 = vadd.f32 %v8694_v37, %v5615_v53  ;;  %v5619_v54 = vadd.f32 %v8696_v30, %v5566_v62  ;;  %v9019_v6 = vld [vmem:[#allocation50_spill] sm:$0xff]  ;;  %v9023_v53 = vld [vmem:[#allocation53_spill] sm:$0xff] }
 0x37f   :  { %v5715_v2 = vadd.f32 %v8712_v29, %v5662_v3  ;;  %v5672_v30 = vadd.f32 %v8702_v12, %v5619_v54  ;;  %v9026_v54 = vld [vmem:[#allocation48_spill] sm:$0xff] }
 0x381   :  { %v5768_v52 = vadd.f32 %v8718_v46, %v5715_v2 }
 0x3a9   :  { %v8772_v15 = vpop.f32.mrf.mxu0 }
 0x3aa   :  { %v8775_v34 = vpop.f32.mrf.mxu1 }
 0x3ab   :  { %9013 = vst [vmem:[#allocation58_spill] sm:$0xff] %v8775_v34  ;;  %v8778_v49 = vpop.f32.mrf.mxu0  ;;  %v5607_v34 = vadd.f32 %v8674_v51, %v5554_v27  ;;  %v5711_v51 = vadd.f32 %v8704_v58, %v5658_v22  ;;  %v5664_v58 = vadd.f32 %v8690_v16, %v5611_v44  ;;  %v5621_v16 = vadd.f32 %v8700_v21, %v5568_v11  ;;  %v9018_v22 = vld [vmem:[#allocation44_spill] sm:$0xff]  ;;  %v9025_v11 = vld [vmem:[#allocation47_spill] sm:$0xff] }
 0x3ac   :  { %v8782_v48 = vpop.f32.mrf.mxu1  ;;  %v5725_v27 = vadd.f32 %v8728_v10, %v5672_v30 }
 0x3ad   :  { %v8788_v14 = vpop.f32.mrf.mxu0  ;;  %v5660_v28 = vadd.f32 %v8682_v41, %v5607_v34  ;;  %v5617_v41 = vadd.f32 %v8692_v5, %v5564_v38  ;;  %v5764_v43 = vadd.f32 %v8710_v50, %v5711_v51  ;;  %v5717_v35 = vadd.f32 %v8716_v56, %v5664_v58  ;;  %v9022_v38 = vld [vmem:[#allocation49_spill] sm:$0xff] }
 0x3ae   :  { %v8793_v9 = vpop.f32.mrf.mxu1  ;;  %v5721_v50 = vadd.f32 %v8720_v42, %v5668_v0  ;;  %v5674_v21 = vadd.f32 %v8706_v57, %v5621_v16  ;;  %v5778_v10 = vadd.f32 %v9018_v22, %v5725_v27 }
 0x3af   :  { %v5928_v63 = vpop.f32.mrf.mxu0  ;;  %v5713_v4 = vadd.f32 %v8708_v19, %v5660_v28  ;;  %v5817_v5 = vadd.f32 %v8736_v26, %v5764_v43  ;;  %v5670_v17 = vadd.f32 %v8698_v55, %v5617_v41  ;;  %v5770_v56 = vadd.f32 %v8722_v40, %v5717_v35  ;;  %v9020_v28 = vld [vmem:[#allocation45_spill] sm:$0xff] }
 0x3b0   :  { %v8806_v24 = vpop.f32.mrf.mxu1  ;;  %v5821_v55 = vadd.f32 %v8746_v47, %v5768_v52  ;;  %v5774_v42 = vadd.f32 %v8726_v36, %v5721_v50  ;;  %v9027_v52 = vld [vmem:[#allocation52_spill] sm:$0xff] }
 0x3b1   :  { %v5932_v25 = vpop.f32.mrf.mxu0  ;;  %v5766_v19 = vadd.f32 %v8714_v1, %v5713_v4  ;;  %v5723_v1 = vadd.f32 %v8724_v39, %v5670_v17  ;;  %v5870_v26 = vadd.f32 %v8740_v20, %v5817_v5  ;;  %v5823_v12 = vadd.f32 %v8750_v23, %v5770_v56  ;;  %v9024_v4 = vld [vmem:[#allocation56_spill] sm:$0xff] }
 0x3b2   :  { %v8812_v13 = vpop.f32.mrf.mxu1  ;;  %v5727_v20 = vadd.f32 %v9015_v60, %v5674_v21  ;;  %v5827_v47 = vadd.f32 %v9016_v18, %v5774_v42  ;;  %v5874_v57 = vadd.f32 %v9017_v33, %v5821_v55  ;;  %v9021_v44 = vld [vmem:[#allocation58_spill] sm:$0xff]  ;;  %v5831_v62 = vadd.f32 %v9024_v4, %v5778_v10 }
 0x3b3   :  { %v5934_v34 = vpop.f32.mrf.mxu0  ;;  %v5819_v37 = vadd.f32 %v8742_v61, %v5766_v19  ;;  %v5923_v39 = vadd.f32 %v8772_v15, %v5870_v26  ;;  %v5776_v40 = vadd.f32 %v9014_v59, %v5723_v1  ;;  %v5876_v23 = vadd.f32 %v9020_v28, %v5823_v12  ;;  %v9028_v21 = vld [vmem:[#allocation54_spill] sm:$0xff] }
 0x3b4   :  { %v5987_v29 = vpop.f32.mrf.mxu1  ;;  %v5927_v51 = vadd.f32 %v8788_v14, %v5874_v57  ;;  %v5780_v8 = vadd.f32 %v9022_v38, %v5727_v20  ;;  %v5880_v3 = vadd.f32 %v9023_v53, %v5827_v47 }
 0x3b5   :  { %v5936_v32 = vpop.f32.mrf.mxu0  ;;  %v5872_v61 = vadd.f32 %v8744_v45, %v5819_v37  ;;  %v5829_v7 = vadd.f32 %v9019_v6, %v5776_v40  ;;  %v5976_v15 = vadd.f32 %v9021_v44, %v5923_v39  ;;  %v5929_v43 = vadd.f32 %v5928_v63, %v5876_v23 }
 0x3b6   :  { %v5989_v46 = vpop.f32.mrf.mxu1  ;;  %v5833_v19 = vadd.f32 %v9026_v54, %v5780_v8  ;;  %v5933_v35 = vadd.f32 %v5932_v25, %v5880_v3  ;;  %v5980_v14 = vadd.f32 %v8793_v9, %v5927_v51  ;;  %v5884_v37 = vadd.f32 %v9027_v52, %v5831_v62 }
 0x3b7   :  { %v5925_v36 = vadd.f32 %v8778_v49, %v5872_v61  ;;  %v5938_v31 = vpop.f32.mrf.mxu0  ;;  %v5882_v0 = vadd.f32 %v9025_v11, %v5829_v7 }
 0x3b8   :  { %v5991_v45 = vpop.f32.mrf.mxu1  ;;  %v5886_v42 = vadd.f32 %v9028_v21, %v5833_v19  ;;  %v5986_v25 = vadd.f32 %v8812_v13, %v5933_v35  ;;  %v5937_v12 = vadd.f32 %v5936_v32, %v5884_v37 }
 0x3b9   :  { %v5978_v58 = vadd.f32 %v8782_v48, %v5925_v36  ;;  %v5935_v30 = vadd.f32 %v5934_v34, %v5882_v0  ;;  %v5982_v48 = vadd.f32 %v8806_v24, %v5929_v43 }
 0x3ba   :  { %v5939_v20 = vadd.f32 %v5938_v31, %v5886_v42  ;;  %v5990_v36 = vadd.f32 %v5989_v46, %v5937_v12 }
 0x3bb   :  { %v5988_v40 = vadd.f32 %v5987_v29, %v5935_v30 }
 0x3bc   :  { %v5992_v7 = vadd.f32 %v5991_v45, %v5939_v20 }
 0x3e9   :  { %v6028_v41 = vpop.f32.mrf.mxu0 }
 0x3ea   :  { %v6081_v49 = vpop.f32.mrf.mxu1  ;;  %v6029_v2 = vadd.f32 %v6028_v41, %v5976_v15 }
 0x3eb   :  { %v6030_v5 = vpop.f32.mrf.mxu0 }
 0x3ec   :  { %v6083_v17 = vpop.f32.mrf.mxu1  ;;  %v6082_v16 = vadd.f32 %v6081_v49, %v6029_v2  ;;  %v6031_v50 = vadd.f32 %v6030_v5, %v5978_v58 }
 0x3ed   :  { %v6032_v1 = vpop.f32.mrf.mxu0 }
 0x3ee   :  { %v6085_v56 = vpop.f32.mrf.mxu1  ;;  %v6102_v63 = vmax.f32 %v6082_v16, 0.0  ;;  %v6084_v26 = vadd.f32 %v6083_v17, %v6031_v50  ;;  %v6033_v55 = vadd.f32 %v6032_v1, %v5980_v14 }
 0x3ef   :  { %v6034_v27 = vpop.f32.mrf.mxu0 }
 0x3f0   :  { %v6087_v61 = vpop.f32.mrf.mxu1  ;;  %6118 = vst [vmem:[#allocation8 + $0x10] sm:$0xff] %v6102_v63  ;;  %v6103_v9 = vmax.f32 %v6084_v26, 0.0  ;;  %v6086_v39 = vadd.f32 %v6085_v56, %v6033_v55  ;;  %v6035_v59 = vadd.f32 %v6034_v27, %v5982_v48 }
 0x3f1   :  { %v6038_v34 = vpop.f32.mrf.mxu0 }
 0x3f2   :  { %v6091_v60 = vpop.f32.mrf.mxu1  ;;  %6119 = vst [vmem:[#allocation8 + $0x18] sm:$0xff] %v6103_v9  ;;  %v6106_v24 = vmax.f32 %v6086_v39, 0.0  ;;  %v6088_v18 = vadd.f32 %v6087_v61, %v6035_v59  ;;  %v6039_v47 = vadd.f32 %v6038_v34, %v5986_v25 }
 0x3f3   :  { %v6040_v33 = vpop.f32.mrf.mxu0 }
 0x3f4   :  { %v6093_v57 = vpop.f32.mrf.mxu1  ;;  %6122 = vst [vmem:[#allocation8 + $0x30] sm:$0xff] %v6106_v24  ;;  %v6107_v13 = vmax.f32 %v6088_v18, 0.0  ;;  %v6092_v22 = vadd.f32 %v6091_v60, %v6039_v47  ;;  %v6041_v10 = vadd.f32 %v6040_v33, %v5988_v40 }
 0x3f5   :  { %v6042_v32 = vpop.f32.mrf.mxu0 }
 0x3f6   :  { %v6095_v6 = vpop.f32.mrf.mxu1  ;;  %6123 = vst [vmem:[#allocation8 + $0x38] sm:$0xff] %v6107_v13  ;;  %v6110_v28 = vmax.f32 %v6092_v22, 0.0  ;;  %v6094_v29 = vadd.f32 %v6093_v57, %v6041_v10  ;;  %v6043_v23 = vadd.f32 %v6042_v32, %v5990_v36 }
 0x3f7   :  { %v6044_v44 = vpop.f32.mrf.mxu0 }
 0x3f8   :  { %6126 = vst [vmem:[#allocation8 + $0x50] sm:$0xff] %v6110_v28  ;;  %v6111_v31 = vmax.f32 %v6094_v29, 0.0  ;;  %v6096_v15 = vadd.f32 %v6095_v6, %v6043_v23  ;;  %v6045_v51 = vadd.f32 %v6044_v44, %v5992_v7  ;;  %v6097_v38 = vpop.f32.mrf.mxu1 }
 0x3fa   :  { %6127 = vst [vmem:[#allocation8 + $0x58] sm:$0xff] %v6111_v31  ;;  %v6114_v46 = vmax.f32 %v6096_v15, 0.0  ;;  %v6098_v8 = vadd.f32 %v6097_v38, %v6045_v51 }
 0x3fc   :  { %6130 = vst [vmem:[#allocation8 + $0x70] sm:$0xff] %v6114_v46  ;;  %v6115_v53 = vmax.f32 %v6098_v8, 0.0 }
 0x3fe   :  { %6131 = vst [vmem:[#allocation8 + $0x78] sm:$0xff] %v6115_v53 }
 0x3ff   :  { %8152 = shalt.err (!%p8149_p5)
}
 0x400   :  { %s8175_s4 = smov 512   ;;  %s8176_s5 = smov 32  }
 0x401   :  { %6143 = dma.vmem_to_hbm [thread:$0]  %s6138_s2, 2048, %s8866_s3, [#allocation4], %s8175_s4, %s8175_s4, %s8176_s5  }
 0x402   :  { %8165 = dma.done.wait [#allocation4], 2048  }
 0x403   :  { %8166 = vsyncadd [#allocation4], 4294965248 }
 0x404   :  { %6147 = vsyncpa [#allocation3], 1 }
 0x405   :  { %6148 = vsyncpa [#allocation6], 1 }
 0x406   :  { %6149 = vsyncpa [#allocation4], 1 }

</bundles_post_ra>
